<compile_context>
chip_gen: v7x
topology: tpu7x:2x2x1
jax: 0.10.0
libtpu: 0.0.40
codegen_flags: <defaults>
</compile_context>

<pallas_src>
import jax
import jax.numpy as jnp
import numpy as np
from jax import lax
from jax.experimental import pallas as pl
from jax.experimental.pallas import tpu as pltpu

N_FILTERS = 4               # n_filters
N_HIDDEN = 32               # n_units_hidden
IMG = 28                    # spatial size fixed by the module (fc1 expects F*13*13)
CONV_OUT = IMG - 2          # 26 (valid 3x3 conv)
POOL_OUT = CONV_OUT // 2    # 13
HMAX_W = CONV_OUT - 1       # 25: horizontal-max row width (value for col j at 2*j)
FEAT_BLK = 32               # per-(row,filter) block in the feature buffer (bf16 aligned)
FEAT_K = POOL_OUT * N_FILTERS * FEAT_BLK   # 1664: K of the single fc1 dot
HID_PAD = 128               # hidden width padded to a dense tile
CLS_PAD = 128               # class dim padded to 128 -> lane/sublane-dense fc2 + store
N_CLASSES = 10


# ---------------- fused kernel: conv + relu + pool + fc1 + relu + fc2 + softmax ----------------
def _mnist_fused_kernel(cw_ref, cb_ref, x_ref, w1_ref, b1_ref, w2_ref, b2_ref, o_ref,
                        xsh_ref, feat_ref):
    # cw_ref  : SMEM (F*9,) f32    conv weights, index [f*9 + dy*3 + dx]  (scalar prefetch)
    # cb_ref  : SMEM (F,)   f32    conv bias                              (scalar prefetch)
    # x_ref   : VMEM (28, 28, bt)  input tile, batch on lanes
    # w1_ref  : VMEM (128, 1664)   bf16, fc1 weights pre-packed to the feat-buffer order
    # b1_ref  : VMEM (128, 1) f32
    # w2_ref  : VMEM (128, 128)    bf16, zero-padded fc2
    # b2_ref  : VMEM (128, 1) f32
    # o_ref   : VMEM (128, bt) f32 softmax probabilities (classes on sublanes)
    # xsh_ref : VMEM (2, 28, 26, bt) f32 scratch: dx=1,2 shifted input copies
    # feat_ref: VMEM (1664, bt) bf16 scratch: flattened pooled features for the fc1 dot
    n_f = N_FILTERS

    # Hoisted dx shifts: exactly 2 misaligned sublane relayouts per batch tile.
    xsh_ref[0] = x_ref[:, 1:1 + CONV_OUT, :]
    xsh_ref[1] = x_ref[:, 2:2 + CONV_OUT, :]

    # Zero the feature buffer so the never-written pad sublanes contract to 0 (scratch is
    # uninitialized; 0-weight * garbage-NaN would poison the fc1 dot otherwise).
    feat_ref[...] = jnp.zeros(feat_ref.shape, feat_ref.dtype)

    @pl.loop(0, POOL_OUT)
    def _(i):
        r0 = 2 * i
        acc0 = [None] * n_f          # conv row 2i   per filter, (26, bt)
        acc1 = [None] * n_f          # conv row 2i+1 per filter, (26, bt)
        # tap-outer / filter-inner: each shifted input slab loaded once, reused by
        # 4 filters x (up to) 2 conv rows.
        for t in range(4):                       # input row offset within the strip
            for dx in range(3):
                if dx == 0:
                    slab = x_ref[r0 + t, 0:CONV_OUT, :]          # aligned read
                else:
                    slab = xsh_ref[dx - 1, r0 + t]               # pre-shifted copy
                for f in range(n_f):
                    if t <= 2:                                    # contributes to row 2i
                        w = cw_ref[f * 9 + t * 3 + dx]
                        acc0[f] = slab * w if acc0[f] is None else acc0[f] + slab * w
                    if t >= 1:                                    # contributes to row 2i+1
                        w = cw_ref[f * 9 + (t - 1) * 3 + dx]
                        acc1[f] = slab * w if acc1[f] is None else acc1[f] + slab * w

        # bias + ReLU + 2x2 max-pool for this strip, then store the bf16 feature block.
        for f in range(n_f):
            a0 = jnp.maximum(acc0[f] + cb_ref[f], 0.0)
            a1 = jnp.maximum(acc1[f] + cb_ref[f], 0.0)
            vm = jnp.maximum(a0, a1)                                       # (26, bt)
            hp = jnp.maximum(vm[0:HMAX_W, :], vm[1:HMAX_W + 1, :])         # (25, bt)
            base = pl.multiple_of((i * n_f + f) * FEAT_BLK, FEAT_BLK)
            feat_ref[pl.ds(base, HMAX_W), :] = hp.astype(jnp.bfloat16)

    # fc1: one bf16 MXU dot with f32 accumulation (zero weights at odd / pad columns
    # reproduce torch's reshape(B,-1) @ fc1.weight.T exactly), then ReLU.
    z1 = jnp.dot(w1_ref[...], feat_ref[...], preferred_element_type=jnp.float32)
    z1 = jnp.maximum(z1 + b1_ref[...], 0.0)                                # (128, bt)

    # fc2 (bf16) + softmax over the padded class axis.
    z2 = jnp.dot(w2_ref[...], z1.astype(jnp.bfloat16),
                 preferred_element_type=jnp.float32) + b2_ref[...]
    cls = jax.lax.broadcasted_iota(jnp.int32, z2.shape, 0)
    z2 = jnp.where(cls < N_CLASSES, z2, jnp.float32(-1e30))
    m = jnp.max(z2, axis=0, keepdims=True)
    e = jnp.exp(z2 - m)
    s = jnp.sum(e, axis=0, keepdims=True)
    o_ref[...] = e * pl.reciprocal(s, approx=True)


# ---------------- parameters (torch-shaped, deterministic synthetic) ----------------
def init_params(key, n_filters=N_FILTERS, n_hidden=N_HIDDEN):
    k = jax.random.split(key, 6)
    flat = n_filters * POOL_OUT * POOL_OUT
    return {
        "conv_w": 0.10 * jax.random.normal(k[0], (n_filters, 1, 3, 3), jnp.float32),
        "conv_b": 0.10 * jax.random.normal(k[1], (n_filters,), jnp.float32),
        "fc1_w": 0.05 * jax.random.normal(k[2], (n_hidden, flat), jnp.float32),
        "fc1_b": 0.05 * jax.random.normal(k[3], (n_hidden,), jnp.float32),
        "fc2_w": 0.10 * jax.random.normal(k[4], (10, n_hidden), jnp.float32),
        "fc2_b": 0.10 * jax.random.normal(k[5], (10,), jnp.float32),
    }


def pack_params(params):
    """One-time re-layout of torch-shaped params into kernel-friendly buffers:
    flattened conv weights for SMEM, bf16 fc weights pre-packed to the kernel's feature
    order and zero-padded to dense 128-wide tiles."""
    f32 = jnp.float32
    conv_w = params["conv_w"].astype(f32)                       # (F, 1, 3, 3)
    n_f = conv_w.shape[0]
    n_h = params["fc1_w"].shape[0]

    conv_w_flat = conv_w[:, 0].reshape(n_f * 9)                 # [f*9 + dy*3 + dx]
    conv_b = params["conv_b"].astype(f32)

    # fc1: torch feature index is f*169 + i*13 + j.  The kernel's feature buffer holds,
    # for pooled row i and filter f, a 32-sublane block starting at (i*F + f)*32 whose
    # sublane 2*j carries the pooled value (f, i, j); other sublanes must get 0 weights.
    w1 = params["fc1_w"].astype(f32).reshape(n_h, n_f, POOL_OUT, POOL_OUT)   # (h,f,i,j)
    w1 = jnp.transpose(w1, (0, 2, 1, 3))                                      # (h,i,f,j)
    w1p = jnp.zeros((HID_PAD, POOL_OUT, n_f, FEAT_BLK), f32)
    w1p = w1p.at[:n_h, :, :, 0:2 * POOL_OUT:2].set(w1)
    w1p = w1p.reshape(HID_PAD, FEAT_K).astype(jnp.bfloat16)

    b1 = jnp.zeros((HID_PAD, 1), f32).at[:n_h, 0].set(params["fc1_b"].astype(f32))
    w2 = jnp.zeros((CLS_PAD, HID_PAD), f32).at[:N_CLASSES, :n_h].set(
        params["fc2_w"].astype(f32)).astype(jnp.bfloat16)
    b2 = jnp.zeros((CLS_PAD, 1), f32).at[:N_CLASSES, 0].set(params["fc2_b"].astype(f32))

    return {"conv_w_flat": conv_w_flat, "conv_b": conv_b,
            "w1p": w1p, "b1": b1, "w2": w2, "b2": b2}


# ---------------- forward ----------------
@jax.jit
def mnist_net_forward(x, packed):
    B = x.shape[0]
    assert x.shape[1:] == (1, IMG, IMG)
    # Batch-on-lanes presentation of the input (see TODO at top about hoisting upstream).
    x_t = jnp.transpose(x[:, 0, :, :].astype(jnp.float32), (1, 2, 0))       # (28, 28, B)

    # bt capped at 128: keeps >=2 grid steps for v7x's two TensorCores when B >= 256 and
    # avoids extra register/store pressure on v5e.  Non-multiple-of-128 batches fall back
    # to a single whole-batch step (correct, underfilled lanes).
    bt = 128 if B % 128 == 0 else B
    grid = (B // bt,)

    out = pl.pallas_call(
        _mnist_fused_kernel,
        out_shape=jax.ShapeDtypeStruct((CLS_PAD, B), jnp.float32),
        grid_spec=pltpu.PrefetchScalarGridSpec(
            num_scalar_prefetch=2,                  # conv weights + bias land in SMEM
            grid=grid,
            in_specs=[
                pl.BlockSpec((IMG, IMG, bt), lambda i, *_: (0, 0, i)),
                pl.BlockSpec((HID_PAD, FEAT_K), lambda i, *_: (0, 0)),
                pl.BlockSpec((HID_PAD, 1), lambda i, *_: (0, 0)),
                pl.BlockSpec((CLS_PAD, HID_PAD), lambda i, *_: (0, 0)),
                pl.BlockSpec((CLS_PAD, 1), lambda i, *_: (0, 0)),
            ],
            out_specs=pl.BlockSpec((CLS_PAD, bt), lambda i, *_: (0, i)),
            scratch_shapes=[
                pltpu.VMEM((2, IMG, CONV_OUT, bt), jnp.float32),   # shifted-input copies
                pltpu.VMEM((FEAT_K, bt), jnp.bfloat16),            # flattened pooled feats
            ],
        ),
        compiler_params=pltpu.CompilerParams(
            dimension_semantics=("parallel",),
        ),
    )(packed["conv_w_flat"], packed["conv_b"], x_t,
      packed["w1p"], packed["b1"], packed["w2"], packed["b2"])

    # kernel output is (classes_padded, B); return torch-layout (B, 10) probabilities.
    return out[:N_CLASSES, :].T


# ---------------- pure-JAX reference (for correctness check) ----------------
def reference_forward(x, params):
    x = x.astype(jnp.float32)
    conv = lax.conv_general_dilated(
        x, params["conv_w"], window_strides=(1, 1), padding="VALID",
        dimension_numbers=("NCHW", "OIHW", "NCHW"))
    conv = jnp.maximum(conv + params["conv_b"][None, :, None, None], 0.0)
    B, F, H, W = conv.shape
    pooled = conv.reshape(B, F, H // 2, 2, W // 2, 2).max(axis=(3, 5))
    h = pooled.reshape(B, -1)
    z1 = jnp.maximum(h @ params["fc1_w"].T + params["fc1_b"], 0.0)
    z2 = z1 @ params["fc2_w"].T + params["fc2_b"]
    return jax.nn.softmax(z2, axis=1)


if __name__ == "__main__":
    key = jax.random.PRNGKey(0)
    pkey, xkey = jax.random.split(key)
    params = init_params(pkey)
    packed = pack_params(params)

    # NCHW input like the PyTorch module expects (spatial must be 28x28).
    x = jax.random.normal(xkey, (2, 1, IMG, IMG), jnp.float32)

    out = jax.block_until_ready(mnist_net_forward(x, packed))
    ref = jax.block_until_ready(reference_forward(x, params))

    out_np = np.asarray(out)
    ref_np = np.asarray(ref)
    assert out_np.shape == (2, N_CLASSES)
    assert np.all(np.isfinite(out_np))
    # approx-reciprocal softmax: row sums are 1 within ~2^-12
    assert np.allclose(out_np.sum(axis=1), 1.0, atol=2e-3)
    # bf16 fc weights/activations (f32 accumulation): slightly looser tolerance vs f32 ref
    assert np.allclose(out_np, ref_np, atol=1e-2)
    print("KERNEL_OK")
</pallas_src>

<mosaic_0001>
module attributes {stable_mosaic.version = 11 : i64} {
  func.func @_mnist_fused_kernel(%arg0: i32, %arg1: memref<36xf32, #tpu.memory_space<smem>>, %arg2: memref<4xf32, #tpu.memory_space<smem>>, %arg3: memref<28x28x2xf32, #tpu.memory_space<vmem>>, %arg4: memref<128x1664xbf16, #tpu.memory_space<vmem>>, %arg5: memref<128x1xf32, #tpu.memory_space<vmem>>, %arg6: memref<128x128xbf16, #tpu.memory_space<vmem>>, %arg7: memref<128x1xf32, #tpu.memory_space<vmem>>, %arg8: memref<128x2xf32, #tpu.memory_space<vmem>>, %arg9: memref<2x28x26x2xf32, #tpu.memory_space<vmem>>, %arg10: memref<1664x2xbf16, #tpu.memory_space<vmem>>) attributes {dimension_semantics = [#tpu.dimension_semantics<parallel>], iteration_bounds = array<i64: 1>, scalar_prefetch = 2 : i64, scratch_operands = 2 : i64, tpu.core_type = #tpu.core_type<tc>, window_params = [{transform_indices = @transform_0, window_bounds = array<i64: 28, 28, 2>}, {pipeline_mode = #tpu.pipeline_mode<synchronous>, transform_indices = @transform_1, window_bounds = array<i64: 128, 1664>}, {pipeline_mode = #tpu.pipeline_mode<synchronous>, transform_indices = @transform_2, window_bounds = array<i64: 128, 1>}, {pipeline_mode = #tpu.pipeline_mode<synchronous>, transform_indices = @transform_3, window_bounds = array<i64: 128, 128>}, {pipeline_mode = #tpu.pipeline_mode<synchronous>, transform_indices = @transform_4, window_bounds = array<i64: 128, 1>}, {transform_indices = @transform_5, window_bounds = array<i64: 128, 2>}]} {
    %c0 = arith.constant 0 : index
    %c1 = arith.constant 1 : index
    %c0_0 = arith.constant 0 : index
    %0 = vector.load %arg3[%c0, %c1, %c0_0] : memref<28x28x2xf32, #tpu.memory_space<vmem>>, vector<28x26x2xf32>
    %c0_1 = arith.constant 0 : index
    %c0_2 = arith.constant 0 : index
    %c0_3 = arith.constant 0 : index
    %c0_4 = arith.constant 0 : index
    %1 = vector.load %arg9[%c0_1, %c0_2, %c0_3, %c0_4] : memref<2x28x26x2xf32, #tpu.memory_space<vmem>>, vector<1x28x26x2xf32>
    %2 = vector.shape_cast %1 : vector<1x28x26x2xf32> to vector<28x26x2xf32>
    %3 = vector.shape_cast %0 : vector<28x26x2xf32> to vector<1x28x26x2xf32>
    tpu.vector_store %arg9[%c0_1, %c0_2, %c0_3, %c0_4], %3 {strides = array<i32>} : memref<2x28x26x2xf32, #tpu.memory_space<vmem>>, vector<1x28x26x2xf32>,
    %c0_5 = arith.constant 0 : index
    %c2 = arith.constant 2 : index
    %c0_6 = arith.constant 0 : index
    %4 = vector.load %arg3[%c0_5, %c2, %c0_6] : memref<28x28x2xf32, #tpu.memory_space<vmem>>, vector<28x26x2xf32>
    %c1_7 = arith.constant 1 : index
    %c0_8 = arith.constant 0 : index
    %c0_9 = arith.constant 0 : index
    %c0_10 = arith.constant 0 : index
    %5 = vector.load %arg9[%c1_7, %c0_8, %c0_9, %c0_10] : memref<2x28x26x2xf32, #tpu.memory_space<vmem>>, vector<1x28x26x2xf32>
    %6 = vector.shape_cast %5 : vector<1x28x26x2xf32> to vector<28x26x2xf32>
    %7 = vector.shape_cast %4 : vector<28x26x2xf32> to vector<1x28x26x2xf32>
    tpu.vector_store %arg9[%c1_7, %c0_8, %c0_9, %c0_10], %7 {strides = array<i32>} : memref<2x28x26x2xf32, #tpu.memory_space<vmem>>, vector<1x28x26x2xf32>,
    %cst = arith.constant 0.000000e+00 : bf16
    %8 = vector.broadcast %cst : bf16 to vector<1664x2xbf16>
    %c0_11 = arith.constant 0 : index
    %c0_12 = arith.constant 0 : index
    %9 = vector.load %arg10[%c0_11, %c0_12] : memref<1664x2xbf16, #tpu.memory_space<vmem>>, vector<1664x2xbf16>
    tpu.vector_store %arg10[%c0_11, %c0_12], %8 {strides = array<i32>} : memref<1664x2xbf16, #tpu.memory_space<vmem>>, vector<1664x2xbf16>,
    %c0_i32 = arith.constant 0 : i32
    %c13_i32 = arith.constant 13 : i32
    %10 = arith.addi %c0_i32, %c13_i32 : i32
    %c1_i32 = arith.constant 1 : i32
    scf.for %arg11 = %c0_i32 to %10 step %c1_i32  : i32 {
      %c1_i32_32 = arith.constant 1 : i32
      %41 = arith.muli %arg11, %c1_i32_32 : i32
      %c0_i32_33 = arith.constant 0 : i32
      %42 = arith.addi %c0_i32_33, %41 : i32
      %c2_i32 = arith.constant 2 : i32
      %43 = arith.muli %c2_i32, %42 : i32
      %c0_i32_34 = arith.constant 0 : i32
      %44 = arith.addi %43, %c0_i32_34 : i32
      %45 = arith.index_cast %44 : i32 to index
      %c0_35 = arith.constant 0 : index
      %c0_36 = arith.constant 0 : index
      %46 = vector.load %arg3[%45, %c0_35, %c0_36] : memref<28x28x2xf32, #tpu.memory_space<vmem>>, vector<1x26x2xf32>
      %47 = vector.shape_cast %46 : vector<1x26x2xf32> to vector<26x2xf32>
      %c0_37 = arith.constant 0 : index
      %48 = memref.load %arg1[%c0_37] : memref<36xf32, #tpu.memory_space<smem>>
      %49 = vector.broadcast %48 : f32 to vector<26x2xf32>
      %50 = arith.mulf %47, %49 : vector<26x2xf32>
      %c9 = arith.constant 9 : index
      %51 = memref.load %arg1[%c9] : memref<36xf32, #tpu.memory_space<smem>>
      %52 = vector.broadcast %51 : f32 to vector<26x2xf32>
      %53 = arith.mulf %47, %52 : vector<26x2xf32>
      %c18 = arith.constant 18 : index
      %54 = memref.load %arg1[%c18] : memref<36xf32, #tpu.memory_space<smem>>
      %55 = vector.broadcast %54 : f32 to vector<26x2xf32>
      %56 = arith.mulf %47, %55 : vector<26x2xf32>
      %c27 = arith.constant 27 : index
      %57 = memref.load %arg1[%c27] : memref<36xf32, #tpu.memory_space<smem>>
      %58 = vector.broadcast %57 : f32 to vector<26x2xf32>
      %59 = arith.mulf %47, %58 : vector<26x2xf32>
      %c0_i32_38 = arith.constant 0 : i32
      %60 = arith.addi %43, %c0_i32_38 : i32
      %c0_39 = arith.constant 0 : index
      %61 = arith.index_cast %60 : i32 to index
      %c0_40 = arith.constant 0 : index
      %c0_41 = arith.constant 0 : index
      %62 = vector.load %arg9[%c0_39, %61, %c0_40, %c0_41] : memref<2x28x26x2xf32, #tpu.memory_space<vmem>>, vector<1x1x26x2xf32>
      %63 = vector.shape_cast %62 : vector<1x1x26x2xf32> to vector<26x2xf32>
      %c1_42 = arith.constant 1 : index
      %64 = memref.load %arg1[%c1_42] : memref<36xf32, #tpu.memory_space<smem>>
      %65 = vector.broadcast %64 : f32 to vector<26x2xf32>
      %66 = arith.mulf %63, %65 : vector<26x2xf32>
      %67 = arith.addf %50, %66 : vector<26x2xf32>
      %c10 = arith.constant 10 : index
      %68 = memref.load %arg1[%c10] : memref<36xf32, #tpu.memory_space<smem>>
      %69 = vector.broadcast %68 : f32 to vector<26x2xf32>
      %70 = arith.mulf %63, %69 : vector<26x2xf32>
      %71 = arith.addf %53, %70 : vector<26x2xf32>
      %c19 = arith.constant 19 : index
      %72 = memref.load %arg1[%c19] : memref<36xf32, #tpu.memory_space<smem>>
      %73 = vector.broadcast %72 : f32 to vector<26x2xf32>
      %74 = arith.mulf %63, %73 : vector<26x2xf32>
      %75 = arith.addf %56, %74 : vector<26x2xf32>
      %c28 = arith.constant 28 : index
      %76 = memref.load %arg1[%c28] : memref<36xf32, #tpu.memory_space<smem>>
      %77 = vector.broadcast %76 : f32 to vector<26x2xf32>
      %78 = arith.mulf %63, %77 : vector<26x2xf32>
      %79 = arith.addf %59, %78 : vector<26x2xf32>
      %c0_i32_43 = arith.constant 0 : i32
      %80 = arith.addi %43, %c0_i32_43 : i32
      %c1_44 = arith.constant 1 : index
      %81 = arith.index_cast %80 : i32 to index
      %c0_45 = arith.constant 0 : index
      %c0_46 = arith.constant 0 : index
      %82 = vector.load %arg9[%c1_44, %81, %c0_45, %c0_46] : memref<2x28x26x2xf32, #tpu.memory_space<vmem>>, vector<1x1x26x2xf32>
      %83 = vector.shape_cast %82 : vector<1x1x26x2xf32> to vector<26x2xf32>
      %c2_47 = arith.constant 2 : index
      %84 = memref.load %arg1[%c2_47] : memref<36xf32, #tpu.memory_space<smem>>
      %85 = vector.broadcast %84 : f32 to vector<26x2xf32>
      %86 = arith.mulf %83, %85 : vector<26x2xf32>
      %87 = arith.addf %67, %86 : vector<26x2xf32>
      %c11 = arith.constant 11 : index
      %88 = memref.load %arg1[%c11] : memref<36xf32, #tpu.memory_space<smem>>
      %89 = vector.broadcast %88 : f32 to vector<26x2xf32>
      %90 = arith.mulf %83, %89 : vector<26x2xf32>
      %91 = arith.addf %71, %90 : vector<26x2xf32>
      %c20 = arith.constant 20 : index
      %92 = memref.load %arg1[%c20] : memref<36xf32, #tpu.memory_space<smem>>
      %93 = vector.broadcast %92 : f32 to vector<26x2xf32>
      %94 = arith.mulf %83, %93 : vector<26x2xf32>
      %95 = arith.addf %75, %94 : vector<26x2xf32>
      %c29 = arith.constant 29 : index
      %96 = memref.load %arg1[%c29] : memref<36xf32, #tpu.memory_space<smem>>
      %97 = vector.broadcast %96 : f32 to vector<26x2xf32>
      %98 = arith.mulf %83, %97 : vector<26x2xf32>
      %99 = arith.addf %79, %98 : vector<26x2xf32>
      %c1_i32_48 = arith.constant 1 : i32
      %100 = arith.addi %43, %c1_i32_48 : i32
      %101 = arith.index_cast %100 : i32 to index
      %c0_49 = arith.constant 0 : index
      %c0_50 = arith.constant 0 : index
      %102 = vector.load %arg3[%101, %c0_49, %c0_50] : memref<28x28x2xf32, #tpu.memory_space<vmem>>, vector<1x26x2xf32>
      %103 = vector.shape_cast %102 : vector<1x26x2xf32> to vector<26x2xf32>
      %c3 = arith.constant 3 : index
      %104 = memref.load %arg1[%c3] : memref<36xf32, #tpu.memory_space<smem>>
      %105 = vector.broadcast %104 : f32 to vector<26x2xf32>
      %106 = arith.mulf %103, %105 : vector<26x2xf32>
      %107 = arith.addf %87, %106 : vector<26x2xf32>
      %c0_51 = arith.constant 0 : index
      %108 = memref.load %arg1[%c0_51] : memref<36xf32, #tpu.memory_space<smem>>
      %109 = vector.broadcast %108 : f32 to vector<26x2xf32>
      %110 = arith.mulf %103, %109 : vector<26x2xf32>
      %c12 = arith.constant 12 : index
      %111 = memref.load %arg1[%c12] : memref<36xf32, #tpu.memory_space<smem>>
      %112 = vector.broadcast %111 : f32 to vector<26x2xf32>
      %113 = arith.mulf %103, %112 : vector<26x2xf32>
      %114 = arith.addf %91, %113 : vector<26x2xf32>
      %c9_52 = arith.constant 9 : index
      %115 = memref.load %arg1[%c9_52] : memref<36xf32, #tpu.memory_space<smem>>
      %116 = vector.broadcast %115 : f32 to vector<26x2xf32>
      %117 = arith.mulf %103, %116 : vector<26x2xf32>
      %c21 = arith.constant 21 : index
      %118 = memref.load %arg1[%c21] : memref<36xf32, #tpu.memory_space<smem>>
      %119 = vector.broadcast %118 : f32 to vector<26x2xf32>
      %120 = arith.mulf %103, %119 : vector<26x2xf32>
      %121 = arith.addf %95, %120 : vector<26x2xf32>
      %c18_53 = arith.constant 18 : index
      %122 = memref.load %arg1[%c18_53] : memref<36xf32, #tpu.memory_space<smem>>
      %123 = vector.broadcast %122 : f32 to vector<26x2xf32>
      %124 = arith.mulf %103, %123 : vector<26x2xf32>
      %c30 = arith.constant 30 : index
      %125 = memref.load %arg1[%c30] : memref<36xf32, #tpu.memory_space<smem>>
      %126 = vector.broadcast %125 : f32 to vector<26x2xf32>
      %127 = arith.mulf %103, %126 : vector<26x2xf32>
      %128 = arith.addf %99, %127 : vector<26x2xf32>
      %c27_54 = arith.constant 27 : index
      %129 = memref.load %arg1[%c27_54] : memref<36xf32, #tpu.memory_space<smem>>
      %130 = vector.broadcast %129 : f32 to vector<26x2xf32>
      %131 = arith.mulf %103, %130 : vector<26x2xf32>
      %c1_i32_55 = arith.constant 1 : i32
      %132 = arith.addi %43, %c1_i32_55 : i32
      %c0_56 = arith.constant 0 : index
      %133 = arith.index_cast %132 : i32 to index
      %c0_57 = arith.constant 0 : index
      %c0_58 = arith.constant 0 : index
      %134 = vector.load %arg9[%c0_56, %133, %c0_57, %c0_58] : memref<2x28x26x2xf32, #tpu.memory_space<vmem>>, vector<1x1x26x2xf32>
      %135 = vector.shape_cast %134 : vector<1x1x26x2xf32> to vector<26x2xf32>
      %c4 = arith.constant 4 : index
      %136 = memref.load %arg1[%c4] : memref<36xf32, #tpu.memory_space<smem>>
      %137 = vector.broadcast %136 : f32 to vector<26x2xf32>
      %138 = arith.mulf %135, %137 : vector<26x2xf32>
      %139 = arith.addf %107, %138 : vector<26x2xf32>
      %c1_59 = arith.constant 1 : index
      %140 = memref.load %arg1[%c1_59] : memref<36xf32, #tpu.memory_space<smem>>
      %141 = vector.broadcast %140 : f32 to vector<26x2xf32>
      %142 = arith.mulf %135, %141 : vector<26x2xf32>
      %143 = arith.addf %110, %142 : vector<26x2xf32>
      %c13 = arith.constant 13 : index
      %144 = memref.load %arg1[%c13] : memref<36xf32, #tpu.memory_space<smem>>
      %145 = vector.broadcast %144 : f32 to vector<26x2xf32>
      %146 = arith.mulf %135, %145 : vector<26x2xf32>
      %147 = arith.addf %114, %146 : vector<26x2xf32>
      %c10_60 = arith.constant 10 : index
      %148 = memref.load %arg1[%c10_60] : memref<36xf32, #tpu.memory_space<smem>>
      %149 = vector.broadcast %148 : f32 to vector<26x2xf32>
      %150 = arith.mulf %135, %149 : vector<26x2xf32>
      %151 = arith.addf %117, %150 : vector<26x2xf32>
      %c22 = arith.constant 22 : index
      %152 = memref.load %arg1[%c22] : memref<36xf32, #tpu.memory_space<smem>>
      %153 = vector.broadcast %152 : f32 to vector<26x2xf32>
      %154 = arith.mulf %135, %153 : vector<26x2xf32>
      %155 = arith.addf %121, %154 : vector<26x2xf32>
      %c19_61 = arith.constant 19 : index
      %156 = memref.load %arg1[%c19_61] : memref<36xf32, #tpu.memory_space<smem>>
      %157 = vector.broadcast %156 : f32 to vector<26x2xf32>
      %158 = arith.mulf %135, %157 : vector<26x2xf32>
      %159 = arith.addf %124, %158 : vector<26x2xf32>
      %c31 = arith.constant 31 : index
      %160 = memref.load %arg1[%c31] : memref<36xf32, #tpu.memory_space<smem>>
      %161 = vector.broadcast %160 : f32 to vector<26x2xf32>
      %162 = arith.mulf %135, %161 : vector<26x2xf32>
      %163 = arith.addf %128, %162 : vector<26x2xf32>
      %c28_62 = arith.constant 28 : index
      %164 = memref.load %arg1[%c28_62] : memref<36xf32, #tpu.memory_space<smem>>
      %165 = vector.broadcast %164 : f32 to vector<26x2xf32>
      %166 = arith.mulf %135, %165 : vector<26x2xf32>
      %167 = arith.addf %131, %166 : vector<26x2xf32>
      %c1_i32_63 = arith.constant 1 : i32
      %168 = arith.addi %43, %c1_i32_63 : i32
      %c1_64 = arith.constant 1 : index
      %169 = arith.index_cast %168 : i32 to index
      %c0_65 = arith.constant 0 : index
      %c0_66 = arith.constant 0 : index
      %170 = vector.load %arg9[%c1_64, %169, %c0_65, %c0_66] : memref<2x28x26x2xf32, #tpu.memory_space<vmem>>, vector<1x1x26x2xf32>
      %171 = vector.shape_cast %170 : vector<1x1x26x2xf32> to vector<26x2xf32>
      %c5 = arith.constant 5 : index
      %172 = memref.load %arg1[%c5] : memref<36xf32, #tpu.memory_space<smem>>
      %173 = vector.broadcast %172 : f32 to vector<26x2xf32>
      %174 = arith.mulf %171, %173 : vector<26x2xf32>
      %175 = arith.addf %139, %174 : vector<26x2xf32>
      %c2_67 = arith.constant 2 : index
      %176 = memref.load %arg1[%c2_67] : memref<36xf32, #tpu.memory_space<smem>>
      %177 = vector.broadcast %176 : f32 to vector<26x2xf32>
      %178 = arith.mulf %171, %177 : vector<26x2xf32>
      %179 = arith.addf %143, %178 : vector<26x2xf32>
      %c14 = arith.constant 14 : index
      %180 = memref.load %arg1[%c14] : memref<36xf32, #tpu.memory_space<smem>>
      %181 = vector.broadcast %180 : f32 to vector<26x2xf32>
      %182 = arith.mulf %171, %181 : vector<26x2xf32>
      %183 = arith.addf %147, %182 : vector<26x2xf32>
      %c11_68 = arith.constant 11 : index
      %184 = memref.load %arg1[%c11_68] : memref<36xf32, #tpu.memory_space<smem>>
      %185 = vector.broadcast %184 : f32 to vector<26x2xf32>
      %186 = arith.mulf %171, %185 : vector<26x2xf32>
      %187 = arith.addf %151, %186 : vector<26x2xf32>
      %c23 = arith.constant 23 : index
      %188 = memref.load %arg1[%c23] : memref<36xf32, #tpu.memory_space<smem>>
      %189 = vector.broadcast %188 : f32 to vector<26x2xf32>
      %190 = arith.mulf %171, %189 : vector<26x2xf32>
      %191 = arith.addf %155, %190 : vector<26x2xf32>
      %c20_69 = arith.constant 20 : index
      %192 = memref.load %arg1[%c20_69] : memref<36xf32, #tpu.memory_space<smem>>
      %193 = vector.broadcast %192 : f32 to vector<26x2xf32>
      %194 = arith.mulf %171, %193 : vector<26x2xf32>
      %195 = arith.addf %159, %194 : vector<26x2xf32>
      %c32 = arith.constant 32 : index
      %196 = memref.load %arg1[%c32] : memref<36xf32, #tpu.memory_space<smem>>
      %197 = vector.broadcast %196 : f32 to vector<26x2xf32>
      %198 = arith.mulf %171, %197 : vector<26x2xf32>
      %199 = arith.addf %163, %198 : vector<26x2xf32>
      %c29_70 = arith.constant 29 : index
      %200 = memref.load %arg1[%c29_70] : memref<36xf32, #tpu.memory_space<smem>>
      %201 = vector.broadcast %200 : f32 to vector<26x2xf32>
      %202 = arith.mulf %171, %201 : vector<26x2xf32>
      %203 = arith.addf %167, %202 : vector<26x2xf32>
      %c2_i32_71 = arith.constant 2 : i32
      %204 = arith.addi %43, %c2_i32_71 : i32
      %205 = arith.index_cast %204 : i32 to index
      %c0_72 = arith.constant 0 : index
      %c0_73 = arith.constant 0 : index
      %206 = vector.load %arg3[%205, %c0_72, %c0_73] : memref<28x28x2xf32, #tpu.memory_space<vmem>>, vector<1x26x2xf32>
      %207 = vector.shape_cast %206 : vector<1x26x2xf32> to vector<26x2xf32>
      %c6 = arith.constant 6 : index
      %208 = memref.load %arg1[%c6] : memref<36xf32, #tpu.memory_space<smem>>
      %209 = vector.broadcast %208 : f32 to vector<26x2xf32>
      %210 = arith.mulf %207, %209 : vector<26x2xf32>
      %211 = arith.addf %175, %210 : vector<26x2xf32>
      %c3_74 = arith.constant 3 : index
      %212 = memref.load %arg1[%c3_74] : memref<36xf32, #tpu.memory_space<smem>>
      %213 = vector.broadcast %212 : f32 to vector<26x2xf32>
      %214 = arith.mulf %207, %213 : vector<26x2xf32>
      %215 = arith.addf %179, %214 : vector<26x2xf32>
      %c15 = arith.constant 15 : index
      %216 = memref.load %arg1[%c15] : memref<36xf32, #tpu.memory_space<smem>>
      %217 = vector.broadcast %216 : f32 to vector<26x2xf32>
      %218 = arith.mulf %207, %217 : vector<26x2xf32>
      %219 = arith.addf %183, %218 : vector<26x2xf32>
      %c12_75 = arith.constant 12 : index
      %220 = memref.load %arg1[%c12_75] : memref<36xf32, #tpu.memory_space<smem>>
      %221 = vector.broadcast %220 : f32 to vector<26x2xf32>
      %222 = arith.mulf %207, %221 : vector<26x2xf32>
      %223 = arith.addf %187, %222 : vector<26x2xf32>
      %c24 = arith.constant 24 : index
      %224 = memref.load %arg1[%c24] : memref<36xf32, #tpu.memory_space<smem>>
      %225 = vector.broadcast %224 : f32 to vector<26x2xf32>
      %226 = arith.mulf %207, %225 : vector<26x2xf32>
      %227 = arith.addf %191, %226 : vector<26x2xf32>
      %c21_76 = arith.constant 21 : index
      %228 = memref.load %arg1[%c21_76] : memref<36xf32, #tpu.memory_space<smem>>
      %229 = vector.broadcast %228 : f32 to vector<26x2xf32>
      %230 = arith.mulf %207, %229 : vector<26x2xf32>
      %231 = arith.addf %195, %230 : vector<26x2xf32>
      %c33 = arith.constant 33 : index
      %232 = memref.load %arg1[%c33] : memref<36xf32, #tpu.memory_space<smem>>
      %233 = vector.broadcast %232 : f32 to vector<26x2xf32>
      %234 = arith.mulf %207, %233 : vector<26x2xf32>
      %235 = arith.addf %199, %234 : vector<26x2xf32>
      %c30_77 = arith.constant 30 : index
      %236 = memref.load %arg1[%c30_77] : memref<36xf32, #tpu.memory_space<smem>>
      %237 = vector.broadcast %236 : f32 to vector<26x2xf32>
      %238 = arith.mulf %207, %237 : vector<26x2xf32>
      %239 = arith.addf %203, %238 : vector<26x2xf32>
      %c2_i32_78 = arith.constant 2 : i32
      %240 = arith.addi %43, %c2_i32_78 : i32
      %c0_79 = arith.constant 0 : index
      %241 = arith.index_cast %240 : i32 to index
      %c0_80 = arith.constant 0 : index
      %c0_81 = arith.constant 0 : index
      %242 = vector.load %arg9[%c0_79, %241, %c0_80, %c0_81] : memref<2x28x26x2xf32, #tpu.memory_space<vmem>>, vector<1x1x26x2xf32>
      %243 = vector.shape_cast %242 : vector<1x1x26x2xf32> to vector<26x2xf32>
      %c7 = arith.constant 7 : index
      %244 = memref.load %arg1[%c7] : memref<36xf32, #tpu.memory_space<smem>>
      %245 = vector.broadcast %244 : f32 to vector<26x2xf32>
      %246 = arith.mulf %243, %245 : vector<26x2xf32>
      %247 = arith.addf %211, %246 : vector<26x2xf32>
      %c4_82 = arith.constant 4 : index
      %248 = memref.load %arg1[%c4_82] : memref<36xf32, #tpu.memory_space<smem>>
      %249 = vector.broadcast %248 : f32 to vector<26x2xf32>
      %250 = arith.mulf %243, %249 : vector<26x2xf32>
      %251 = arith.addf %215, %250 : vector<26x2xf32>
      %c16 = arith.constant 16 : index
      %252 = memref.load %arg1[%c16] : memref<36xf32, #tpu.memory_space<smem>>
      %253 = vector.broadcast %252 : f32 to vector<26x2xf32>
      %254 = arith.mulf %243, %253 : vector<26x2xf32>
      %255 = arith.addf %219, %254 : vector<26x2xf32>
      %c13_83 = arith.constant 13 : index
      %256 = memref.load %arg1[%c13_83] : memref<36xf32, #tpu.memory_space<smem>>
      %257 = vector.broadcast %256 : f32 to vector<26x2xf32>
      %258 = arith.mulf %243, %257 : vector<26x2xf32>
      %259 = arith.addf %223, %258 : vector<26x2xf32>
      %c25 = arith.constant 25 : index
      %260 = memref.load %arg1[%c25] : memref<36xf32, #tpu.memory_space<smem>>
      %261 = vector.broadcast %260 : f32 to vector<26x2xf32>
      %262 = arith.mulf %243, %261 : vector<26x2xf32>
      %263 = arith.addf %227, %262 : vector<26x2xf32>
      %c22_84 = arith.constant 22 : index
      %264 = memref.load %arg1[%c22_84] : memref<36xf32, #tpu.memory_space<smem>>
      %265 = vector.broadcast %264 : f32 to vector<26x2xf32>
      %266 = arith.mulf %243, %265 : vector<26x2xf32>
      %267 = arith.addf %231, %266 : vector<26x2xf32>
      %c34 = arith.constant 34 : index
      %268 = memref.load %arg1[%c34] : memref<36xf32, #tpu.memory_space<smem>>
      %269 = vector.broadcast %268 : f32 to vector<26x2xf32>
      %270 = arith.mulf %243, %269 : vector<26x2xf32>
      %271 = arith.addf %235, %270 : vector<26x2xf32>
      %c31_85 = arith.constant 31 : index
      %272 = memref.load %arg1[%c31_85] : memref<36xf32, #tpu.memory_space<smem>>
      %273 = vector.broadcast %272 : f32 to vector<26x2xf32>
      %274 = arith.mulf %243, %273 : vector<26x2xf32>
      %275 = arith.addf %239, %274 : vector<26x2xf32>
      %c2_i32_86 = arith.constant 2 : i32
      %276 = arith.addi %43, %c2_i32_86 : i32
      %c1_87 = arith.constant 1 : index
      %277 = arith.index_cast %276 : i32 to index
      %c0_88 = arith.constant 0 : index
      %c0_89 = arith.constant 0 : index
      %278 = vector.load %arg9[%c1_87, %277, %c0_88, %c0_89] : memref<2x28x26x2xf32, #tpu.memory_space<vmem>>, vector<1x1x26x2xf32>
      %279 = vector.shape_cast %278 : vector<1x1x26x2xf32> to vector<26x2xf32>
      %c8 = arith.constant 8 : index
      %280 = memref.load %arg1[%c8] : memref<36xf32, #tpu.memory_space<smem>>
      %281 = vector.broadcast %280 : f32 to vector<26x2xf32>
      %282 = arith.mulf %279, %281 : vector<26x2xf32>
      %283 = arith.addf %247, %282 : vector<26x2xf32>
      %c5_90 = arith.constant 5 : index
      %284 = memref.load %arg1[%c5_90] : memref<36xf32, #tpu.memory_space<smem>>
      %285 = vector.broadcast %284 : f32 to vector<26x2xf32>
      %286 = arith.mulf %279, %285 : vector<26x2xf32>
      %287 = arith.addf %251, %286 : vector<26x2xf32>
      %c17 = arith.constant 17 : index
      %288 = memref.load %arg1[%c17] : memref<36xf32, #tpu.memory_space<smem>>
      %289 = vector.broadcast %288 : f32 to vector<26x2xf32>
      %290 = arith.mulf %279, %289 : vector<26x2xf32>
      %291 = arith.addf %255, %290 : vector<26x2xf32>
      %c14_91 = arith.constant 14 : index
      %292 = memref.load %arg1[%c14_91] : memref<36xf32, #tpu.memory_space<smem>>
      %293 = vector.broadcast %292 : f32 to vector<26x2xf32>
      %294 = arith.mulf %279, %293 : vector<26x2xf32>
      %295 = arith.addf %259, %294 : vector<26x2xf32>
      %c26 = arith.constant 26 : index
      %296 = memref.load %arg1[%c26] : memref<36xf32, #tpu.memory_space<smem>>
      %297 = vector.broadcast %296 : f32 to vector<26x2xf32>
      %298 = arith.mulf %279, %297 : vector<26x2xf32>
      %299 = arith.addf %263, %298 : vector<26x2xf32>
      %c23_92 = arith.constant 23 : index
      %300 = memref.load %arg1[%c23_92] : memref<36xf32, #tpu.memory_space<smem>>
      %301 = vector.broadcast %300 : f32 to vector<26x2xf32>
      %302 = arith.mulf %279, %301 : vector<26x2xf32>
      %303 = arith.addf %267, %302 : vector<26x2xf32>
      %c35 = arith.constant 35 : index
      %304 = memref.load %arg1[%c35] : memref<36xf32, #tpu.memory_space<smem>>
      %305 = vector.broadcast %304 : f32 to vector<26x2xf32>
      %306 = arith.mulf %279, %305 : vector<26x2xf32>
      %307 = arith.addf %271, %306 : vector<26x2xf32>
      %c32_93 = arith.constant 32 : index
      %308 = memref.load %arg1[%c32_93] : memref<36xf32, #tpu.memory_space<smem>>
      %309 = vector.broadcast %308 : f32 to vector<26x2xf32>
      %310 = arith.mulf %279, %309 : vector<26x2xf32>
      %311 = arith.addf %275, %310 : vector<26x2xf32>
      %c3_i32 = arith.constant 3 : i32
      %312 = arith.addi %43, %c3_i32 : i32
      %313 = arith.index_cast %312 : i32 to index
      %c0_94 = arith.constant 0 : index
      %c0_95 = arith.constant 0 : index
      %314 = vector.load %arg3[%313, %c0_94, %c0_95] : memref<28x28x2xf32, #tpu.memory_space<vmem>>, vector<1x26x2xf32>
      %315 = vector.shape_cast %314 : vector<1x26x2xf32> to vector<26x2xf32>
      %c6_96 = arith.constant 6 : index
      %316 = memref.load %arg1[%c6_96] : memref<36xf32, #tpu.memory_space<smem>>
      %317 = vector.broadcast %316 : f32 to vector<26x2xf32>
      %318 = arith.mulf %315, %317 : vector<26x2xf32>
      %319 = arith.addf %287, %318 : vector<26x2xf32>
      %c15_97 = arith.constant 15 : index
      %320 = memref.load %arg1[%c15_97] : memref<36xf32, #tpu.memory_space<smem>>
      %321 = vector.broadcast %320 : f32 to vector<26x2xf32>
      %322 = arith.mulf %315, %321 : vector<26x2xf32>
      %323 = arith.addf %295, %322 : vector<26x2xf32>
      %c24_98 = arith.constant 24 : index
      %324 = memref.load %arg1[%c24_98] : memref<36xf32, #tpu.memory_space<smem>>
      %325 = vector.broadcast %324 : f32 to vector<26x2xf32>
      %326 = arith.mulf %315, %325 : vector<26x2xf32>
      %327 = arith.addf %303, %326 : vector<26x2xf32>
      %c33_99 = arith.constant 33 : index
      %328 = memref.load %arg1[%c33_99] : memref<36xf32, #tpu.memory_space<smem>>
      %329 = vector.broadcast %328 : f32 to vector<26x2xf32>
      %330 = arith.mulf %315, %329 : vector<26x2xf32>
      %331 = arith.addf %311, %330 : vector<26x2xf32>
      %c3_i32_100 = arith.constant 3 : i32
      %332 = arith.addi %43, %c3_i32_100 : i32
      %c0_101 = arith.constant 0 : index
      %333 = arith.index_cast %332 : i32 to index
      %c0_102 = arith.constant 0 : index
      %c0_103 = arith.constant 0 : index
      %334 = vector.load %arg9[%c0_101, %333, %c0_102, %c0_103] : memref<2x28x26x2xf32, #tpu.memory_space<vmem>>, vector<1x1x26x2xf32>
      %335 = vector.shape_cast %334 : vector<1x1x26x2xf32> to vector<26x2xf32>
      %c7_104 = arith.constant 7 : index
      %336 = memref.load %arg1[%c7_104] : memref<36xf32, #tpu.memory_space<smem>>
      %337 = vector.broadcast %336 : f32 to vector<26x2xf32>
      %338 = arith.mulf %335, %337 : vector<26x2xf32>
      %339 = arith.addf %319, %338 : vector<26x2xf32>
      %c16_105 = arith.constant 16 : index
      %340 = memref.load %arg1[%c16_105] : memref<36xf32, #tpu.memory_space<smem>>
      %341 = vector.broadcast %340 : f32 to vector<26x2xf32>
      %342 = arith.mulf %335, %341 : vector<26x2xf32>
      %343 = arith.addf %323, %342 : vector<26x2xf32>
      %c25_106 = arith.constant 25 : index
      %344 = memref.load %arg1[%c25_106] : memref<36xf32, #tpu.memory_space<smem>>
      %345 = vector.broadcast %344 : f32 to vector<26x2xf32>
      %346 = arith.mulf %335, %345 : vector<26x2xf32>
      %347 = arith.addf %327, %346 : vector<26x2xf32>
      %c34_107 = arith.constant 34 : index
      %348 = memref.load %arg1[%c34_107] : memref<36xf32, #tpu.memory_space<smem>>
      %349 = vector.broadcast %348 : f32 to vector<26x2xf32>
      %350 = arith.mulf %335, %349 : vector<26x2xf32>
      %351 = arith.addf %331, %350 : vector<26x2xf32>
      %c3_i32_108 = arith.constant 3 : i32
      %352 = arith.addi %43, %c3_i32_108 : i32
      %c1_109 = arith.constant 1 : index
      %353 = arith.index_cast %352 : i32 to index
      %c0_110 = arith.constant 0 : index
      %c0_111 = arith.constant 0 : index
      %354 = vector.load %arg9[%c1_109, %353, %c0_110, %c0_111] : memref<2x28x26x2xf32, #tpu.memory_space<vmem>>, vector<1x1x26x2xf32>
      %355 = vector.shape_cast %354 : vector<1x1x26x2xf32> to vector<26x2xf32>
      %c8_112 = arith.constant 8 : index
      %356 = memref.load %arg1[%c8_112] : memref<36xf32, #tpu.memory_space<smem>>
      %357 = vector.broadcast %356 : f32 to vector<26x2xf32>
      %358 = arith.mulf %355, %357 : vector<26x2xf32>
      %359 = arith.addf %339, %358 : vector<26x2xf32>
      %c17_113 = arith.constant 17 : index
      %360 = memref.load %arg1[%c17_113] : memref<36xf32, #tpu.memory_space<smem>>
      %361 = vector.broadcast %360 : f32 to vector<26x2xf32>
      %362 = arith.mulf %355, %361 : vector<26x2xf32>
      %363 = arith.addf %343, %362 : vector<26x2xf32>
      %c26_114 = arith.constant 26 : index
      %364 = memref.load %arg1[%c26_114] : memref<36xf32, #tpu.memory_space<smem>>
      %365 = vector.broadcast %364 : f32 to vector<26x2xf32>
      %366 = arith.mulf %355, %365 : vector<26x2xf32>
      %367 = arith.addf %347, %366 : vector<26x2xf32>
      %c35_115 = arith.constant 35 : index
      %368 = memref.load %arg1[%c35_115] : memref<36xf32, #tpu.memory_space<smem>>
      %369 = vector.broadcast %368 : f32 to vector<26x2xf32>
      %370 = arith.mulf %355, %369 : vector<26x2xf32>
      %371 = arith.addf %351, %370 : vector<26x2xf32>
      %c0_116 = arith.constant 0 : index
      %372 = memref.load %arg2[%c0_116] : memref<4xf32, #tpu.memory_space<smem>>
      %373 = vector.broadcast %372 : f32 to vector<26x2xf32>
      %374 = arith.addf %283, %373 : vector<26x2xf32>
      %cst_117 = arith.constant 0.000000e+00 : f32
      %375 = vector.broadcast %cst_117 : f32 to vector<26x2xf32>
      %376 = arith.maximumf %374, %375 : vector<26x2xf32>
      %c0_118 = arith.constant 0 : index
      %377 = memref.load %arg2[%c0_118] : memref<4xf32, #tpu.memory_space<smem>>
      %378 = vector.broadcast %377 : f32 to vector<26x2xf32>
      %379 = arith.addf %359, %378 : vector<26x2xf32>
      %cst_119 = arith.constant 0.000000e+00 : f32
      %380 = vector.broadcast %cst_119 : f32 to vector<26x2xf32>
      %381 = arith.maximumf %379, %380 : vector<26x2xf32>
      %382 = arith.maximumf %376, %381 : vector<26x2xf32>
      %383 = vector.extract_strided_slice %382 {offsets = [0, 0], sizes = [25, 2], strides = [1, 1]} : vector<26x2xf32> to vector<25x2xf32>
      %384 = vector.extract_strided_slice %382 {offsets = [1, 0], sizes = [25, 2], strides = [1, 1]} : vector<26x2xf32> to vector<25x2xf32>
      %385 = arith.maximumf %383, %384 : vector<25x2xf32>
      %c4_i32 = arith.constant 4 : i32
      %386 = arith.muli %42, %c4_i32 : i32
      %c0_i32_120 = arith.constant 0 : i32
      %387 = arith.addi %386, %c0_i32_120 : i32
      %c32_i32 = arith.constant 32 : i32
      %388 = arith.muli %387, %c32_i32 : i32
      %389 = tpu.assume_multiple %388, 32 : i32
      %390 = arith.truncf %385 : vector<25x2xf32> to vector<25x2xbf16>
      %391 = arith.index_cast %389 : i32 to index
      %c0_121 = arith.constant 0 : index
      %392 = vector.load %arg10[%391, %c0_121] : memref<1664x2xbf16, #tpu.memory_space<vmem>>, vector<25x2xbf16>
      tpu.vector_store %arg10[%391, %c0_121], %390 {strides = array<i32>} : memref<1664x2xbf16, #tpu.memory_space<vmem>>, vector<25x2xbf16>,
      %c1_122 = arith.constant 1 : index
      %393 = memref.load %arg2[%c1_122] : memref<4xf32, #tpu.memory_space<smem>>
      %394 = vector.broadcast %393 : f32 to vector<26x2xf32>
      %395 = arith.addf %291, %394 : vector<26x2xf32>
      %cst_123 = arith.constant 0.000000e+00 : f32
      %396 = vector.broadcast %cst_123 : f32 to vector<26x2xf32>
      %397 = arith.maximumf %395, %396 : vector<26x2xf32>
      %c1_124 = arith.constant 1 : index
      %398 = memref.load %arg2[%c1_124] : memref<4xf32, #tpu.memory_space<smem>>
      %399 = vector.broadcast %398 : f32 to vector<26x2xf32>
      %400 = arith.addf %363, %399 : vector<26x2xf32>
      %cst_125 = arith.constant 0.000000e+00 : f32
      %401 = vector.broadcast %cst_125 : f32 to vector<26x2xf32>
      %402 = arith.maximumf %400, %401 : vector<26x2xf32>
      %403 = arith.maximumf %397, %402 : vector<26x2xf32>
      %404 = vector.extract_strided_slice %403 {offsets = [0, 0], sizes = [25, 2], strides = [1, 1]} : vector<26x2xf32> to vector<25x2xf32>
      %405 = vector.extract_strided_slice %403 {offsets = [1, 0], sizes = [25, 2], strides = [1, 1]} : vector<26x2xf32> to vector<25x2xf32>
      %406 = arith.maximumf %404, %405 : vector<25x2xf32>
      %c4_i32_126 = arith.constant 4 : i32
      %407 = arith.muli %42, %c4_i32_126 : i32
      %c1_i32_127 = arith.constant 1 : i32
      %408 = arith.addi %407, %c1_i32_127 : i32
      %c32_i32_128 = arith.constant 32 : i32
      %409 = arith.muli %408, %c32_i32_128 : i32
      %410 = tpu.assume_multiple %409, 32 : i32
      %411 = arith.truncf %406 : vector<25x2xf32> to vector<25x2xbf16>
      %412 = arith.index_cast %410 : i32 to index
      %c0_129 = arith.constant 0 : index
      %413 = vector.load %arg10[%412, %c0_129] : memref<1664x2xbf16, #tpu.memory_space<vmem>>, vector<25x2xbf16>
      tpu.vector_store %arg10[%412, %c0_129], %411 {strides = array<i32>} : memref<1664x2xbf16, #tpu.memory_space<vmem>>, vector<25x2xbf16>,
      %c2_130 = arith.constant 2 : index
      %414 = memref.load %arg2[%c2_130] : memref<4xf32, #tpu.memory_space<smem>>
      %415 = vector.broadcast %414 : f32 to vector<26x2xf32>
      %416 = arith.addf %299, %415 : vector<26x2xf32>
      %cst_131 = arith.constant 0.000000e+00 : f32
      %417 = vector.broadcast %cst_131 : f32 to vector<26x2xf32>
      %418 = arith.maximumf %416, %417 : vector<26x2xf32>
      %c2_132 = arith.constant 2 : index
      %419 = memref.load %arg2[%c2_132] : memref<4xf32, #tpu.memory_space<smem>>
      %420 = vector.broadcast %419 : f32 to vector<26x2xf32>
      %421 = arith.addf %367, %420 : vector<26x2xf32>
      %cst_133 = arith.constant 0.000000e+00 : f32
      %422 = vector.broadcast %cst_133 : f32 to vector<26x2xf32>
      %423 = arith.maximumf %421, %422 : vector<26x2xf32>
      %424 = arith.maximumf %418, %423 : vector<26x2xf32>
      %425 = vector.extract_strided_slice %424 {offsets = [0, 0], sizes = [25, 2], strides = [1, 1]} : vector<26x2xf32> to vector<25x2xf32>
      %426 = vector.extract_strided_slice %424 {offsets = [1, 0], sizes = [25, 2], strides = [1, 1]} : vector<26x2xf32> to vector<25x2xf32>
      %427 = arith.maximumf %425, %426 : vector<25x2xf32>
      %c4_i32_134 = arith.constant 4 : i32
      %428 = arith.muli %42, %c4_i32_134 : i32
      %c2_i32_135 = arith.constant 2 : i32
      %429 = arith.addi %428, %c2_i32_135 : i32
      %c32_i32_136 = arith.constant 32 : i32
      %430 = arith.muli %429, %c32_i32_136 : i32
      %431 = tpu.assume_multiple %430, 32 : i32
      %432 = arith.truncf %427 : vector<25x2xf32> to vector<25x2xbf16>
      %433 = arith.index_cast %431 : i32 to index
      %c0_137 = arith.constant 0 : index
      %434 = vector.load %arg10[%433, %c0_137] : memref<1664x2xbf16, #tpu.memory_space<vmem>>, vector<25x2xbf16>
      tpu.vector_store %arg10[%433, %c0_137], %432 {strides = array<i32>} : memref<1664x2xbf16, #tpu.memory_space<vmem>>, vector<25x2xbf16>,
      %c3_138 = arith.constant 3 : index
      %435 = memref.load %arg2[%c3_138] : memref<4xf32, #tpu.memory_space<smem>>
      %436 = vector.broadcast %435 : f32 to vector<26x2xf32>
      %437 = arith.addf %307, %436 : vector<26x2xf32>
      %cst_139 = arith.constant 0.000000e+00 : f32
      %438 = vector.broadcast %cst_139 : f32 to vector<26x2xf32>
      %439 = arith.maximumf %437, %438 : vector<26x2xf32>
      %c3_140 = arith.constant 3 : index
      %440 = memref.load %arg2[%c3_140] : memref<4xf32, #tpu.memory_space<smem>>
      %441 = vector.broadcast %440 : f32 to vector<26x2xf32>
      %442 = arith.addf %371, %441 : vector<26x2xf32>
      %cst_141 = arith.constant 0.000000e+00 : f32
      %443 = vector.broadcast %cst_141 : f32 to vector<26x2xf32>
      %444 = arith.maximumf %442, %443 : vector<26x2xf32>
      %445 = arith.maximumf %439, %444 : vector<26x2xf32>
      %446 = vector.extract_strided_slice %445 {offsets = [0, 0], sizes = [25, 2], strides = [1, 1]} : vector<26x2xf32> to vector<25x2xf32>
      %447 = vector.extract_strided_slice %445 {offsets = [1, 0], sizes = [25, 2], strides = [1, 1]} : vector<26x2xf32> to vector<25x2xf32>
      %448 = arith.maximumf %446, %447 : vector<25x2xf32>
      %c4_i32_142 = arith.constant 4 : i32
      %449 = arith.muli %42, %c4_i32_142 : i32
      %c3_i32_143 = arith.constant 3 : i32
      %450 = arith.addi %449, %c3_i32_143 : i32
      %c32_i32_144 = arith.constant 32 : i32
      %451 = arith.muli %450, %c32_i32_144 : i32
      %452 = tpu.assume_multiple %451, 32 : i32
      %453 = arith.truncf %448 : vector<25x2xf32> to vector<25x2xbf16>
      %454 = arith.index_cast %452 : i32 to index
      %c0_145 = arith.constant 0 : index
      %455 = vector.load %arg10[%454, %c0_145] : memref<1664x2xbf16, #tpu.memory_space<vmem>>, vector<25x2xbf16>
      tpu.vector_store %arg10[%454, %c0_145], %453 {strides = array<i32>} : memref<1664x2xbf16, #tpu.memory_space<vmem>>, vector<25x2xbf16>,
    }
    %c13_i32_13 = arith.constant 13 : i32
    %c0_14 = arith.constant 0 : index
    %c0_15 = arith.constant 0 : index
    %11 = vector.load %arg4[%c0_14, %c0_15] : memref<128x1664xbf16, #tpu.memory_space<vmem>>, vector<128x1664xbf16>
    %c0_16 = arith.constant 0 : index
    %c0_17 = arith.constant 0 : index
    %12 = vector.load %arg10[%c0_16, %c0_17] : memref<1664x2xbf16, #tpu.memory_space<vmem>>, vector<1664x2xbf16>
    %cst_18 = arith.constant dense<0.000000e+00> : vector<128x2xf32>
    %13 = tpu.matmul %11, %12, %cst_18 {dimension_numbers = #tpu.dot_dimension_numbers<[1], [0], [0], [1], [0, 0, 1, 1], [], []>} : vector<128x1664xbf16>, vector<1664x2xbf16>, vector<128x2xf32> -> vector<128x2xf32>
    %c0_19 = arith.constant 0 : index
    %c0_20 = arith.constant 0 : index
    %14 = vector.load %arg5[%c0_19, %c0_20] : memref<128x1xf32, #tpu.memory_space<vmem>>, vector<128x1xf32>
    %15 = vector.broadcast %14 : vector<128x1xf32> to vector<128x2xf32>
    %16 = arith.addf %13, %15 : vector<128x2xf32>
    %cst_21 = arith.constant 0.000000e+00 : f32
    %17 = vector.broadcast %cst_21 : f32 to vector<128x2xf32>
    %18 = arith.maximumf %16, %17 : vector<128x2xf32>
    %c0_22 = arith.constant 0 : index
    %c0_23 = arith.constant 0 : index
    %19 = vector.load %arg6[%c0_22, %c0_23] : memref<128x128xbf16, #tpu.memory_space<vmem>>, vector<128x128xbf16>
    %20 = arith.truncf %18 : vector<128x2xf32> to vector<128x2xbf16>
    %cst_24 = arith.constant dense<0.000000e+00> : vector<128x2xf32>
    %21 = tpu.matmul %19, %20, %cst_24 {dimension_numbers = #tpu.dot_dimension_numbers<[1], [0], [0], [1], [0, 0, 1, 1], [], []>} : vector<128x128xbf16>, vector<128x2xbf16>, vector<128x2xf32> -> vector<128x2xf32>
    %c0_25 = arith.constant 0 : index
    %c0_26 = arith.constant 0 : index
    %22 = vector.load %arg7[%c0_25, %c0_26] : memref<128x1xf32, #tpu.memory_space<vmem>>, vector<128x1xf32>
    %23 = vector.broadcast %22 : vector<128x1xf32> to vector<128x2xf32>
    %24 = arith.addf %21, %23 : vector<128x2xf32>
    %25 = tpu.iota {dimensions = array<i32: 0>} : vector<128x2xi32>
    %c10_i32 = arith.constant 10 : i32
    %26 = vector.broadcast %c10_i32 : i32 to vector<128x2xi32>
    %27 = arith.cmpi slt, %25, %26 : vector<128x2xi32>
    %cst_27 = arith.constant -1.000000e+30 : f32
    %28 = vector.broadcast %cst_27 : f32 to vector<128x2xf32>
    %29 = arith.select %27, %24, %28 : vector<128x2xi1>, vector<128x2xf32>
    %cst_28 = arith.constant dense<0xFF800000> : vector<2xf32>
    %30 = vector.multi_reduction <maximumf>, %29, %cst_28 [0] : vector<128x2xf32> to vector<2xf32>
    %31 = vector.shape_cast %30 : vector<2xf32> to vector<1x2xf32>
    %32 = vector.broadcast %31 : vector<1x2xf32> to vector<128x2xf32>
    %33 = arith.subf %29, %32 : vector<128x2xf32>
    %34 = math.exp %33 : vector<128x2xf32>
    %cst_29 = arith.constant dense<0.000000e+00> : vector<2xf32>
    %35 = vector.multi_reduction <add>, %34, %cst_29 [0] : vector<128x2xf32> to vector<2xf32>
    %36 = vector.shape_cast %35 : vector<2xf32> to vector<1x2xf32>
    %37 = tpu.reciprocal %36 {approx = true} : vector<1x2xf32> -> vector<1x2xf32>
    %38 = vector.broadcast %37 : vector<1x2xf32> to vector<128x2xf32>
    %39 = arith.mulf %34, %38 : vector<128x2xf32>
    %c0_30 = arith.constant 0 : index
    %c0_31 = arith.constant 0 : index
    %40 = vector.load %arg8[%c0_30, %c0_31] : memref<128x2xf32, #tpu.memory_space<vmem>>, vector<128x2xf32>
    tpu.vector_store %arg8[%c0_30, %c0_31], %39 {strides = array<i32>} : memref<128x2xf32, #tpu.memory_space<vmem>>, vector<128x2xf32>,
    return
  }
  func.func @transform_0(%arg0: i32, %arg1: memref<36xf32, #tpu.memory_space<smem>>, %arg2: memref<4xf32, #tpu.memory_space<smem>>) -> (i32, i32, i32) {
    %c0_i32 = arith.constant 0 : i32
    %c0_i32_0 = arith.constant 0 : i32
    %c0_i32_1 = arith.constant 0 : i32
    return %c0_i32, %c0_i32_0, %arg0 : i32, i32, i32
  }
  func.func @transform_1(%arg0: i32, %arg1: memref<36xf32, #tpu.memory_space<smem>>, %arg2: memref<4xf32, #tpu.memory_space<smem>>) -> (i32, i32) {
    %c0_i32 = arith.constant 0 : i32
    %c0_i32_0 = arith.constant 0 : i32
    %c0_i32_1 = arith.constant 0 : i32
    return %c0_i32, %c0_i32_0 : i32, i32
  }
  func.func @transform_2(%arg0: i32, %arg1: memref<36xf32, #tpu.memory_space<smem>>, %arg2: memref<4xf32, #tpu.memory_space<smem>>) -> (i32, i32) {
    %c0_i32 = arith.constant 0 : i32
    %c0_i32_0 = arith.constant 0 : i32
    %c0_i32_1 = arith.constant 0 : i32
    return %c0_i32, %c0_i32_0 : i32, i32
  }
  func.func @transform_3(%arg0: i32, %arg1: memref<36xf32, #tpu.memory_space<smem>>, %arg2: memref<4xf32, #tpu.memory_space<smem>>) -> (i32, i32) {
    %c0_i32 = arith.constant 0 : i32
    %c0_i32_0 = arith.constant 0 : i32
    %c0_i32_1 = arith.constant 0 : i32
    return %c0_i32, %c0_i32_0 : i32, i32
  }
  func.func @transform_4(%arg0: i32, %arg1: memref<36xf32, #tpu.memory_space<smem>>, %arg2: memref<4xf32, #tpu.memory_space<smem>>) -> (i32, i32) {
    %c0_i32 = arith.constant 0 : i32
    %c0_i32_0 = arith.constant 0 : i32
    %c0_i32_1 = arith.constant 0 : i32
    return %c0_i32, %c0_i32_0 : i32, i32
  }
  func.func @transform_5(%arg0: i32, %arg1: memref<36xf32, #tpu.memory_space<smem>>, %arg2: memref<4xf32, #tpu.memory_space<smem>>) -> (i32, i32) {
    %c0_i32 = arith.constant 0 : i32
    %c0_i32_0 = arith.constant 0 : i32
    return %c0_i32, %arg0 : i32, i32
  }
}

</mosaic_0001>

<bundles_post_ra>
// kernel: mnist_net_forward.1
= control target key start
LH: loop header
LB: loop body
LE: loop exit
PB: predicated region body
PF: predicated region fallthrough
CT: control target
= control target key end

     0   :  { %s7618_s0 = inlined_call_operand.vmem [shape: f32[36], index: 0, kind: input, shape index: {}]   ;;  %s7619_s2 = inlined_call_operand.vmem [shape: f32[28,28,2], index: 2, kind: input, shape index: {}]   ;;  %s7620_s3 = inlined_call_operand.vmem [shape: bf16[128,1664], index: 3, kind: input, shape index: {}]   ;;  %s7621_s4 = inlined_call_operand.vmem [shape: f32[128,1], index: 4, kind: input, shape index: {}]   ;;  %s7622_s5 = inlined_call_operand.vmem [shape: bf16[128,128], index: 5, kind: input, shape index: {}]   ;;  %s7623_s6 = inlined_call_operand.vmem [shape: f32[128,1], index: 6, kind: input, shape index: {}]   ;;  %s7624_s7 = inlined_call_operand.vmem [shape: f32[128,2], index: 7, kind: output, shape index: {}]   ;;  %s7625_s1 = inlined_call_operand.vmem [shape: f32[4], index: 1, kind: input, shape index: {}]  }
   0x1   :  { %s12_s26 = sshll.u32 %s7618_s0, 4  ;;  %s16_s29 = sshll.u32 %s7625_s1, 4  ;;  %s13_s26 = int_to_ptr.vmem [resolvable:$true] %s12_s26  ;;  %s17_s29 = int_to_ptr.vmem [resolvable:$true] %s16_s29 }
   0x2   :  { %s4463_s30 = scalar_lea.vmem %s13_s26, 16  ;;  %p4468_p1 = scmp.lt.s32.totalorder %s13_s26, %s13_s26 }
   0x3   :  { %p4464_p0 = scmp.ne.s32.totalorder %s13_s26, %s4463_s30  ;;  %p4469_p2 = scmp.lt.s32.totalorder %s4463_s30, %s4463_s30 }
   0x5   :  { %p4470_p3 = por %p4469_p2, %p4468_p1 }
   0x7   :  { %p4471_p4 = pnand %p4470_p3, %p4464_p0 }
   0x9   :  { %4474 = shalt.err (!%p4471_p4)  }
   0xa   :  { %s4497_s8 = smov [#allocation5]   ;;  %s4475_s9 = scalar_lea.vmem %s17_s29, 16 }
   0xb   :  { %15 = dma.vmem_to_smem %s13_s26, 16, %s4497_s8, [#allocation4] }
   0xc   :  { %p4476_p5 = scmp.ne.s32.totalorder %s17_s29, %s4475_s9  ;;  %p4480_p6 = scmp.lt.s32.totalorder %s17_s29, %s17_s29 }
   0xd   :  { %p4481_p7 = scmp.lt.s32.totalorder %s4475_s9, %s4475_s9 }
   0xf   :  { %p4482_p8 = por %p4481_p7, %p4480_p6 }
  0x11   :  { %p4483_p9 = pnand %p4482_p8, %p4476_p5 }
  0x13   :  { %4486 = shalt.err (!%p4483_p9)  }
  0x14   :  { %s4498_s0 = smov [#allocation6]  }
  0x15   :  { %19 = dma.vmem_to_smem %s17_s29, 16, %s4498_s0, [#allocation4] }
  0x16   :  { %4491 = dma.done.wait [#allocation4], 32 }
  0x17   :  { %4492 = vsyncadd [#allocation4], 4294967264 }
  0x18   :  { %21 = sfence }
  0x19   :  { %v33_v0 = vld [vmem:[%s7619_s2 + $0x1] sm:$0xff]  ;;  %vm145_vm0 = vcmask 15360   ;;  %v34_v1 = vld [vmem:[%s7619_s2 + $0x9] sm:$0xff]  ;;  %v35_v2 = vld [vmem:[%s7619_s2 + $0x11] sm:$0xff]  ;;  %vm149_vm1 = vcmask 9216   ;;  %v7626_v6 = vmov 0  }
  0x1a   :  { %146 = vst.msk [vmem:[#allocation2] sm:$0xff] %vm145_vm0, %v33_v0  ;;  %147 = vst.msk [vmem:[#allocation2 + $0x8] sm:$0xff] %vm145_vm0, %v34_v1  ;;  %v4562_v3 = vld [vmem:[%s7619_s2 + $0x19] sm:$0x3]  ;;  %v4567_v4 = vld [vmem:[%s7619_s2 + $0x21] sm:$0xff]  ;;  %s5660_s9 = smov 0  }
  0x1b   :  { %148 = vst.msk [vmem:[#allocation2 + $0x10] sm:$0xff] %vm145_vm0, %v35_v2  ;;  %v4572_v5 = vld [vmem:[%s7619_s2 + $0x29] sm:$0xff]  ;;  %484 = vst.msk [vmem:[#allocation3] sm:$0xff] %vm145_vm0, %v7626_v6  ;;  %v39_v7 = vld [vmem:[%s7619_s2 + $0x31] sm:$0xff] }
  0x1c   :  { %485 = vst.msk [vmem:[#allocation3 + $0x8] sm:$0xff] %vm145_vm0, %v7626_v6  ;;  %486 = vst.msk [vmem:[#allocation3 + $0x10] sm:$0xff] %vm145_vm0, %v7626_v6  ;;  %v40_v8 = vld [vmem:[%s7619_s2 + $0x39] sm:$0x3]  ;;  %v41_v9 = vld [vmem:[%s7619_s2 + $0x41] sm:$0xff] }
  0x1d   :  { %487 = vst.msk [vmem:[#allocation3 + $0x18] sm:$0xff] %vm145_vm0, %v7626_v6  ;;  %488 = vst.msk [vmem:[#allocation3 + $0x20] sm:$0xff] %vm145_vm0, %v7626_v6  ;;  %v42_v10 = vld [vmem:[%s7619_s2 + $0x49] sm:$0xff]  ;;  %v43_v11 = vld [vmem:[%s7619_s2 + $0x51] sm:$0xff] }
  0x1e   :  { %489 = vst.msk [vmem:[#allocation3 + $0x28] sm:$0xff] %vm145_vm0, %v7626_v6  ;;  %490 = vst.msk [vmem:[#allocation3 + $0x30] sm:$0xff] %vm145_vm0, %v7626_v6  ;;  %v44_v12 = vld [vmem:[%s7619_s2 + $0x59] sm:$0x3]  ;;  %v45_v13 = vld [vmem:[%s7619_s2 + $0x61] sm:$0xff] }
  0x1f   :  { %491 = vst.msk [vmem:[#allocation3 + $0x38] sm:$0xff] %vm145_vm0, %v7626_v6  ;;  %492 = vst.msk [vmem:[#allocation3 + $0x40] sm:$0xff] %vm145_vm0, %v7626_v6  ;;  %v46_v14 = vld [vmem:[%s7619_s2 + $0x69] sm:$0xff]  ;;  %v47_v15 = vld [vmem:[%s7619_s2 + $0x71] sm:$0xff] }
  0x20   :  { %493 = vst.msk [vmem:[#allocation3 + $0x48] sm:$0xff] %vm145_vm0, %v7626_v6  ;;  %494 = vst.msk [vmem:[#allocation3 + $0x50] sm:$0xff] %vm145_vm0, %v7626_v6  ;;  %v48_v16 = vld [vmem:[%s7619_s2 + $0x79] sm:$0x3]  ;;  %v49_v17 = vld [vmem:[%s7619_s2 + $0x81] sm:$0xff] }
  0x21   :  { %495 = vst.msk [vmem:[#allocation3 + $0x58] sm:$0xff] %vm145_vm0, %v7626_v6  ;;  %496 = vst.msk [vmem:[#allocation3 + $0x60] sm:$0xff] %vm145_vm0, %v7626_v6  ;;  %v50_v18 = vld [vmem:[%s7619_s2 + $0x89] sm:$0xff]  ;;  %v51_v19 = vld [vmem:[%s7619_s2 + $0x91] sm:$0xff] }
  0x22   :  { %497 = vst.msk [vmem:[#allocation3 + $0x68] sm:$0xff] %vm145_vm0, %v7626_v6  ;;  %498 = vst.msk [vmem:[#allocation3 + $0x70] sm:$0xff] %vm145_vm0, %v7626_v6  ;;  %v52_v20 = vld [vmem:[%s7619_s2 + $0x99] sm:$0x3]  ;;  %v53_v21 = vld [vmem:[%s7619_s2 + $0xa1] sm:$0xff] }
  0x23   :  { %499 = vst.msk [vmem:[#allocation3 + $0x78] sm:$0xff] %vm145_vm0, %v7626_v6  ;;  %500 = vst.msk [vmem:[#allocation3 + $0x80] sm:$0xff] %vm145_vm0, %v7626_v6  ;;  %v54_v22 = vld [vmem:[%s7619_s2 + $0xa9] sm:$0xff]  ;;  %v55_v23 = vld [vmem:[%s7619_s2 + $0xb1] sm:$0xff] }
  0x24   :  { %501 = vst.msk [vmem:[#allocation3 + $0x88] sm:$0xff] %vm145_vm0, %v7626_v6  ;;  %502 = vst.msk [vmem:[#allocation3 + $0x90] sm:$0xff] %vm145_vm0, %v7626_v6  ;;  %v56_v24 = vld [vmem:[%s7619_s2 + $0xb9] sm:$0x3]  ;;  %v57_v25 = vld [vmem:[%s7619_s2 + $0xc1] sm:$0xff] }
  0x25   :  { %503 = vst.msk [vmem:[#allocation3 + $0x98] sm:$0xff] %vm145_vm0, %v7626_v6  ;;  %504 = vst.msk [vmem:[#allocation3 + $0xa0] sm:$0xff] %vm145_vm0, %v7626_v6  ;;  %v58_v26 = vld [vmem:[%s7619_s2 + $0xc9] sm:$0xff]  ;;  %v59_v27 = vld [vmem:[%s7619_s2 + $0xd1] sm:$0xff] }
  0x26   :  { %505 = vst.msk [vmem:[#allocation3 + $0xa8] sm:$0xff] %vm145_vm0, %v7626_v6  ;;  %506 = vst.msk [vmem:[#allocation3 + $0xb0] sm:$0xff] %vm145_vm0, %v7626_v6  ;;  %v60_v28 = vld [vmem:[%s7619_s2 + $0xd9] sm:$0x3]  ;;  %v61_v29 = vld [vmem:[%s7619_s2 + $0xe1] sm:$0xff] }
  0x27   :  { %507 = vst.msk [vmem:[#allocation3 + $0xb8] sm:$0xff] %vm145_vm0, %v7626_v6  ;;  %508 = vst.msk [vmem:[#allocation3 + $0xc0] sm:$0xff] %vm145_vm0, %v7626_v6  ;;  %v62_v30 = vld [vmem:[%s7619_s2 + $0xe9] sm:$0xff]  ;;  %v63_v31 = vld [vmem:[%s7619_s2 + $0xf1] sm:$0xff] }
  0x28   :  { %509 = vst.msk [vmem:[#allocation3 + $0xc8] sm:$0xff] %vm145_vm0, %v7626_v6  ;;  %510 = vst.msk [vmem:[#allocation3 + $0xd0] sm:$0xff] %vm145_vm0, %v7626_v6  ;;  %v64_v32 = vld [vmem:[%s7619_s2 + $0xf9] sm:$0x3]  ;;  %v65_v33 = vld [vmem:[%s7619_s2 + $0x101] sm:$0xff] }
  0x29   :  { %511 = vst.msk [vmem:[#allocation3 + $0xd8] sm:$0xff] %vm145_vm0, %v7626_v6  ;;  %512 = vst.msk [vmem:[#allocation3 + $0xe0] sm:$0xff] %vm145_vm0, %v7626_v6  ;;  %v66_v34 = vld [vmem:[%s7619_s2 + $0x109] sm:$0xff]  ;;  %v67_v35 = vld [vmem:[%s7619_s2 + $0x111] sm:$0xff] }
  0x2a   :  { %513 = vst.msk [vmem:[#allocation3 + $0xe8] sm:$0xff] %vm145_vm0, %v7626_v6  ;;  %514 = vst.msk [vmem:[#allocation3 + $0xf0] sm:$0xff] %vm145_vm0, %v7626_v6  ;;  %v68_v36 = vld [vmem:[%s7619_s2 + $0x119] sm:$0x3]  ;;  %v69_v37 = vld [vmem:[%s7619_s2 + $0x121] sm:$0xff] }
  0x2b   :  { %515 = vst.msk [vmem:[#allocation3 + $0xf8] sm:$0xff] %vm145_vm0, %v7626_v6  ;;  %516 = vst.msk [vmem:[#allocation3 + $0x100] sm:$0xff] %vm145_vm0, %v7626_v6  ;;  %v70_v38 = vld [vmem:[%s7619_s2 + $0x129] sm:$0xff]  ;;  %v71_v39 = vld [vmem:[%s7619_s2 + $0x131] sm:$0xff] }
  0x2c   :  { %517 = vst.msk [vmem:[#allocation3 + $0x108] sm:$0xff] %vm145_vm0, %v7626_v6  ;;  %518 = vst.msk [vmem:[#allocation3 + $0x110] sm:$0xff] %vm145_vm0, %v7626_v6  ;;  %v72_v40 = vld [vmem:[%s7619_s2 + $0x139] sm:$0x3]  ;;  %v73_v41 = vld [vmem:[%s7619_s2 + $0x141] sm:$0xff] }
  0x2d   :  { %519 = vst.msk [vmem:[#allocation3 + $0x118] sm:$0xff] %vm145_vm0, %v7626_v6  ;;  %520 = vst.msk [vmem:[#allocation3 + $0x120] sm:$0xff] %vm145_vm0, %v7626_v6  ;;  %v74_v42 = vld [vmem:[%s7619_s2 + $0x149] sm:$0xff]  ;;  %v75_v43 = vld [vmem:[%s7619_s2 + $0x151] sm:$0xff] }
  0x2e   :  { %521 = vst.msk [vmem:[#allocation3 + $0x128] sm:$0xff] %vm145_vm0, %v7626_v6  ;;  %522 = vst.msk [vmem:[#allocation3 + $0x130] sm:$0xff] %vm145_vm0, %v7626_v6  ;;  %v76_v44 = vld [vmem:[%s7619_s2 + $0x159] sm:$0x3]  ;;  %v77_v45 = vld [vmem:[%s7619_s2 + $0x161] sm:$0xff] }
  0x2f   :  { %523 = vst.msk [vmem:[#allocation3 + $0x138] sm:$0xff] %vm145_vm0, %v7626_v6  ;;  %524 = vst.msk [vmem:[#allocation3 + $0x140] sm:$0xff] %vm145_vm0, %v7626_v6  ;;  %v78_v46 = vld [vmem:[%s7619_s2 + $0x169] sm:$0xff]  ;;  %v79_v47 = vld [vmem:[%s7619_s2 + $0x171] sm:$0xff] }
  0x30   :  { %525 = vst.msk [vmem:[#allocation3 + $0x148] sm:$0xff] %vm145_vm0, %v7626_v6  ;;  %526 = vst.msk [vmem:[#allocation3 + $0x150] sm:$0xff] %vm145_vm0, %v7626_v6  ;;  %v80_v48 = vld [vmem:[%s7619_s2 + $0x179] sm:$0x3]  ;;  %v81_v49 = vld [vmem:[%s7619_s2 + $0x181] sm:$0xff] }
  0x31   :  { %527 = vst.msk [vmem:[#allocation3 + $0x158] sm:$0xff] %vm145_vm0, %v7626_v6  ;;  %528 = vst.msk [vmem:[#allocation3 + $0x160] sm:$0xff] %vm145_vm0, %v7626_v6  ;;  %v82_v50 = vld [vmem:[%s7619_s2 + $0x189] sm:$0xff]  ;;  %v83_v51 = vld [vmem:[%s7619_s2 + $0x191] sm:$0xff] }
  0x32   :  { %529 = vst.msk [vmem:[#allocation3 + $0x168] sm:$0xff] %vm145_vm0, %v7626_v6  ;;  %530 = vst.msk [vmem:[#allocation3 + $0x170] sm:$0xff] %vm145_vm0, %v7626_v6  ;;  %v84_v52 = vld [vmem:[%s7619_s2 + $0x199] sm:$0x3]  ;;  %v85_v53 = vld [vmem:[%s7619_s2 + $0x1a1] sm:$0xff] }
  0x33   :  { %531 = vst.msk [vmem:[#allocation3 + $0x178] sm:$0xff] %vm145_vm0, %v7626_v6  ;;  %532 = vst.msk [vmem:[#allocation3 + $0x180] sm:$0xff] %vm145_vm0, %v7626_v6  ;;  %v86_v54 = vld [vmem:[%s7619_s2 + $0x1a9] sm:$0xff]  ;;  %v87_v55 = vld [vmem:[%s7619_s2 + $0x1b1] sm:$0xff] }
  0x34   :  { %533 = vst.msk [vmem:[#allocation3 + $0x188] sm:$0xff] %vm145_vm0, %v7626_v6  ;;  %534 = vst.msk [vmem:[#allocation3 + $0x190] sm:$0xff] %vm145_vm0, %v7626_v6  ;;  %v88_v56 = vld [vmem:[%s7619_s2 + $0x1b9] sm:$0x3]  ;;  %v89_v57 = vld [vmem:[%s7619_s2 + $0x1c1] sm:$0xff] }
  0x35   :  { %535 = vst.msk [vmem:[#allocation3 + $0x198] sm:$0xff] %vm145_vm0, %v7626_v6  ;;  %536 = vst.msk [vmem:[#allocation3 + $0x1a0] sm:$0xff] %vm145_vm0, %v7626_v6  ;;  %v90_v58 = vld [vmem:[%s7619_s2 + $0x1c9] sm:$0xff]  ;;  %v91_v59 = vld [vmem:[%s7619_s2 + $0x1d1] sm:$0xff] }
  0x36   :  { %537 = vst.msk [vmem:[#allocation3 + $0x1a8] sm:$0xff] %vm145_vm0, %v7626_v6  ;;  %538 = vst.msk [vmem:[#allocation3 + $0x1b0] sm:$0xff] %vm145_vm0, %v7626_v6  ;;  %v92_v60 = vld [vmem:[%s7619_s2 + $0x1d9] sm:$0x3]  ;;  %v93_v61 = vld [vmem:[%s7619_s2 + $0x1e1] sm:$0xff] }
  0x37   :  { %539 = vst.msk [vmem:[#allocation3 + $0x1b8] sm:$0xff] %vm145_vm0, %v7626_v6  ;;  %540 = vst.msk [vmem:[#allocation3 + $0x1c0] sm:$0xff] %vm145_vm0, %v7626_v6  ;;  %v94_v62 = vld [vmem:[%s7619_s2 + $0x1e9] sm:$0xff]  ;;  %v95_v63 = vld [vmem:[%s7619_s2 + $0x1f1] sm:$0xff] }
  0x38   :  { %541 = vst.msk [vmem:[#allocation3 + $0x1c8] sm:$0xff] %vm145_vm0, %v7626_v6  ;;  %542 = vst.msk [vmem:[#allocation3 + $0x1d0] sm:$0xff] %vm145_vm0, %v7626_v6  ;;  %v96_v0 = vld [vmem:[%s7619_s2 + $0x1f9] sm:$0x3]  ;;  %v97_v1 = vld [vmem:[%s7619_s2 + $0x201] sm:$0xff] }
  0x39   :  { %543 = vst.msk [vmem:[#allocation3 + $0x1d8] sm:$0xff] %vm145_vm0, %v7626_v6  ;;  %544 = vst.msk [vmem:[#allocation3 + $0x1e0] sm:$0xff] %vm145_vm0, %v7626_v6  ;;  %v98_v2 = vld [vmem:[%s7619_s2 + $0x209] sm:$0xff] }
  0x3a   :  { %545 = vst.msk [vmem:[#allocation3 + $0x1e8] sm:$0xff] %vm145_vm0, %v7626_v6  ;;  %546 = vst.msk [vmem:[#allocation3 + $0x1f0] sm:$0xff] %vm145_vm0, %v7626_v6 }
  0x3b   :  { %547 = vst.msk [vmem:[#allocation3 + $0x1f8] sm:$0xff] %vm145_vm0, %v7626_v6  ;;  %548 = vst.msk [vmem:[#allocation3 + $0x200] sm:$0xff] %vm145_vm0, %v7626_v6 }
  0x3c   :  { %549 = vst.msk [vmem:[#allocation3 + $0x208] sm:$0xff] %vm145_vm0, %v7626_v6  ;;  %550 = vst.msk [vmem:[#allocation3 + $0x210] sm:$0xff] %vm145_vm0, %v7626_v6 }
  0x3d   :  { %551 = vst.msk [vmem:[#allocation3 + $0x218] sm:$0xff] %vm145_vm0, %v7626_v6  ;;  %552 = vst.msk [vmem:[#allocation3 + $0x220] sm:$0xff] %vm145_vm0, %v7626_v6 }
  0x3e   :  { %553 = vst.msk [vmem:[#allocation3 + $0x228] sm:$0xff] %vm145_vm0, %v7626_v6  ;;  %554 = vst.msk [vmem:[#allocation3 + $0x230] sm:$0xff] %vm145_vm0, %v7626_v6 }
  0x3f   :  { %555 = vst.msk [vmem:[#allocation3 + $0x238] sm:$0xff] %vm145_vm0, %v7626_v6  ;;  %556 = vst.msk [vmem:[#allocation3 + $0x240] sm:$0xff] %vm145_vm0, %v7626_v6 }
  0x40   :  { %557 = vst.msk [vmem:[#allocation3 + $0x248] sm:$0xff] %vm145_vm0, %v7626_v6  ;;  %558 = vst.msk [vmem:[#allocation3 + $0x250] sm:$0xff] %vm145_vm0, %v7626_v6 }
  0x41   :  { %559 = vst.msk [vmem:[#allocation3 + $0x258] sm:$0xff] %vm145_vm0, %v7626_v6  ;;  %560 = vst.msk [vmem:[#allocation3 + $0x260] sm:$0xff] %vm145_vm0, %v7626_v6 }
  0x42   :  { %561 = vst.msk [vmem:[#allocation3 + $0x268] sm:$0xff] %vm145_vm0, %v7626_v6  ;;  %562 = vst.msk [vmem:[#allocation3 + $0x270] sm:$0xff] %vm145_vm0, %v7626_v6 }
  0x43   :  { %563 = vst.msk [vmem:[#allocation3 + $0x278] sm:$0xff] %vm145_vm0, %v7626_v6  ;;  %564 = vst.msk [vmem:[#allocation3 + $0x280] sm:$0xff] %vm145_vm0, %v7626_v6 }
  0x44   :  { %565 = vst.msk [vmem:[#allocation3 + $0x288] sm:$0xff] %vm145_vm0, %v7626_v6  ;;  %566 = vst.msk [vmem:[#allocation3 + $0x290] sm:$0xff] %vm145_vm0, %v7626_v6 }
  0x45   :  { %567 = vst.msk [vmem:[#allocation3 + $0x298] sm:$0xff] %vm145_vm0, %v7626_v6  ;;  %568 = vst.msk [vmem:[#allocation3 + $0x2a0] sm:$0xff] %vm145_vm0, %v7626_v6 }
  0x46   :  { %569 = vst.msk [vmem:[#allocation3 + $0x2a8] sm:$0xff] %vm145_vm0, %v7626_v6  ;;  %570 = vst.msk [vmem:[#allocation3 + $0x2b0] sm:$0xff] %vm145_vm0, %v7626_v6 }
  0x47   :  { %571 = vst.msk [vmem:[#allocation3 + $0x2b8] sm:$0xff] %vm145_vm0, %v7626_v6  ;;  %572 = vst.msk [vmem:[#allocation3 + $0x2c0] sm:$0xff] %vm145_vm0, %v7626_v6 }
  0x48   :  { %573 = vst.msk [vmem:[#allocation3 + $0x2c8] sm:$0xff] %vm145_vm0, %v7626_v6  ;;  %574 = vst.msk [vmem:[#allocation3 + $0x2d0] sm:$0xff] %vm145_vm0, %v7626_v6 }
  0x49   :  { %575 = vst.msk [vmem:[#allocation3 + $0x2d8] sm:$0xff] %vm145_vm0, %v7626_v6  ;;  %576 = vst.msk [vmem:[#allocation3 + $0x2e0] sm:$0xff] %vm145_vm0, %v7626_v6 }
  0x4a   :  { %577 = vst.msk [vmem:[#allocation3 + $0x2e8] sm:$0xff] %vm145_vm0, %v7626_v6  ;;  %578 = vst.msk [vmem:[#allocation3 + $0x2f0] sm:$0xff] %vm145_vm0, %v7626_v6 }
  0x4b   :  { %579 = vst.msk [vmem:[#allocation3 + $0x2f8] sm:$0xff] %vm145_vm0, %v7626_v6  ;;  %580 = vst.msk [vmem:[#allocation3 + $0x300] sm:$0xff] %vm145_vm0, %v7626_v6 }
  0x4c   :  { %581 = vst.msk [vmem:[#allocation3 + $0x308] sm:$0xff] %vm145_vm0, %v7626_v6  ;;  %582 = vst.msk [vmem:[#allocation3 + $0x310] sm:$0xff] %vm145_vm0, %v7626_v6 }
  0x4d   :  { %583 = vst.msk [vmem:[#allocation3 + $0x318] sm:$0xff] %vm145_vm0, %v7626_v6  ;;  %584 = vst.msk [vmem:[#allocation3 + $0x320] sm:$0xff] %vm145_vm0, %v7626_v6 }
  0x4e   :  { %585 = vst.msk [vmem:[#allocation3 + $0x328] sm:$0xff] %vm145_vm0, %v7626_v6  ;;  %586 = vst.msk [vmem:[#allocation3 + $0x330] sm:$0xff] %vm145_vm0, %v7626_v6 }
  0x4f   :  { %587 = vst.msk [vmem:[#allocation3 + $0x338] sm:$0xff] %vm145_vm0, %v7626_v6  ;;  %151 = vst.msk [vmem:[#allocation2 + $0x20] sm:$0xff] %vm145_vm0, %v4567_v4  ;;  %v100_v4 = vld [vmem:[%s7619_s2 + $0x219] sm:$0x3] }
  0x50   :  { %150 = vst.msk [vmem:[#allocation2 + $0x18] sm:$0x3] %vm149_vm1, %v4562_v3  ;;  %154 = vst.msk [vmem:[#allocation2 + $0x38] sm:$0x3] %vm149_vm1, %v40_v8  ;;  %v99_v3 = vld [vmem:[%s7619_s2 + $0x211] sm:$0xff] }
  0x51   :  { %152 = vst.msk [vmem:[#allocation2 + $0x28] sm:$0xff] %vm145_vm0, %v4572_v5  ;;  %153 = vst.msk [vmem:[#allocation2 + $0x30] sm:$0xff] %vm145_vm0, %v39_v7  ;;  %v101_v5 = vld [vmem:[%s7619_s2 + $0x221] sm:$0xff]  ;;  %v102_v7 = vld [vmem:[%s7619_s2 + $0x229] sm:$0xff] }
  0x52   :  { %155 = vst.msk [vmem:[#allocation2 + $0x40] sm:$0xff] %vm145_vm0, %v41_v9  ;;  %156 = vst.msk [vmem:[#allocation2 + $0x48] sm:$0xff] %vm145_vm0, %v42_v10  ;;  %v103_v8 = vld [vmem:[%s7619_s2 + $0x231] sm:$0xff]  ;;  %v104_v9 = vld [vmem:[%s7619_s2 + $0x239] sm:$0x3] }
  0x53   :  { %157 = vst.msk [vmem:[#allocation2 + $0x50] sm:$0xff] %vm145_vm0, %v43_v11  ;;  %159 = vst.msk [vmem:[#allocation2 + $0x60] sm:$0xff] %vm145_vm0, %v45_v13  ;;  %v105_v10 = vld [vmem:[%s7619_s2 + $0x241] sm:$0xff]  ;;  %v106_v11 = vld [vmem:[%s7619_s2 + $0x249] sm:$0xff] }
  0x54   :  { %158 = vst.msk [vmem:[#allocation2 + $0x58] sm:$0x3] %vm149_vm1, %v44_v12  ;;  %162 = vst.msk [vmem:[#allocation2 + $0x78] sm:$0x3] %vm149_vm1, %v48_v16  ;;  %v107_v12 = vld [vmem:[%s7619_s2 + $0x251] sm:$0xff] }
  0x55   :  { %160 = vst.msk [vmem:[#allocation2 + $0x68] sm:$0xff] %vm145_vm0, %v46_v14  ;;  %161 = vst.msk [vmem:[#allocation2 + $0x70] sm:$0xff] %vm145_vm0, %v47_v15  ;;  %v108_v13 = vld [vmem:[%s7619_s2 + $0x259] sm:$0x3]  ;;  %v109_v14 = vld [vmem:[%s7619_s2 + $0x261] sm:$0xff] }
  0x56   :  { %163 = vst.msk [vmem:[#allocation2 + $0x80] sm:$0xff] %vm145_vm0, %v49_v17  ;;  %164 = vst.msk [vmem:[#allocation2 + $0x88] sm:$0xff] %vm145_vm0, %v50_v18  ;;  %v110_v15 = vld [vmem:[%s7619_s2 + $0x269] sm:$0xff]  ;;  %v111_v16 = vld [vmem:[%s7619_s2 + $0x271] sm:$0xff] }
  0x57   :  { %165 = vst.msk [vmem:[#allocation2 + $0x90] sm:$0xff] %vm145_vm0, %v51_v19  ;;  %167 = vst.msk [vmem:[#allocation2 + $0xa0] sm:$0xff] %vm145_vm0, %v53_v21  ;;  %v112_v17 = vld [vmem:[%s7619_s2 + $0x279] sm:$0x3]  ;;  %v113_v18 = vld [vmem:[%s7619_s2 + $0x281] sm:$0xff] }
  0x58   :  { %166 = vst.msk [vmem:[#allocation2 + $0x98] sm:$0x3] %vm149_vm1, %v52_v20  ;;  %170 = vst.msk [vmem:[#allocation2 + $0xb8] sm:$0x3] %vm149_vm1, %v56_v24  ;;  %v114_v19 = vld [vmem:[%s7619_s2 + $0x289] sm:$0xff]  ;;  %v115_v20 = vld [vmem:[%s7619_s2 + $0x291] sm:$0xff] }
  0x59   :  { %168 = vst.msk [vmem:[#allocation2 + $0xa8] sm:$0xff] %vm145_vm0, %v54_v22  ;;  %169 = vst.msk [vmem:[#allocation2 + $0xb0] sm:$0xff] %vm145_vm0, %v55_v23  ;;  %v116_v21 = vld [vmem:[%s7619_s2 + $0x299] sm:$0x3]  ;;  %v117_v22 = vld [vmem:[%s7619_s2 + $0x2a1] sm:$0xff] }
  0x5a   :  { %171 = vst.msk [vmem:[#allocation2 + $0xc0] sm:$0xff] %vm145_vm0, %v57_v25  ;;  %172 = vst.msk [vmem:[#allocation2 + $0xc8] sm:$0xff] %vm145_vm0, %v58_v26  ;;  %v118_v23 = vld [vmem:[%s7619_s2 + $0x2a9] sm:$0xff]  ;;  %v119_v24 = vld [vmem:[%s7619_s2 + $0x2b1] sm:$0xff] }
  0x5b   :  { %173 = vst.msk [vmem:[#allocation2 + $0xd0] sm:$0xff] %vm145_vm0, %v59_v27  ;;  %175 = vst.msk [vmem:[#allocation2 + $0xe0] sm:$0xff] %vm145_vm0, %v61_v29  ;;  %v120_v25 = vld [vmem:[%s7619_s2 + $0x2b9] sm:$0x3]  ;;  %v121_v26 = vld [vmem:[%s7619_s2 + $0x2c1] sm:$0xff] }
  0x5c   :  { %174 = vst.msk [vmem:[#allocation2 + $0xd8] sm:$0x3] %vm149_vm1, %v60_v28  ;;  %178 = vst.msk [vmem:[#allocation2 + $0xf8] sm:$0x3] %vm149_vm1, %v64_v32  ;;  %v122_v27 = vld [vmem:[%s7619_s2 + $0x2c9] sm:$0xff]  ;;  %v123_v28 = vld [vmem:[%s7619_s2 + $0x2d1] sm:$0xff] }
  0x5d   :  { %176 = vst.msk [vmem:[#allocation2 + $0xe8] sm:$0xff] %vm145_vm0, %v62_v30  ;;  %177 = vst.msk [vmem:[#allocation2 + $0xf0] sm:$0xff] %vm145_vm0, %v63_v31  ;;  %v124_v29 = vld [vmem:[%s7619_s2 + $0x2d9] sm:$0x3]  ;;  %v125_v30 = vld [vmem:[%s7619_s2 + $0x2e1] sm:$0xff] }
  0x5e   :  { %179 = vst.msk [vmem:[#allocation2 + $0x100] sm:$0xff] %vm145_vm0, %v65_v33  ;;  %180 = vst.msk [vmem:[#allocation2 + $0x108] sm:$0xff] %vm145_vm0, %v66_v34  ;;  %v126_v31 = vld [vmem:[%s7619_s2 + $0x2e9] sm:$0xff]  ;;  %v127_v32 = vld [vmem:[%s7619_s2 + $0x2f1] sm:$0xff] }
  0x5f   :  { %181 = vst.msk [vmem:[#allocation2 + $0x110] sm:$0xff] %vm145_vm0, %v67_v35  ;;  %183 = vst.msk [vmem:[#allocation2 + $0x120] sm:$0xff] %vm145_vm0, %v69_v37  ;;  %v128_v33 = vld [vmem:[%s7619_s2 + $0x2f9] sm:$0x3]  ;;  %v129_v34 = vld [vmem:[%s7619_s2 + $0x301] sm:$0xff] }
  0x60   :  { %182 = vst.msk [vmem:[#allocation2 + $0x118] sm:$0x3] %vm149_vm1, %v68_v36  ;;  %186 = vst.msk [vmem:[#allocation2 + $0x138] sm:$0x3] %vm149_vm1, %v72_v40  ;;  %v130_v35 = vld [vmem:[%s7619_s2 + $0x309] sm:$0xff]  ;;  %v131_v36 = vld [vmem:[%s7619_s2 + $0x311] sm:$0xff] }
  0x61   :  { %184 = vst.msk [vmem:[#allocation2 + $0x128] sm:$0xff] %vm145_vm0, %v70_v38  ;;  %185 = vst.msk [vmem:[#allocation2 + $0x130] sm:$0xff] %vm145_vm0, %v71_v39  ;;  %v132_v37 = vld [vmem:[%s7619_s2 + $0x319] sm:$0x3]  ;;  %v133_v38 = vld [vmem:[%s7619_s2 + $0x321] sm:$0xff] }
  0x62   :  { %187 = vst.msk [vmem:[#allocation2 + $0x140] sm:$0xff] %vm145_vm0, %v73_v41  ;;  %188 = vst.msk [vmem:[#allocation2 + $0x148] sm:$0xff] %vm145_vm0, %v74_v42  ;;  %v134_v39 = vld [vmem:[%s7619_s2 + $0x329] sm:$0xff]  ;;  %v135_v40 = vld [vmem:[%s7619_s2 + $0x331] sm:$0xff] }
  0x63   :  { %189 = vst.msk [vmem:[#allocation2 + $0x150] sm:$0xff] %vm145_vm0, %v75_v43  ;;  %191 = vst.msk [vmem:[#allocation2 + $0x160] sm:$0xff] %vm145_vm0, %v77_v45  ;;  %v136_v41 = vld [vmem:[%s7619_s2 + $0x339] sm:$0x3]  ;;  %v137_v42 = vld [vmem:[%s7619_s2 + $0x341] sm:$0xff] }
  0x64   :  { %190 = vst.msk [vmem:[#allocation2 + $0x158] sm:$0x3] %vm149_vm1, %v76_v44  ;;  %194 = vst.msk [vmem:[#allocation2 + $0x178] sm:$0x3] %vm149_vm1, %v80_v48  ;;  %v138_v43 = vld [vmem:[%s7619_s2 + $0x349] sm:$0xff]  ;;  %v139_v44 = vld [vmem:[%s7619_s2 + $0x351] sm:$0xff] }
  0x65   :  { %192 = vst.msk [vmem:[#allocation2 + $0x168] sm:$0xff] %vm145_vm0, %v78_v46  ;;  %193 = vst.msk [vmem:[#allocation2 + $0x170] sm:$0xff] %vm145_vm0, %v79_v47  ;;  %v140_v45 = vld [vmem:[%s7619_s2 + $0x359] sm:$0x3]  ;;  %v141_v46 = vld [vmem:[%s7619_s2 + $0x361] sm:$0xff] }
  0x66   :  { %195 = vst.msk [vmem:[#allocation2 + $0x180] sm:$0xff] %vm145_vm0, %v81_v49  ;;  %196 = vst.msk [vmem:[#allocation2 + $0x188] sm:$0xff] %vm145_vm0, %v82_v50  ;;  %v142_v47 = vld [vmem:[%s7619_s2 + $0x369] sm:$0xff]  ;;  %v143_v48 = vld [vmem:[%s7619_s2 + $0x371] sm:$0xff] }
  0x67   :  { %197 = vst.msk [vmem:[#allocation2 + $0x190] sm:$0xff] %vm145_vm0, %v83_v51  ;;  %199 = vst.msk [vmem:[#allocation2 + $0x1a0] sm:$0xff] %vm145_vm0, %v85_v53  ;;  %v144_v49 = vld [vmem:[%s7619_s2 + $0x379] sm:$0x3]  ;;  %v259_v50 = vld [vmem:[%s7619_s2 + $0x2] sm:$0xff] }
  0x68   :  { %198 = vst.msk [vmem:[#allocation2 + $0x198] sm:$0x3] %vm149_vm1, %v84_v52  ;;  %202 = vst.msk [vmem:[#allocation2 + $0x1b8] sm:$0x3] %vm149_vm1, %v88_v56  ;;  %v260_v51 = vld [vmem:[%s7619_s2 + $0xa] sm:$0xff]  ;;  %v261_v52 = vld [vmem:[%s7619_s2 + $0x12] sm:$0xff] }
  0x69   :  { %200 = vst.msk [vmem:[#allocation2 + $0x1a8] sm:$0xff] %vm145_vm0, %v86_v54  ;;  %201 = vst.msk [vmem:[#allocation2 + $0x1b0] sm:$0xff] %vm145_vm0, %v87_v55  ;;  %v262_v53 = vld [vmem:[%s7619_s2 + $0x1a] sm:$0x3]  ;;  %v263_v54 = vld [vmem:[%s7619_s2 + $0x22] sm:$0xff] }
  0x6a   :  { %203 = vst.msk [vmem:[#allocation2 + $0x1c0] sm:$0xff] %vm145_vm0, %v89_v57  ;;  %204 = vst.msk [vmem:[#allocation2 + $0x1c8] sm:$0xff] %vm145_vm0, %v90_v58  ;;  %v264_v55 = vld [vmem:[%s7619_s2 + $0x2a] sm:$0xff]  ;;  %v265_v56 = vld [vmem:[%s7619_s2 + $0x32] sm:$0xff] }
  0x6b   :  { %205 = vst.msk [vmem:[#allocation2 + $0x1d0] sm:$0xff] %vm145_vm0, %v91_v59  ;;  %207 = vst.msk [vmem:[#allocation2 + $0x1e0] sm:$0xff] %vm145_vm0, %v93_v61  ;;  %v266_v57 = vld [vmem:[%s7619_s2 + $0x3a] sm:$0x3]  ;;  %v267_v58 = vld [vmem:[%s7619_s2 + $0x42] sm:$0xff] }
  0x6c   :  { %206 = vst.msk [vmem:[#allocation2 + $0x1d8] sm:$0x3] %vm149_vm1, %v92_v60  ;;  %210 = vst.msk [vmem:[#allocation2 + $0x1f8] sm:$0x3] %vm149_vm1, %v96_v0  ;;  %v268_v59 = vld [vmem:[%s7619_s2 + $0x4a] sm:$0xff]  ;;  %v269_v60 = vld [vmem:[%s7619_s2 + $0x52] sm:$0xff] }
  0x6d   :  { %208 = vst.msk [vmem:[#allocation2 + $0x1e8] sm:$0xff] %vm145_vm0, %v94_v62  ;;  %209 = vst.msk [vmem:[#allocation2 + $0x1f0] sm:$0xff] %vm145_vm0, %v95_v63  ;;  %v270_v61 = vld [vmem:[%s7619_s2 + $0x5a] sm:$0x3]  ;;  %v271_v62 = vld [vmem:[%s7619_s2 + $0x62] sm:$0xff] }
  0x6e   :  { %211 = vst.msk [vmem:[#allocation2 + $0x200] sm:$0xff] %vm145_vm0, %v97_v1  ;;  %212 = vst.msk [vmem:[#allocation2 + $0x208] sm:$0xff] %vm145_vm0, %v98_v2  ;;  %v272_v63 = vld [vmem:[%s7619_s2 + $0x6a] sm:$0xff]  ;;  %v273_v0 = vld [vmem:[%s7619_s2 + $0x72] sm:$0xff] }
  0x6f   :  { %213 = vst.msk [vmem:[#allocation2 + $0x210] sm:$0xff] %vm145_vm0, %v99_v3  ;;  %215 = vst.msk [vmem:[#allocation2 + $0x220] sm:$0xff] %vm145_vm0, %v101_v5  ;;  %v274_v1 = vld [vmem:[%s7619_s2 + $0x7a] sm:$0x3]  ;;  %v275_v2 = vld [vmem:[%s7619_s2 + $0x82] sm:$0xff] }
  0x70   :  { %214 = vst.msk [vmem:[#allocation2 + $0x218] sm:$0x3] %vm149_vm1, %v100_v4  ;;  %218 = vst.msk [vmem:[#allocation2 + $0x238] sm:$0x3] %vm149_vm1, %v104_v9  ;;  %v276_v3 = vld [vmem:[%s7619_s2 + $0x8a] sm:$0xff]  ;;  %v277_v4 = vld [vmem:[%s7619_s2 + $0x92] sm:$0xff] }
  0x71   :  { %216 = vst.msk [vmem:[#allocation2 + $0x228] sm:$0xff] %vm145_vm0, %v102_v7  ;;  %217 = vst.msk [vmem:[#allocation2 + $0x230] sm:$0xff] %vm145_vm0, %v103_v8  ;;  %v278_v5 = vld [vmem:[%s7619_s2 + $0x9a] sm:$0x3]  ;;  %v279_v7 = vld [vmem:[%s7619_s2 + $0xa2] sm:$0xff] }
  0x72   :  { %219 = vst.msk [vmem:[#allocation2 + $0x240] sm:$0xff] %vm145_vm0, %v105_v10  ;;  %220 = vst.msk [vmem:[#allocation2 + $0x248] sm:$0xff] %vm145_vm0, %v106_v11  ;;  %v280_v8 = vld [vmem:[%s7619_s2 + $0xaa] sm:$0xff]  ;;  %v281_v9 = vld [vmem:[%s7619_s2 + $0xb2] sm:$0xff] }
  0x73   :  { %221 = vst.msk [vmem:[#allocation2 + $0x250] sm:$0xff] %vm145_vm0, %v107_v12  ;;  %223 = vst.msk [vmem:[#allocation2 + $0x260] sm:$0xff] %vm145_vm0, %v109_v14  ;;  %v282_v10 = vld [vmem:[%s7619_s2 + $0xba] sm:$0x3]  ;;  %v283_v11 = vld [vmem:[%s7619_s2 + $0xc2] sm:$0xff] }
  0x74   :  { %222 = vst.msk [vmem:[#allocation2 + $0x258] sm:$0x3] %vm149_vm1, %v108_v13  ;;  %226 = vst.msk [vmem:[#allocation2 + $0x278] sm:$0x3] %vm149_vm1, %v112_v17  ;;  %v284_v12 = vld [vmem:[%s7619_s2 + $0xca] sm:$0xff]  ;;  %v285_v13 = vld [vmem:[%s7619_s2 + $0xd2] sm:$0xff] }
  0x75   :  { %224 = vst.msk [vmem:[#allocation2 + $0x268] sm:$0xff] %vm145_vm0, %v110_v15  ;;  %225 = vst.msk [vmem:[#allocation2 + $0x270] sm:$0xff] %vm145_vm0, %v111_v16  ;;  %v286_v14 = vld [vmem:[%s7619_s2 + $0xda] sm:$0x3]  ;;  %v287_v15 = vld [vmem:[%s7619_s2 + $0xe2] sm:$0xff] }
  0x76   :  { %227 = vst.msk [vmem:[#allocation2 + $0x280] sm:$0xff] %vm145_vm0, %v113_v18  ;;  %228 = vst.msk [vmem:[#allocation2 + $0x288] sm:$0xff] %vm145_vm0, %v114_v19  ;;  %v288_v16 = vld [vmem:[%s7619_s2 + $0xea] sm:$0xff]  ;;  %v289_v17 = vld [vmem:[%s7619_s2 + $0xf2] sm:$0xff] }
  0x77   :  { %229 = vst.msk [vmem:[#allocation2 + $0x290] sm:$0xff] %vm145_vm0, %v115_v20  ;;  %231 = vst.msk [vmem:[#allocation2 + $0x2a0] sm:$0xff] %vm145_vm0, %v117_v22  ;;  %v290_v18 = vld [vmem:[%s7619_s2 + $0xfa] sm:$0x3]  ;;  %v291_v19 = vld [vmem:[%s7619_s2 + $0x102] sm:$0xff] }
  0x78   :  { %230 = vst.msk [vmem:[#allocation2 + $0x298] sm:$0x3] %vm149_vm1, %v116_v21  ;;  %234 = vst.msk [vmem:[#allocation2 + $0x2b8] sm:$0x3] %vm149_vm1, %v120_v25  ;;  %v292_v20 = vld [vmem:[%s7619_s2 + $0x10a] sm:$0xff]  ;;  %v293_v21 = vld [vmem:[%s7619_s2 + $0x112] sm:$0xff] }
  0x79   :  { %232 = vst.msk [vmem:[#allocation2 + $0x2a8] sm:$0xff] %vm145_vm0, %v118_v23  ;;  %233 = vst.msk [vmem:[#allocation2 + $0x2b0] sm:$0xff] %vm145_vm0, %v119_v24  ;;  %v294_v22 = vld [vmem:[%s7619_s2 + $0x11a] sm:$0x3]  ;;  %v295_v23 = vld [vmem:[%s7619_s2 + $0x122] sm:$0xff] }
  0x7a   :  { %235 = vst.msk [vmem:[#allocation2 + $0x2c0] sm:$0xff] %vm145_vm0, %v121_v26  ;;  %236 = vst.msk [vmem:[#allocation2 + $0x2c8] sm:$0xff] %vm145_vm0, %v122_v27  ;;  %v296_v24 = vld [vmem:[%s7619_s2 + $0x12a] sm:$0xff]  ;;  %v297_v25 = vld [vmem:[%s7619_s2 + $0x132] sm:$0xff] }
  0x7b   :  { %237 = vst.msk [vmem:[#allocation2 + $0x2d0] sm:$0xff] %vm145_vm0, %v123_v28  ;;  %239 = vst.msk [vmem:[#allocation2 + $0x2e0] sm:$0xff] %vm145_vm0, %v125_v30  ;;  %v298_v26 = vld [vmem:[%s7619_s2 + $0x13a] sm:$0x3]  ;;  %v299_v27 = vld [vmem:[%s7619_s2 + $0x142] sm:$0xff] }
  0x7c   :  { %238 = vst.msk [vmem:[#allocation2 + $0x2d8] sm:$0x3] %vm149_vm1, %v124_v29  ;;  %242 = vst.msk [vmem:[#allocation2 + $0x2f8] sm:$0x3] %vm149_vm1, %v128_v33  ;;  %v300_v28 = vld [vmem:[%s7619_s2 + $0x14a] sm:$0xff]  ;;  %v301_v29 = vld [vmem:[%s7619_s2 + $0x152] sm:$0xff] }
  0x7d   :  { %240 = vst.msk [vmem:[#allocation2 + $0x2e8] sm:$0xff] %vm145_vm0, %v126_v31  ;;  %241 = vst.msk [vmem:[#allocation2 + $0x2f0] sm:$0xff] %vm145_vm0, %v127_v32  ;;  %v302_v30 = vld [vmem:[%s7619_s2 + $0x15a] sm:$0x3]  ;;  %v303_v31 = vld [vmem:[%s7619_s2 + $0x162] sm:$0xff] }
  0x7e   :  { %243 = vst.msk [vmem:[#allocation2 + $0x300] sm:$0xff] %vm145_vm0, %v129_v34  ;;  %244 = vst.msk [vmem:[#allocation2 + $0x308] sm:$0xff] %vm145_vm0, %v130_v35  ;;  %v304_v32 = vld [vmem:[%s7619_s2 + $0x16a] sm:$0xff]  ;;  %v305_v33 = vld [vmem:[%s7619_s2 + $0x172] sm:$0xff] }
  0x7f   :  { %245 = vst.msk [vmem:[#allocation2 + $0x310] sm:$0xff] %vm145_vm0, %v131_v36  ;;  %247 = vst.msk [vmem:[#allocation2 + $0x320] sm:$0xff] %vm145_vm0, %v133_v38  ;;  %v306_v34 = vld [vmem:[%s7619_s2 + $0x17a] sm:$0x3]  ;;  %v307_v35 = vld [vmem:[%s7619_s2 + $0x182] sm:$0xff] }
  0x80   :  { %246 = vst.msk [vmem:[#allocation2 + $0x318] sm:$0x3] %vm149_vm1, %v132_v37  ;;  %250 = vst.msk [vmem:[#allocation2 + $0x338] sm:$0x3] %vm149_vm1, %v136_v41  ;;  %v308_v36 = vld [vmem:[%s7619_s2 + $0x18a] sm:$0xff]  ;;  %v309_v37 = vld [vmem:[%s7619_s2 + $0x192] sm:$0xff] }
  0x81   :  { %248 = vst.msk [vmem:[#allocation2 + $0x328] sm:$0xff] %vm145_vm0, %v134_v39  ;;  %249 = vst.msk [vmem:[#allocation2 + $0x330] sm:$0xff] %vm145_vm0, %v135_v40  ;;  %v310_v38 = vld [vmem:[%s7619_s2 + $0x19a] sm:$0x3]  ;;  %v311_v39 = vld [vmem:[%s7619_s2 + $0x1a2] sm:$0xff] }
  0x82   :  { %251 = vst.msk [vmem:[#allocation2 + $0x340] sm:$0xff] %vm145_vm0, %v137_v42  ;;  %252 = vst.msk [vmem:[#allocation2 + $0x348] sm:$0xff] %vm145_vm0, %v138_v43  ;;  %v312_v40 = vld [vmem:[%s7619_s2 + $0x1aa] sm:$0xff]  ;;  %v313_v41 = vld [vmem:[%s7619_s2 + $0x1b2] sm:$0xff] }
  0x83   :  { %253 = vst.msk [vmem:[#allocation2 + $0x350] sm:$0xff] %vm145_vm0, %v139_v44  ;;  %255 = vst.msk [vmem:[#allocation2 + $0x360] sm:$0xff] %vm145_vm0, %v141_v46  ;;  %v314_v42 = vld [vmem:[%s7619_s2 + $0x1ba] sm:$0x3]  ;;  %v315_v43 = vld [vmem:[%s7619_s2 + $0x1c2] sm:$0xff] }
  0x84   :  { %254 = vst.msk [vmem:[#allocation2 + $0x358] sm:$0x3] %vm149_vm1, %v140_v45  ;;  %258 = vst.msk [vmem:[#allocation2 + $0x378] sm:$0x3] %vm149_vm1, %v144_v49  ;;  %v316_v44 = vld [vmem:[%s7619_s2 + $0x1ca] sm:$0xff]  ;;  %v317_v45 = vld [vmem:[%s7619_s2 + $0x1d2] sm:$0xff] }
  0x85   :  { %256 = vst.msk [vmem:[#allocation2 + $0x368] sm:$0xff] %vm145_vm0, %v142_v47  ;;  %257 = vst.msk [vmem:[#allocation2 + $0x370] sm:$0xff] %vm145_vm0, %v143_v48  ;;  %v318_v46 = vld [vmem:[%s7619_s2 + $0x1da] sm:$0x3]  ;;  %v319_v47 = vld [vmem:[%s7619_s2 + $0x1e2] sm:$0xff] }
  0x86   :  { %372 = vst.msk [vmem:[#allocation2 + $0x380] sm:$0xff] %vm145_vm0, %v259_v50  ;;  %373 = vst.msk [vmem:[#allocation2 + $0x388] sm:$0xff] %vm145_vm0, %v260_v51  ;;  %v320_v48 = vld [vmem:[%s7619_s2 + $0x1ea] sm:$0xff]  ;;  %v321_v49 = vld [vmem:[%s7619_s2 + $0x1f2] sm:$0xff] }
  0x87   :  { %374 = vst.msk [vmem:[#allocation2 + $0x390] sm:$0xff] %vm145_vm0, %v261_v52  ;;  %376 = vst.msk [vmem:[#allocation2 + $0x3a0] sm:$0xff] %vm145_vm0, %v263_v54  ;;  %v322_v50 = vld [vmem:[%s7619_s2 + $0x1fa] sm:$0x3]  ;;  %v323_v51 = vld [vmem:[%s7619_s2 + $0x202] sm:$0xff] }
  0x88   :  { %375 = vst.msk [vmem:[#allocation2 + $0x398] sm:$0x3] %vm149_vm1, %v262_v53  ;;  %379 = vst.msk [vmem:[#allocation2 + $0x3b8] sm:$0x3] %vm149_vm1, %v266_v57  ;;  %v324_v52 = vld [vmem:[%s7619_s2 + $0x20a] sm:$0xff]  ;;  %v325_v53 = vld [vmem:[%s7619_s2 + $0x212] sm:$0xff] }
  0x89   :  { %377 = vst.msk [vmem:[#allocation2 + $0x3a8] sm:$0xff] %vm145_vm0, %v264_v55  ;;  %378 = vst.msk [vmem:[#allocation2 + $0x3b0] sm:$0xff] %vm145_vm0, %v265_v56  ;;  %v326_v54 = vld [vmem:[%s7619_s2 + $0x21a] sm:$0x3]  ;;  %v327_v55 = vld [vmem:[%s7619_s2 + $0x222] sm:$0xff] }
  0x8a   :  { %380 = vst.msk [vmem:[#allocation2 + $0x3c0] sm:$0xff] %vm145_vm0, %v267_v58  ;;  %381 = vst.msk [vmem:[#allocation2 + $0x3c8] sm:$0xff] %vm145_vm0, %v268_v59  ;;  %v328_v56 = vld [vmem:[%s7619_s2 + $0x22a] sm:$0xff]  ;;  %v329_v57 = vld [vmem:[%s7619_s2 + $0x232] sm:$0xff] }
  0x8b   :  { %382 = vst.msk [vmem:[#allocation2 + $0x3d0] sm:$0xff] %vm145_vm0, %v269_v60  ;;  %384 = vst.msk [vmem:[#allocation2 + $0x3e0] sm:$0xff] %vm145_vm0, %v271_v62  ;;  %v330_v58 = vld [vmem:[%s7619_s2 + $0x23a] sm:$0x3]  ;;  %v331_v59 = vld [vmem:[%s7619_s2 + $0x242] sm:$0xff] }
  0x8c   :  { %383 = vst.msk [vmem:[#allocation2 + $0x3d8] sm:$0x3] %vm149_vm1, %v270_v61  ;;  %387 = vst.msk [vmem:[#allocation2 + $0x3f8] sm:$0x3] %vm149_vm1, %v274_v1  ;;  %v332_v60 = vld [vmem:[%s7619_s2 + $0x24a] sm:$0xff]  ;;  %v333_v61 = vld [vmem:[%s7619_s2 + $0x252] sm:$0xff] }
  0x8d   :  { %385 = vst.msk [vmem:[#allocation2 + $0x3e8] sm:$0xff] %vm145_vm0, %v272_v63  ;;  %386 = vst.msk [vmem:[#allocation2 + $0x3f0] sm:$0xff] %vm145_vm0, %v273_v0  ;;  %v334_v62 = vld [vmem:[%s7619_s2 + $0x25a] sm:$0x3]  ;;  %v335_v63 = vld [vmem:[%s7619_s2 + $0x262] sm:$0xff] }
  0x8e   :  { %388 = vst.msk [vmem:[#allocation2 + $0x400] sm:$0xff] %vm145_vm0, %v275_v2  ;;  %389 = vst.msk [vmem:[#allocation2 + $0x408] sm:$0xff] %vm145_vm0, %v276_v3  ;;  %v336_v0 = vld [vmem:[%s7619_s2 + $0x26a] sm:$0xff]  ;;  %v337_v1 = vld [vmem:[%s7619_s2 + $0x272] sm:$0xff] }
  0x8f   :  { %390 = vst.msk [vmem:[#allocation2 + $0x410] sm:$0xff] %vm145_vm0, %v277_v4  ;;  %392 = vst.msk [vmem:[#allocation2 + $0x420] sm:$0xff] %vm145_vm0, %v279_v7  ;;  %v338_v2 = vld [vmem:[%s7619_s2 + $0x27a] sm:$0x3]  ;;  %v339_v3 = vld [vmem:[%s7619_s2 + $0x282] sm:$0xff] }
  0x90   :  { %391 = vst.msk [vmem:[#allocation2 + $0x418] sm:$0x3] %vm149_vm1, %v278_v5  ;;  %395 = vst.msk [vmem:[#allocation2 + $0x438] sm:$0x3] %vm149_vm1, %v282_v10  ;;  %v340_v4 = vld [vmem:[%s7619_s2 + $0x28a] sm:$0xff]  ;;  %v341_v5 = vld [vmem:[%s7619_s2 + $0x292] sm:$0xff] }
  0x91   :  { %393 = vst.msk [vmem:[#allocation2 + $0x428] sm:$0xff] %vm145_vm0, %v280_v8  ;;  %394 = vst.msk [vmem:[#allocation2 + $0x430] sm:$0xff] %vm145_vm0, %v281_v9  ;;  %v342_v7 = vld [vmem:[%s7619_s2 + $0x29a] sm:$0x3]  ;;  %v343_v8 = vld [vmem:[%s7619_s2 + $0x2a2] sm:$0xff] }
  0x92   :  { %396 = vst.msk [vmem:[#allocation2 + $0x440] sm:$0xff] %vm145_vm0, %v283_v11  ;;  %397 = vst.msk [vmem:[#allocation2 + $0x448] sm:$0xff] %vm145_vm0, %v284_v12  ;;  %v344_v9 = vld [vmem:[%s7619_s2 + $0x2aa] sm:$0xff]  ;;  %v345_v10 = vld [vmem:[%s7619_s2 + $0x2b2] sm:$0xff] }
  0x93   :  { %398 = vst.msk [vmem:[#allocation2 + $0x450] sm:$0xff] %vm145_vm0, %v285_v13  ;;  %400 = vst.msk [vmem:[#allocation2 + $0x460] sm:$0xff] %vm145_vm0, %v287_v15  ;;  %v346_v11 = vld [vmem:[%s7619_s2 + $0x2ba] sm:$0x3]  ;;  %v347_v12 = vld [vmem:[%s7619_s2 + $0x2c2] sm:$0xff] }
  0x94   :  { %399 = vst.msk [vmem:[#allocation2 + $0x458] sm:$0x3] %vm149_vm1, %v286_v14  ;;  %403 = vst.msk [vmem:[#allocation2 + $0x478] sm:$0x3] %vm149_vm1, %v290_v18  ;;  %v348_v13 = vld [vmem:[%s7619_s2 + $0x2ca] sm:$0xff]  ;;  %v349_v14 = vld [vmem:[%s7619_s2 + $0x2d2] sm:$0xff] }
  0x95   :  { %401 = vst.msk [vmem:[#allocation2 + $0x468] sm:$0xff] %vm145_vm0, %v288_v16  ;;  %402 = vst.msk [vmem:[#allocation2 + $0x470] sm:$0xff] %vm145_vm0, %v289_v17  ;;  %v350_v15 = vld [vmem:[%s7619_s2 + $0x2da] sm:$0x3]  ;;  %v351_v16 = vld [vmem:[%s7619_s2 + $0x2e2] sm:$0xff] }
  0x96   :  { %404 = vst.msk [vmem:[#allocation2 + $0x480] sm:$0xff] %vm145_vm0, %v291_v19  ;;  %405 = vst.msk [vmem:[#allocation2 + $0x488] sm:$0xff] %vm145_vm0, %v292_v20  ;;  %v352_v17 = vld [vmem:[%s7619_s2 + $0x2ea] sm:$0xff]  ;;  %v353_v18 = vld [vmem:[%s7619_s2 + $0x2f2] sm:$0xff] }
  0x97   :  { %406 = vst.msk [vmem:[#allocation2 + $0x490] sm:$0xff] %vm145_vm0, %v293_v21  ;;  %408 = vst.msk [vmem:[#allocation2 + $0x4a0] sm:$0xff] %vm145_vm0, %v295_v23  ;;  %v354_v19 = vld [vmem:[%s7619_s2 + $0x2fa] sm:$0x3]  ;;  %v355_v20 = vld [vmem:[%s7619_s2 + $0x302] sm:$0xff] }
  0x98   :  { %407 = vst.msk [vmem:[#allocation2 + $0x498] sm:$0x3] %vm149_vm1, %v294_v22  ;;  %411 = vst.msk [vmem:[#allocation2 + $0x4b8] sm:$0x3] %vm149_vm1, %v298_v26  ;;  %v356_v21 = vld [vmem:[%s7619_s2 + $0x30a] sm:$0xff]  ;;  %v357_v22 = vld [vmem:[%s7619_s2 + $0x312] sm:$0xff] }
  0x99   :  { %409 = vst.msk [vmem:[#allocation2 + $0x4a8] sm:$0xff] %vm145_vm0, %v296_v24  ;;  %410 = vst.msk [vmem:[#allocation2 + $0x4b0] sm:$0xff] %vm145_vm0, %v297_v25  ;;  %v358_v23 = vld [vmem:[%s7619_s2 + $0x31a] sm:$0x3]  ;;  %v359_v24 = vld [vmem:[%s7619_s2 + $0x322] sm:$0xff] }
  0x9a   :  { %412 = vst.msk [vmem:[#allocation2 + $0x4c0] sm:$0xff] %vm145_vm0, %v299_v27  ;;  %413 = vst.msk [vmem:[#allocation2 + $0x4c8] sm:$0xff] %vm145_vm0, %v300_v28  ;;  %v360_v25 = vld [vmem:[%s7619_s2 + $0x32a] sm:$0xff]  ;;  %v361_v26 = vld [vmem:[%s7619_s2 + $0x332] sm:$0xff] }
  0x9b   :  { %414 = vst.msk [vmem:[#allocation2 + $0x4d0] sm:$0xff] %vm145_vm0, %v301_v29  ;;  %416 = vst.msk [vmem:[#allocation2 + $0x4e0] sm:$0xff] %vm145_vm0, %v303_v31  ;;  %v362_v27 = vld [vmem:[%s7619_s2 + $0x33a] sm:$0x3]  ;;  %v363_v28 = vld [vmem:[%s7619_s2 + $0x342] sm:$0xff] }
  0x9c   :  { %415 = vst.msk [vmem:[#allocation2 + $0x4d8] sm:$0x3] %vm149_vm1, %v302_v30  ;;  %419 = vst.msk [vmem:[#allocation2 + $0x4f8] sm:$0x3] %vm149_vm1, %v306_v34  ;;  %v364_v29 = vld [vmem:[%s7619_s2 + $0x34a] sm:$0xff]  ;;  %v365_v30 = vld [vmem:[%s7619_s2 + $0x352] sm:$0xff] }
  0x9d   :  { %417 = vst.msk [vmem:[#allocation2 + $0x4e8] sm:$0xff] %vm145_vm0, %v304_v32  ;;  %418 = vst.msk [vmem:[#allocation2 + $0x4f0] sm:$0xff] %vm145_vm0, %v305_v33  ;;  %v366_v31 = vld [vmem:[%s7619_s2 + $0x35a] sm:$0x3]  ;;  %v367_v32 = vld [vmem:[%s7619_s2 + $0x362] sm:$0xff] }
  0x9e   :  { %420 = vst.msk [vmem:[#allocation2 + $0x500] sm:$0xff] %vm145_vm0, %v307_v35  ;;  %421 = vst.msk [vmem:[#allocation2 + $0x508] sm:$0xff] %vm145_vm0, %v308_v36  ;;  %v368_v33 = vld [vmem:[%s7619_s2 + $0x36a] sm:$0xff]  ;;  %v369_v34 = vld [vmem:[%s7619_s2 + $0x372] sm:$0xff] }
  0x9f   :  { %422 = vst.msk [vmem:[#allocation2 + $0x510] sm:$0xff] %vm145_vm0, %v309_v37  ;;  %424 = vst.msk [vmem:[#allocation2 + $0x520] sm:$0xff] %vm145_vm0, %v311_v39  ;;  %v370_v35 = vld [vmem:[%s7619_s2 + $0x37a] sm:$0x3] }
  0xa0   :  { %423 = vst.msk [vmem:[#allocation2 + $0x518] sm:$0x3] %vm149_vm1, %v310_v38  ;;  %427 = vst.msk [vmem:[#allocation2 + $0x538] sm:$0x3] %vm149_vm1, %v314_v42 }
  0xa1   :  { %425 = vst.msk [vmem:[#allocation2 + $0x528] sm:$0xff] %vm145_vm0, %v312_v40  ;;  %426 = vst.msk [vmem:[#allocation2 + $0x530] sm:$0xff] %vm145_vm0, %v313_v41 }
  0xa2   :  { %428 = vst.msk [vmem:[#allocation2 + $0x540] sm:$0xff] %vm145_vm0, %v315_v43  ;;  %429 = vst.msk [vmem:[#allocation2 + $0x548] sm:$0xff] %vm145_vm0, %v316_v44 }
  0xa3   :  { %430 = vst.msk [vmem:[#allocation2 + $0x550] sm:$0xff] %vm145_vm0, %v317_v45  ;;  %432 = vst.msk [vmem:[#allocation2 + $0x560] sm:$0xff] %vm145_vm0, %v319_v47 }
  0xa4   :  { %431 = vst.msk [vmem:[#allocation2 + $0x558] sm:$0x3] %vm149_vm1, %v318_v46  ;;  %435 = vst.msk [vmem:[#allocation2 + $0x578] sm:$0x3] %vm149_vm1, %v322_v50 }
  0xa5   :  { %433 = vst.msk [vmem:[#allocation2 + $0x568] sm:$0xff] %vm145_vm0, %v320_v48  ;;  %434 = vst.msk [vmem:[#allocation2 + $0x570] sm:$0xff] %vm145_vm0, %v321_v49 }
  0xa6   :  { %436 = vst.msk [vmem:[#allocation2 + $0x580] sm:$0xff] %vm145_vm0, %v323_v51  ;;  %437 = vst.msk [vmem:[#allocation2 + $0x588] sm:$0xff] %vm145_vm0, %v324_v52 }
  0xa7   :  { %438 = vst.msk [vmem:[#allocation2 + $0x590] sm:$0xff] %vm145_vm0, %v325_v53  ;;  %440 = vst.msk [vmem:[#allocation2 + $0x5a0] sm:$0xff] %vm145_vm0, %v327_v55 }
  0xa8   :  { %439 = vst.msk [vmem:[#allocation2 + $0x598] sm:$0x3] %vm149_vm1, %v326_v54  ;;  %443 = vst.msk [vmem:[#allocation2 + $0x5b8] sm:$0x3] %vm149_vm1, %v330_v58 }
  0xa9   :  { %441 = vst.msk [vmem:[#allocation2 + $0x5a8] sm:$0xff] %vm145_vm0, %v328_v56  ;;  %442 = vst.msk [vmem:[#allocation2 + $0x5b0] sm:$0xff] %vm145_vm0, %v329_v57 }
  0xaa   :  { %444 = vst.msk [vmem:[#allocation2 + $0x5c0] sm:$0xff] %vm145_vm0, %v331_v59  ;;  %445 = vst.msk [vmem:[#allocation2 + $0x5c8] sm:$0xff] %vm145_vm0, %v332_v60 }
  0xab   :  { %446 = vst.msk [vmem:[#allocation2 + $0x5d0] sm:$0xff] %vm145_vm0, %v333_v61  ;;  %448 = vst.msk [vmem:[#allocation2 + $0x5e0] sm:$0xff] %vm145_vm0, %v335_v63 }
  0xac   :  { %447 = vst.msk [vmem:[#allocation2 + $0x5d8] sm:$0x3] %vm149_vm1, %v334_v62  ;;  %451 = vst.msk [vmem:[#allocation2 + $0x5f8] sm:$0x3] %vm149_vm1, %v338_v2 }
  0xad   :  { %449 = vst.msk [vmem:[#allocation2 + $0x5e8] sm:$0xff] %vm145_vm0, %v336_v0  ;;  %450 = vst.msk [vmem:[#allocation2 + $0x5f0] sm:$0xff] %vm145_vm0, %v337_v1 }
  0xae   :  { %452 = vst.msk [vmem:[#allocation2 + $0x600] sm:$0xff] %vm145_vm0, %v339_v3  ;;  %453 = vst.msk [vmem:[#allocation2 + $0x608] sm:$0xff] %vm145_vm0, %v340_v4 }
  0xaf   :  { %454 = vst.msk [vmem:[#allocation2 + $0x610] sm:$0xff] %vm145_vm0, %v341_v5  ;;  %456 = vst.msk [vmem:[#allocation2 + $0x620] sm:$0xff] %vm145_vm0, %v343_v8 }
  0xb0   :  { %455 = vst.msk [vmem:[#allocation2 + $0x618] sm:$0x3] %vm149_vm1, %v342_v7  ;;  %459 = vst.msk [vmem:[#allocation2 + $0x638] sm:$0x3] %vm149_vm1, %v346_v11 }
  0xb1   :  { %457 = vst.msk [vmem:[#allocation2 + $0x628] sm:$0xff] %vm145_vm0, %v344_v9  ;;  %458 = vst.msk [vmem:[#allocation2 + $0x630] sm:$0xff] %vm145_vm0, %v345_v10 }
  0xb2   :  { %460 = vst.msk [vmem:[#allocation2 + $0x640] sm:$0xff] %vm145_vm0, %v347_v12  ;;  %461 = vst.msk [vmem:[#allocation2 + $0x648] sm:$0xff] %vm145_vm0, %v348_v13 }
  0xb3   :  { %462 = vst.msk [vmem:[#allocation2 + $0x650] sm:$0xff] %vm145_vm0, %v349_v14  ;;  %464 = vst.msk [vmem:[#allocation2 + $0x660] sm:$0xff] %vm145_vm0, %v351_v16 }
  0xb4   :  { %463 = vst.msk [vmem:[#allocation2 + $0x658] sm:$0x3] %vm149_vm1, %v350_v15  ;;  %467 = vst.msk [vmem:[#allocation2 + $0x678] sm:$0x3] %vm149_vm1, %v354_v19 }
  0xb5   :  { %465 = vst.msk [vmem:[#allocation2 + $0x668] sm:$0xff] %vm145_vm0, %v352_v17  ;;  %466 = vst.msk [vmem:[#allocation2 + $0x670] sm:$0xff] %vm145_vm0, %v353_v18 }
  0xb6   :  { %468 = vst.msk [vmem:[#allocation2 + $0x680] sm:$0xff] %vm145_vm0, %v355_v20  ;;  %469 = vst.msk [vmem:[#allocation2 + $0x688] sm:$0xff] %vm145_vm0, %v356_v21 }
  0xb7   :  { %470 = vst.msk [vmem:[#allocation2 + $0x690] sm:$0xff] %vm145_vm0, %v357_v22  ;;  %472 = vst.msk [vmem:[#allocation2 + $0x6a0] sm:$0xff] %vm145_vm0, %v359_v24 }
  0xb8   :  { %471 = vst.msk [vmem:[#allocation2 + $0x698] sm:$0x3] %vm149_vm1, %v358_v23  ;;  %475 = vst.msk [vmem:[#allocation2 + $0x6b8] sm:$0x3] %vm149_vm1, %v362_v27 }
  0xb9   :  { %473 = vst.msk [vmem:[#allocation2 + $0x6a8] sm:$0xff] %vm145_vm0, %v360_v25  ;;  %474 = vst.msk [vmem:[#allocation2 + $0x6b0] sm:$0xff] %vm145_vm0, %v361_v26 }
  0xba   :  { %476 = vst.msk [vmem:[#allocation2 + $0x6c0] sm:$0xff] %vm145_vm0, %v363_v28  ;;  %477 = vst.msk [vmem:[#allocation2 + $0x6c8] sm:$0xff] %vm145_vm0, %v364_v29 }
  0xbb   :  { %478 = vst.msk [vmem:[#allocation2 + $0x6d0] sm:$0xff] %vm145_vm0, %v365_v30  ;;  %480 = vst.msk [vmem:[#allocation2 + $0x6e0] sm:$0xff] %vm145_vm0, %v367_v32 }
  0xbc   :  { %479 = vst.msk [vmem:[#allocation2 + $0x6d8] sm:$0x3] %vm149_vm1, %v366_v31  ;;  %483 = vst.msk [vmem:[#allocation2 + $0x6f8] sm:$0x3] %vm149_vm1, %v370_v35 }
  0xbd   :  { %481 = vst.msk [vmem:[#allocation2 + $0x6e8] sm:$0xff] %vm145_vm0, %v368_v33  ;;  %482 = vst.msk [vmem:[#allocation2 + $0x6f0] sm:$0xff] %vm145_vm0, %v369_v34 }
  0xbe LB: > { %s601_s0 = sld [smem:[#allocation5]]  ;;  %s3564_s1 = sld [smem:[#allocation5 + $0x9]]  ;;  %vm1308_vm2 = vcmask 1046528   ;;  %vm1332_vm3 = vcmask 12288   ;;  %vm1333_vm4 = vsmask.f32 4352  ;;  %s4495_s9 = sphi %s5660_s9, %s593_s9  }
  0xbf   : > { %s3782_s10 = sshll.u32 %s4495_s9, 6  ;;  %s3565_s11 = sld [smem:[#allocation5 + $0x12]]  ;;  %vm6947_vm5 = vmand %vm1332_vm3, %vm1333_vm4 }
  0xc0   : > { %s5669_s14 = scalar_lea.vmem %s7619_s2, %s3782_s10  ;;  %s5671_s15 = sld [smem:[#allocation5 + $0x1b]] }
  0xc1   : > { %v597_v36 = vld [vmem:[%s5669_s14] sm:$0xff]  ;;  %s5674_s16 = sld [smem:[#allocation5 + $0x1]]  ;;  %v598_v37 = vld [vmem:[%s5669_s14 + $0x8] sm:$0xff]  ;;  %v599_v38 = vld [vmem:[%s5669_s14 + $0x10] sm:$0xff]  ;;  %s3568_s17 = sld [smem:[#allocation5 + $0xa]] }
  0xc2   : > { %v600_v39 = vld [vmem:[%s5669_s14 + $0x18] sm:$0x3]  ;;  %s5688_s18 = sld [smem:[#allocation5 + $0x13]]  ;;  %s5694_s19 = scalar_lea.vmem [#allocation2], %s3782_s10  ;;  %v5702_v51 = vld [vmem:[%s5669_s14 + $0x20] sm:$0xff] }
  0xc3   : > { %s5697_s20 = sld [smem:[#allocation5 + $0x1c]]  ;;  %s5699_s21 = sld [smem:[#allocation5 + $0x2]] }
  0xc4   : > { %v5679_v40 = vstv %s601_s0  ;;  %v5684_v44 = vstv %s3564_s1  ;;  %v626_v50 = vld [vmem:[%s5694_s19] sm:$0xff]  ;;  %v627_v56 = vld [vmem:[%s5694_s19 + $0x8] sm:$0xff]  ;;  %s5720_s22 = sld [smem:[#allocation5 + $0xb]]  ;;  %s5747_s23 = sld [smem:[#allocation5 + $0x14]] }
  0xc5   : > { %v603_v41 = vmul.f32 %v5679_v40, %v597_v36  ;;  %v604_v42 = vmul.f32 %v5679_v40, %v598_v37  ;;  %v605_v43 = vmul.f32 %v5679_v40, %v599_v38  ;;  %v5686_v45 = vstv %s3565_s11  ;;  %v628_v57 = vld [vmem:[%s5694_s19 + $0x10] sm:$0xff]  ;;  %v629_v58 = vld [vmem:[%s5694_s19 + $0x18] sm:$0x3]  ;;  %v3572_v28 = vld [vmem:[%s5694_s19 + $0x380] sm:$0xff]  ;;  %s5754_s24 = sld [smem:[#allocation5 + $0x1d]]  ;;  %s5756_s25 = sld [smem:[#allocation5 + $0x3]] }
  0xc6   : > { %v606_v46 = vmul.f32 %v5679_v40, %v600_v39  ;;  %v609_v47 = vmul.f32 %v5684_v44, %v597_v36  ;;  %v610_v48 = vmul.f32 %v5684_v44, %v598_v37  ;;  %v611_v49 = vmul.f32 %v5684_v44, %v599_v38  ;;  %v3573_v32 = vld [vmem:[%s5694_s19 + $0x388] sm:$0xff]  ;;  %v3574_v33 = vld [vmem:[%s5694_s19 + $0x390] sm:$0xff]  ;;  %v3575_v34 = vld [vmem:[%s5694_s19 + $0x398] sm:$0x3]  ;;  %s5776_s26 = sld [smem:[#allocation5 + $0xc]]  ;;  %s5794_s27 = sld [smem:[#allocation5 + $0x15]] }
  0xc7   : > { %v612_v52 = vmul.f32 %v5684_v44, %v600_v39  ;;  %v615_v53 = vmul.f32 %v5686_v45, %v597_v36  ;;  %v616_v54 = vmul.f32 %v5686_v45, %v598_v37  ;;  %v617_v55 = vmul.f32 %v5686_v45, %v599_v38  ;;  %s5825_s28 = sld [smem:[#allocation5 + $0x1e]]  ;;  %s5838_s29 = sld [smem:[#allocation5 + $0x4]] }
  0xc8   : > { %v618_v59 = vmul.f32 %v5686_v45, %v600_v39  ;;  %v5713_v60 = vstv %s5671_s15  ;;  %v5716_v61 = vstv %s5674_s16  ;;  %v5718_v62 = vstv %s3568_s17  ;;  %s5894_s30 = sld [smem:[#allocation5 + $0xd]]  ;;  %s5942_s8 = sld [smem:[#allocation5 + $0x16]] }
  0xc9   : > { %v621_v63 = vmul.f32 %v5713_v60, %v597_v36  ;;  %v622_v0 = vmul.f32 %v5713_v60, %v598_v37  ;;  %v623_v1 = vmul.f32 %v5713_v60, %v599_v38  ;;  %v5727_v2 = vmul.f32 %v5702_v51, %v5679_v40  ;;  %s3599_s0 = sld [smem:[#allocation5 + $0x1f]]  ;;  %s6028_s1 = sld [smem:[#allocation5 + $0x5]] }
  0xca   : > { %v632_v3 = vmul.f32 %v5716_v61, %v626_v50  ;;  %v633_v4 = vmul.f32 %v5716_v61, %v627_v56  ;;  %v634_v5 = vmul.f32 %v5716_v61, %v628_v57  ;;  %v635_v7 = vmul.f32 %v5716_v61, %v629_v58  ;;  %s6070_s10 = sld [smem:[#allocation5 + $0xe]]  ;;  %s6125_s11 = sld [smem:[#allocation5 + $0x17]] }
  0xcb   : > { %v642_v8 = vmul.f32 %v5718_v62, %v626_v50  ;;  %v643_v9 = vmul.f32 %v5718_v62, %v627_v56  ;;  %v644_v10 = vmul.f32 %v5718_v62, %v628_v57  ;;  %v645_v11 = vmul.f32 %v5718_v62, %v629_v58  ;;  %s3609_s12 = sld [smem:[#allocation5 + $0x20]]  ;;  %s6217_s13 = sld [smem:[#allocation5 + $0x6]] }
  0xcc   : > { %v624_v12 = vmul.f32 %v5713_v60, %v600_v39  ;;  %v636_v13 = vadd.f32 %v632_v3, %v603_v41  ;;  %v637_v14 = vadd.f32 %v633_v4, %v604_v42  ;;  %v638_v15 = vadd.f32 %v634_v5, %v605_v43  ;;  %s6259_s15 = sld [smem:[#allocation5 + $0xf]]  ;;  %s6314_s16 = sld [smem:[#allocation5 + $0x18]] }
  0xcd   : > { %v639_v16 = vadd.f32 %v635_v7, %v606_v46  ;;  %v646_v17 = vadd.f32 %v642_v8, %v609_v47  ;;  %v647_v18 = vadd.f32 %v643_v9, %v610_v48  ;;  %v648_v19 = vadd.f32 %v644_v10, %v611_v49  ;;  %v5785_v8 = vld [vmem:[%s5669_s14 + $0x28] sm:$0xff]  ;;  %s3619_s17 = sld [smem:[#allocation5 + $0x21]] }
  0xce   : > { %v649_v20 = vadd.f32 %v645_v11, %v612_v52  ;;  %v5739_v21 = vstv %s5688_s18  ;;  %v5742_v22 = vstv %s5697_s20  ;;  %v5745_v23 = vstv %s5699_s21  ;;  %s6406_s18 = sld [smem:[#allocation5 + $0x7]]  ;;  %s6448_s20 = sld [smem:[#allocation5 + $0x10]] }
  0xcf   : > { %v652_v24 = vmul.f32 %v5739_v21, %v626_v50  ;;  %v653_v25 = vmul.f32 %v5739_v21, %v627_v56  ;;  %v654_v26 = vmul.f32 %v5739_v21, %v628_v57  ;;  %v655_v27 = vmul.f32 %v5739_v21, %v629_v58  ;;  %s6503_s21 = sld [smem:[#allocation5 + $0x19]] }
  0xd0   : > { %v662_v29 = vmul.f32 %v5742_v22, %v626_v50  ;;  %v663_v30 = vmul.f32 %v5742_v22, %v627_v56  ;;  %v664_v31 = vmul.f32 %v5742_v22, %v628_v57  ;;  %v5765_v35 = vstv %s5720_s22  ;;  %s3629_s22 = sld [smem:[#allocation5 + $0x22]] }
  0xd1   : > { %v656_v36 = vadd.f32 %v652_v24, %v615_v53  ;;  %v657_v37 = vadd.f32 %v653_v25, %v616_v54  ;;  %v658_v38 = vadd.f32 %v654_v26, %v617_v55  ;;  %v665_v39 = vmul.f32 %v5742_v22, %v629_v58  ;;  %v3584_v24 = vld [vmem:[%s5669_s14 + $0x30] sm:$0xff]  ;;  %v5802_v25 = vld [vmem:[%s5669_s14 + $0x38] sm:$0x3] }
  0xd2   : > { %v659_v41 = vadd.f32 %v655_v27, %v618_v59  ;;  %v666_v42 = vadd.f32 %v662_v29, %v621_v63  ;;  %v667_v43 = vadd.f32 %v663_v30, %v622_v0  ;;  %v668_v46 = vadd.f32 %v664_v31, %v623_v1 }
  0xd3   : > { %v678_v47 = vmul.f32 %v3572_v28, %v5745_v23  ;;  %v679_v48 = vmul.f32 %v3573_v32, %v5745_v23  ;;  %v680_v49 = vmul.f32 %v3574_v33, %v5745_v23  ;;  %v681_v50 = vmul.f32 %v3575_v34, %v5745_v23 }
  0xd4   : > { %v688_v52 = vmul.f32 %v3572_v28, %v5765_v35  ;;  %v689_v53 = vmul.f32 %v3573_v32, %v5765_v35  ;;  %v690_v54 = vmul.f32 %v3574_v33, %v5765_v35  ;;  %v691_v55 = vmul.f32 %v3575_v34, %v5765_v35 }
  0xd5   : > { %v669_v56 = vadd.f32 %v665_v39, %v624_v12  ;;  %v682_v57 = vadd.f32 %v678_v47, %v636_v13  ;;  %v683_v58 = vadd.f32 %v679_v48, %v637_v14  ;;  %v684_v59 = vadd.f32 %v680_v49, %v638_v15 }
  0xd6   : > { %v685_v63 = vadd.f32 %v681_v50, %v639_v16  ;;  %v692_v0 = vadd.f32 %v688_v52, %v646_v17  ;;  %v693_v1 = vadd.f32 %v689_v53, %v647_v18  ;;  %v694_v3 = vadd.f32 %v690_v54, %v648_v19 }
  0xd7   : > { %v695_v4 = vadd.f32 %v691_v55, %v649_v20  ;;  %v5779_v5 = vstv %s5747_s23  ;;  %v5782_v7 = vstv %s5754_s24  ;;  %v5788_v9 = vstv %s5756_s25  ;;  %s6595_s23 = sld [smem:[#allocation5 + $0x8]]  ;;  %s6637_s24 = sld [smem:[#allocation5 + $0x11]] }
  0xd8   : > { %v698_v10 = vmul.f32 %v3572_v28, %v5779_v5  ;;  %v699_v11 = vmul.f32 %v3573_v32, %v5779_v5  ;;  %v700_v12 = vmul.f32 %v3574_v33, %v5779_v5  ;;  %v701_v13 = vmul.f32 %v3575_v34, %v5779_v5  ;;  %s6690_s25 = sld [smem:[#allocation5 + $0x1a]] }
  0xd9   : > { %v708_v14 = vmul.f32 %v3572_v28, %v5782_v7  ;;  %v709_v15 = vmul.f32 %v3573_v32, %v5782_v7  ;;  %v710_v16 = vmul.f32 %v3574_v33, %v5782_v7  ;;  %v711_v17 = vmul.f32 %v3575_v34, %v5782_v7 }
  0xda   : > { %v702_v18 = vadd.f32 %v698_v10, %v656_v36  ;;  %v703_v19 = vadd.f32 %v699_v11, %v657_v37  ;;  %v704_v20 = vadd.f32 %v700_v12, %v658_v38  ;;  %v5806_v26 = vmul.f32 %v5785_v8, %v5679_v40 }
  0xdb   : > { %v705_v27 = vadd.f32 %v701_v13, %v659_v41  ;;  %v712_v29 = vadd.f32 %v708_v14, %v666_v42  ;;  %v713_v28 = vadd.f32 %v709_v15, %v667_v43  ;;  %v714_v30 = vadd.f32 %v710_v16, %v668_v46  ;;  %v5889_v15 = vld [vmem:[%s5694_s19 + $0x20] sm:$0xff]  ;;  %v5892_v16 = vld [vmem:[%s5694_s19 + $0x28] sm:$0xff] }
  0xdc   : > { %v725_v31 = vmul.f32 %v5702_v51, %v5788_v9  ;;  %v726_v32 = vmul.f32 %v5785_v8, %v5788_v9  ;;  %v727_v33 = vmul.f32 %v3584_v24, %v5788_v9  ;;  %v728_v34 = vmul.f32 %v5802_v25, %v5788_v9 }
  0xdd   : > { %v715_v36 = vadd.f32 %v711_v17, %v669_v56  ;;  %v5816_v37 = vmul.f32 %v3584_v24, %v5679_v40  ;;  %v5820_v38 = vmul.f32 %v5802_v25, %v5679_v40  ;;  %v5823_v39 = vstv %s5776_s26  ;;  %s3639_s26 = sld [smem:[#allocation5 + $0x23]] }
  0xde   : > { %v729_v41 = vadd.f32 %v725_v31, %v682_v57  ;;  %v730_v42 = vadd.f32 %v726_v32, %v683_v58  ;;  %v731_v43 = vadd.f32 %v727_v33, %v684_v59  ;;  %v5829_v46 = vmul.f32 %v5702_v51, %v5684_v44 }
  0xdf   : > { %v739_v47 = vmul.f32 %v5702_v51, %v5823_v39  ;;  %v740_v48 = vmul.f32 %v5785_v8, %v5823_v39  ;;  %v741_v40 = vmul.f32 %v3584_v24, %v5823_v39  ;;  %v742_v49 = vmul.f32 %v5802_v25, %v5823_v39 }
  0xe0   : > { %v732_v50 = vadd.f32 %v728_v34, %v685_v63  ;;  %v5842_v52 = vmul.f32 %v5785_v8, %v5684_v44  ;;  %v5845_v53 = vmul.f32 %v3584_v24, %v5684_v44  ;;  %v5848_v54 = vstv %s5794_s27  ;;  %v5920_v34 = vld [vmem:[%s5694_s19 + $0x30] sm:$0xff]  ;;  %s6897_s27 = sld [smem:[#allocation6 + $0x2]] }
  0xe1   : > { %v5850_v55 = vadd.f32 %v739_v47, %v692_v0  ;;  %v5852_v56 = vadd.f32 %v740_v48, %v693_v1  ;;  %v5854_v57 = vadd.f32 %v741_v40, %v694_v3  ;;  %v5858_v58 = vmul.f32 %v5802_v25, %v5684_v44  ;;  %v5923_v47 = vld [vmem:[%s5694_s19 + $0x38] sm:$0x3] }
  0xe2   : > { %v753_v59 = vmul.f32 %v5702_v51, %v5848_v54  ;;  %v754_v63 = vmul.f32 %v5785_v8, %v5848_v54  ;;  %v755_v0 = vmul.f32 %v3584_v24, %v5848_v54  ;;  %v756_v1 = vmul.f32 %v5802_v25, %v5848_v54 }
  0xe3   : > { %v746_v10 = vadd.f32 %v742_v49, %v695_v4  ;;  %v5869_v3 = vmul.f32 %v5702_v51, %v5686_v45  ;;  %v5873_v44 = vmul.f32 %v5785_v8, %v5686_v45  ;;  %v5876_v11 = vmul.f32 %v3584_v24, %v5686_v45 }
  0xe4   : > { %v5878_v12 = vadd.f32 %v753_v59, %v702_v18  ;;  %v5880_v13 = vadd.f32 %v754_v63, %v703_v19  ;;  %v5882_v14 = vadd.f32 %v755_v0, %v704_v20  ;;  %v5886_v4 = vmul.f32 %v5802_v25, %v5686_v45 }
  0xe5   : > { %v5896_v17 = vadd.f32 %v756_v1, %v705_v27  ;;  %v5899_v18 = vstv %s5825_s28  ;;  %v5903_v19 = vmul.f32 %v5702_v51, %v5713_v60  ;;  %v5907_v20 = vmul.f32 %v5785_v8, %v5713_v60  ;;  %s6899_s28 = sld [smem:[#allocation6 + $0x3]] }
  0xe6   : > { %v767_v45 = vmul.f32 %v5702_v51, %v5899_v18  ;;  %v768_v31 = vmul.f32 %v5785_v8, %v5899_v18  ;;  %v769_v32 = vmul.f32 %v3584_v24, %v5899_v18  ;;  %v770_v27 = vmul.f32 %v5802_v25, %v5899_v18 }
  0xe7   : > { %v5917_v33 = vmul.f32 %v3584_v24, %v5713_v60  ;;  %v5926_v48 = vstv %s5838_s29  ;;  %v794_v51 = vmul.f32 %v5889_v15, %v5716_v61  ;;  %v795_v8 = vmul.f32 %v5892_v16, %v5716_v61  ;;  %s6922_s29 = sshll.u32 %s4495_s9, 7  ;;  %s593_s9 = sadd.s32 1, %s4495_s9  }
  0xe8   : > { %7630 = vst [vmem:[#allocation8_spill] sm:$0xff] %v5926_v48  ;;  %v5932_v40 = vadd.f32 %v767_v45, %v712_v29  ;;  %v5934_v49 = vadd.f32 %v768_v31, %v713_v28  ;;  %v5936_v59 = vadd.f32 %v769_v32, %v714_v30  ;;  %v5940_v24 = vmul.f32 %v5802_v25, %v5713_v60  ;;  %p590_p10 = scmp.ge.s32.totalorder %s593_s9, 13  }
  0xe9   : > { %v786_v63 = vmul.f32 %v5889_v15, %v5926_v48  ;;  %v787_v0 = vmul.f32 %v5892_v16, %v5926_v48  ;;  %v788_v29 = vmul.f32 %v5920_v34, %v5926_v48  ;;  %v789_v28 = vmul.f32 %v5923_v47, %v5926_v48 }
  0xea   : > { %v5952_v30 = vadd.f32 %v770_v27, %v715_v36  ;;  %v796_v60 = vmul.f32 %v5920_v34, %v5716_v61  ;;  %v797_v25 = vmul.f32 %v5923_v47, %v5716_v61  ;;  %v5959_v1 = vadd.f32 %v794_v51, %v5727_v2 }
  0xeb   : > { %v5961_v45 = vadd.f32 %v786_v63, %v729_v41  ;;  %v5963_v31 = vadd.f32 %v787_v0, %v730_v42  ;;  %v5965_v32 = vadd.f32 %v788_v29, %v731_v43  ;;  %v5968_v6 = vadd.f32 %v795_v8, %v5806_v26 }
  0xec   : > { %v5970_v36 = vadd.f32 %v789_v28, %v732_v50  ;;  %v5973_v27 = vadd.f32 %v796_v60, %v5816_v37  ;;  %v5976_v48 = vstv %s5894_s30  ;;  %v812_v61 = vmul.f32 %v5889_v15, %v5718_v62  ;;  %s1327_s30 = sshra.s32 %s6922_s29, 4 }
  0xed   : > { %v804_v2 = vmul.f32 %v5889_v15, %v5976_v48  ;;  %v805_v41 = vmul.f32 %v5892_v16, %v5976_v48  ;;  %v806_v26 = vmul.f32 %v5920_v34, %v5976_v48  ;;  %v807_v42 = vmul.f32 %v5923_v47, %v5976_v48 }
  0xee   : > { %v5989_v37 = vadd.f32 %v797_v25, %v5820_v38  ;;  %v813_v43 = vmul.f32 %v5892_v16, %v5718_v62  ;;  %v814_v50 = vmul.f32 %v5920_v34, %v5718_v62  ;;  %v815_v51 = vmul.f32 %v5923_v47, %v5718_v62 }
  0xef   : > { %v5998_v8 = vadd.f32 %v804_v2, %v5850_v55  ;;  %v6001_v63 = vadd.f32 %v805_v41, %v5852_v56  ;;  %v6004_v0 = vadd.f32 %v806_v26, %v5854_v57  ;;  %v6007_v38 = vadd.f32 %v812_v61, %v5829_v46 }
  0xf0   : > { %v6009_v29 = vadd.f32 %v807_v42, %v746_v10  ;;  %v6012_v28 = vadd.f32 %v813_v43, %v5842_v52  ;;  %v6015_v60 = vadd.f32 %v814_v50, %v5845_v53  ;;  %v6018_v62 = vstv %s5942_s8  ;;  %s3659_s8 = sshll.u32 %s1327_s30, 3 }
  0xf1   : > { %v822_v55 = vmul.f32 %v5889_v15, %v6018_v62  ;;  %v823_v56 = vmul.f32 %v5892_v16, %v6018_v62  ;;  %v824_v46 = vmul.f32 %v5920_v34, %v6018_v62  ;;  %v825_v57 = vmul.f32 %v5923_v47, %v6018_v62 }
  0xf2   : > { %v6031_v52 = vadd.f32 %v815_v51, %v5858_v58  ;;  %v830_v53 = vmul.f32 %v5889_v15, %v5739_v21  ;;  %v831_v10 = vmul.f32 %v5892_v16, %v5739_v21  ;;  %v832_v25 = vmul.f32 %v5920_v34, %v5739_v21  ;;  %v6081_v51 = vld [vmem:[%s5694_s19 + $0x3a0] sm:$0xff] }
  0xf3   : > { %v6040_v61 = vadd.f32 %v822_v55, %v5878_v12  ;;  %v6043_v2 = vadd.f32 %v823_v56, %v5880_v13  ;;  %v6046_v41 = vadd.f32 %v824_v46, %v5882_v14  ;;  %v833_v58 = vmul.f32 %v5923_v47, %v5739_v21  ;;  %v6084_v55 = vld [vmem:[%s5694_s19 + $0x3a8] sm:$0xff] }
  0xf4   : > { %v6051_v26 = vadd.f32 %v825_v57, %v5896_v17  ;;  %v6054_v42 = vadd.f32 %v830_v53, %v5869_v3  ;;  %v6057_v12 = vadd.f32 %v831_v10, %v5873_v44  ;;  %v6060_v13 = vadd.f32 %v832_v25, %v5876_v11  ;;  %v6110_v10 = vld [vmem:[%s5694_s19 + $0x3b0] sm:$0xff] }
  0xf5   : > { %v6062_v43 = vstv %s3599_s0  ;;  %v848_v14 = vmul.f32 %v5889_v15, %v5742_v22  ;;  %v849_v21 = vmul.f32 %v5892_v16, %v5742_v22  ;;  %v850_v17 = vmul.f32 %v5920_v34, %v5742_v22  ;;  %s3793_s0 = sadd.s32 32, %s6922_s29 }
  0xf6   : > { %v840_v3 = vmul.f32 %v5889_v15, %v6062_v43  ;;  %v841_v44 = vmul.f32 %v5892_v16, %v6062_v43  ;;  %v842_v11 = vmul.f32 %v5920_v34, %v6062_v43  ;;  %v843_v50 = vmul.f32 %v5923_v47, %v6062_v43 }
  0xf7   : > { %v6087_v56 = vadd.f32 %v833_v58, %v5886_v4  ;;  %v851_v15 = vmul.f32 %v5923_v47, %v5742_v22  ;;  %v6092_v46 = vadd.f32 %v848_v14, %v5903_v19  ;;  %v6095_v16 = vadd.f32 %v849_v21, %v5907_v20  ;;  %v6113_v22 = vld [vmem:[%s5694_s19 + $0x3b8] sm:$0x3] }
  0xf8   : > { %v6098_v34 = vadd.f32 %v840_v3, %v5932_v40  ;;  %v6101_v57 = vadd.f32 %v841_v44, %v5934_v49  ;;  %v6104_v53 = vadd.f32 %v842_v11, %v5936_v59  ;;  %v6107_v4 = vadd.f32 %v850_v17, %v5917_v33 }
  0xf9   : > { %v6116_v19 = vadd.f32 %v843_v50, %v5952_v30  ;;  %v6119_v20 = vstv %s6028_s1  ;;  %v872_v47 = vmul.f32 %v6081_v51, %v5745_v23  ;;  %v873_v40 = vmul.f32 %v6084_v55, %v5745_v23  ;;  %s1330_s1 = scalar_lea.vmem [#allocation3], %s3659_s8 }
  0xfa   : > { %v864_v33 = vmul.f32 %v6081_v51, %v6119_v20  ;;  %v865_v49 = vmul.f32 %v6084_v55, %v6119_v20  ;;  %v866_v59 = vmul.f32 %v6110_v10, %v6119_v20  ;;  %v867_v30 = vmul.f32 %v6113_v22, %v6119_v20 }
  0xfb   : > { %v6136_v25 = vadd.f32 %v851_v15, %v5940_v24  ;;  %v874_v58 = vmul.f32 %v6110_v10, %v5745_v23  ;;  %v875_v14 = vmul.f32 %v6113_v22, %v5745_v23  ;;  %v6143_v21 = vadd.f32 %v872_v47, %v5959_v1 }
  0xfc   : > { %v6146_v17 = vadd.f32 %v864_v33, %v5961_v45  ;;  %v6149_v3 = vadd.f32 %v865_v49, %v5963_v31  ;;  %v6152_v44 = vadd.f32 %v866_v59, %v5965_v32  ;;  %v6155_v24 = vadd.f32 %v873_v40, %v5968_v6 }
  0xfd   : > { %v6158_v11 = vadd.f32 %v867_v30, %v5970_v36  ;;  %v6161_v23 = vadd.f32 %v874_v58, %v5973_v27  ;;  %v6164_v1 = vstv %s6070_s10  ;;  %v890_v45 = vmul.f32 %v6081_v51, %v5765_v35  ;;  %s6958_s10 = sshra.s32 %s3793_s0, 4 }
  0xfe   : > { %v882_v31 = vmul.f32 %v6081_v51, %v6164_v1  ;;  %v883_v32 = vmul.f32 %v6084_v55, %v6164_v1  ;;  %v884_v6 = vmul.f32 %v6110_v10, %v6164_v1  ;;  %v885_v36 = vmul.f32 %v6113_v22, %v6164_v1 }
  0xff   : > { %v6177_v27 = vadd.f32 %v875_v14, %v5989_v37  ;;  %v891_v50 = vmul.f32 %v6084_v55, %v5765_v35  ;;  %v892_v15 = vmul.f32 %v6110_v10, %v5765_v35  ;;  %v893_v47 = vmul.f32 %v6113_v22, %v5765_v35 }
 0x100   : > { %v6186_v40 = vadd.f32 %v882_v31, %v5998_v8  ;;  %v6189_v33 = vadd.f32 %v883_v32, %v6001_v63  ;;  %v6192_v49 = vadd.f32 %v884_v6, %v6004_v0  ;;  %v6195_v37 = vadd.f32 %v890_v45, %v6007_v38 }
 0x101   : > { %v6198_v59 = vadd.f32 %v885_v36, %v6009_v29  ;;  %v6201_v30 = vadd.f32 %v891_v50, %v6012_v28  ;;  %v6204_v35 = vadd.f32 %v892_v15, %v6015_v60  ;;  %v6207_v8 = vstv %s6125_s11  ;;  %s3663_s11 = sshll.u32 %s6958_s10, 3 }
 0x102   : > { %v900_v63 = vmul.f32 %v6081_v51, %v6207_v8  ;;  %v901_v0 = vmul.f32 %v6084_v55, %v6207_v8  ;;  %v902_v38 = vmul.f32 %v6110_v10, %v6207_v8  ;;  %v903_v29 = vmul.f32 %v6113_v22, %v6207_v8 }
 0x103   : > { %v6220_v28 = vadd.f32 %v893_v47, %v6031_v52  ;;  %v908_v60 = vmul.f32 %v6081_v51, %v5779_v5  ;;  %v909_v58 = vmul.f32 %v6084_v55, %v5779_v5  ;;  %v910_v14 = vmul.f32 %v6110_v10, %v5779_v5  ;;  %v6270_v47 = vld [vmem:[%s5669_s14 + $0x40] sm:$0xff] }
 0x104   : > { %v6229_v45 = vadd.f32 %v900_v63, %v6040_v61  ;;  %v6232_v31 = vadd.f32 %v901_v0, %v6043_v2  ;;  %v6235_v32 = vadd.f32 %v902_v38, %v6046_v41  ;;  %v911_v52 = vmul.f32 %v6113_v22, %v5779_v5  ;;  %v6273_v63 = vld [vmem:[%s5669_s14 + $0x48] sm:$0xff] }
 0x105   : > { %v6240_v6 = vadd.f32 %v903_v29, %v6051_v26  ;;  %v6243_v36 = vadd.f32 %v908_v60, %v6054_v42  ;;  %v6246_v61 = vadd.f32 %v909_v58, %v6057_v12  ;;  %v6249_v2 = vadd.f32 %v910_v14, %v6060_v13  ;;  %v6299_v58 = vld [vmem:[%s5669_s14 + $0x50] sm:$0xff] }
 0x106   : > { %v6251_v50 = vstv %s3609_s12  ;;  %v926_v41 = vmul.f32 %v6081_v51, %v5782_v7  ;;  %v927_v5 = vmul.f32 %v6084_v55, %v5782_v7  ;;  %v928_v26 = vmul.f32 %v6110_v10, %v5782_v7  ;;  %s3795_s12 = sadd.s32 64, %s6922_s29 }
 0x107   : > { %v918_v42 = vmul.f32 %v6081_v51, %v6251_v50  ;;  %v919_v12 = vmul.f32 %v6084_v55, %v6251_v50  ;;  %v920_v13 = vmul.f32 %v6110_v10, %v6251_v50  ;;  %v921_v15 = vmul.f32 %v6113_v22, %v6251_v50 }
 0x108   : > { %v6276_v0 = vadd.f32 %v911_v52, %v6087_v56  ;;  %v929_v51 = vmul.f32 %v6113_v22, %v5782_v7  ;;  %v6281_v38 = vadd.f32 %v926_v41, %v6092_v46  ;;  %v6284_v55 = vadd.f32 %v927_v5, %v6095_v16  ;;  %v6302_v7 = vld [vmem:[%s5669_s14 + $0x58] sm:$0x3] }
 0x109   : > { %v6287_v10 = vadd.f32 %v918_v42, %v6098_v34  ;;  %v6290_v29 = vadd.f32 %v919_v12, %v6101_v57  ;;  %v6293_v60 = vadd.f32 %v920_v13, %v6104_v53  ;;  %v6296_v56 = vadd.f32 %v928_v26, %v6107_v4 }
 0x10a   : > { %v6305_v46 = vadd.f32 %v921_v15, %v6116_v19  ;;  %v6308_v16 = vstv %s6217_s13  ;;  %v951_v34 = vmul.f32 %v6270_v47, %v5788_v9  ;;  %v952_v57 = vmul.f32 %v6273_v63, %v5788_v9  ;;  %s1387_s13 = scalar_lea.vmem [#allocation3], %s3663_s11 }
 0x10b   : > { %v943_v53 = vmul.f32 %v6270_v47, %v6308_v16  ;;  %v944_v4 = vmul.f32 %v6273_v63, %v6308_v16  ;;  %v945_v22 = vmul.f32 %v6299_v58, %v6308_v16  ;;  %v946_v19 = vmul.f32 %v6302_v7, %v6308_v16 }
 0x10c   : > { %v6325_v14 = vadd.f32 %v929_v51, %v6136_v25  ;;  %v953_v52 = vmul.f32 %v6299_v58, %v5788_v9  ;;  %v954_v41 = vmul.f32 %v6302_v7, %v5788_v9  ;;  %v6332_v5 = vadd.f32 %v951_v34, %v6143_v21 }
 0x10d   : > { %v6335_v26 = vadd.f32 %v943_v53, %v6146_v17  ;;  %v6338_v42 = vadd.f32 %v944_v4, %v6149_v3  ;;  %v6341_v12 = vadd.f32 %v945_v22, %v6152_v44  ;;  %v6344_v25 = vadd.f32 %v952_v57, %v6155_v24 }
 0x10e   : > { %v6347_v13 = vadd.f32 %v946_v19, %v6158_v11  ;;  %v6350_v9 = vadd.f32 %v953_v52, %v6161_v23  ;;  %v6353_v21 = vstv %s6259_s15  ;;  %v969_v17 = vmul.f32 %v6270_v47, %v5823_v39  ;;  %s6986_s15 = sshra.s32 %s3795_s12, 4 }
 0x10f   : > { %v961_v3 = vmul.f32 %v6270_v47, %v6353_v21  ;;  %v962_v44 = vmul.f32 %v6273_v63, %v6353_v21  ;;  %v963_v24 = vmul.f32 %v6299_v58, %v6353_v21  ;;  %v964_v11 = vmul.f32 %v6302_v7, %v6353_v21 }
 0x110   : > { %v6366_v23 = vadd.f32 %v954_v41, %v6177_v27  ;;  %v970_v15 = vmul.f32 %v6273_v63, %v5823_v39  ;;  %v971_v51 = vmul.f32 %v6299_v58, %v5823_v39  ;;  %v972_v34 = vmul.f32 %v6302_v7, %v5823_v39 }
 0x111   : > { %v6375_v57 = vadd.f32 %v961_v3, %v6186_v40  ;;  %v6378_v53 = vadd.f32 %v962_v44, %v6189_v33  ;;  %v6381_v4 = vadd.f32 %v963_v24, %v6192_v49  ;;  %v6384_v27 = vadd.f32 %v969_v17, %v6195_v37 }
 0x112   : > { %v6387_v22 = vadd.f32 %v964_v11, %v6198_v59  ;;  %v6390_v19 = vadd.f32 %v970_v15, %v6201_v30  ;;  %v6393_v39 = vadd.f32 %v971_v51, %v6204_v35  ;;  %v6396_v40 = vstv %s6314_s16  ;;  %s3666_s16 = sshll.u32 %s6986_s15, 3 }
 0x113   : > { %v979_v33 = vmul.f32 %v6270_v47, %v6396_v40  ;;  %v980_v49 = vmul.f32 %v6273_v63, %v6396_v40  ;;  %v981_v37 = vmul.f32 %v6299_v58, %v6396_v40  ;;  %v982_v59 = vmul.f32 %v6302_v7, %v6396_v40 }
 0x114   : > { %v6409_v30 = vadd.f32 %v972_v34, %v6220_v28  ;;  %v987_v35 = vmul.f32 %v6270_v47, %v5848_v54  ;;  %v988_v52 = vmul.f32 %v6273_v63, %v5848_v54  ;;  %v989_v41 = vmul.f32 %v6299_v58, %v5848_v54  ;;  %v6459_v34 = vld [vmem:[%s5694_s19 + $0x40] sm:$0xff] }
 0x115   : > { %v6418_v17 = vadd.f32 %v979_v33, %v6229_v45  ;;  %v6421_v3 = vadd.f32 %v980_v49, %v6232_v31  ;;  %v6424_v44 = vadd.f32 %v981_v37, %v6235_v32  ;;  %v990_v28 = vmul.f32 %v6302_v7, %v5848_v54  ;;  %v6462_v33 = vld [vmem:[%s5694_s19 + $0x48] sm:$0xff] }
 0x116   : > { %v6429_v24 = vadd.f32 %v982_v59, %v6240_v6  ;;  %v6432_v11 = vadd.f32 %v987_v35, %v6243_v36  ;;  %v6435_v45 = vadd.f32 %v988_v52, %v6246_v61  ;;  %v6438_v31 = vadd.f32 %v989_v41, %v6249_v2  ;;  %v6488_v52 = vld [vmem:[%s5694_s19 + $0x50] sm:$0xff] }
 0x117   : > { %v6440_v15 = vstv %s3619_s17  ;;  %v1005_v32 = vmul.f32 %v6270_v47, %v5899_v18  ;;  %v1006_v54 = vmul.f32 %v6273_v63, %v5899_v18  ;;  %v1007_v6 = vmul.f32 %v6299_v58, %v5899_v18  ;;  %s3797_s17 = sadd.s32 96, %s6922_s29 }
 0x118   : > { %v997_v36 = vmul.f32 %v6270_v47, %v6440_v15  ;;  %v998_v61 = vmul.f32 %v6273_v63, %v6440_v15  ;;  %v999_v2 = vmul.f32 %v6299_v58, %v6440_v15  ;;  %v1000_v51 = vmul.f32 %v6302_v7, %v6440_v15 }
 0x119   : > { %v6465_v49 = vadd.f32 %v990_v28, %v6276_v0  ;;  %v1008_v47 = vmul.f32 %v6302_v7, %v5899_v18  ;;  %v6470_v37 = vadd.f32 %v1005_v32, %v6281_v38  ;;  %v6473_v63 = vadd.f32 %v1006_v54, %v6284_v55  ;;  %v6491_v18 = vld [vmem:[%s5694_s19 + $0x58] sm:$0x3] }
 0x11a   : > { %v6476_v58 = vadd.f32 %v997_v36, %v6287_v10  ;;  %v6479_v59 = vadd.f32 %v998_v61, %v6290_v29  ;;  %v6482_v35 = vadd.f32 %v999_v2, %v6293_v60  ;;  %v6485_v0 = vadd.f32 %v1007_v6, %v6296_v56  ;;  %v7631_v10 = vld [vmem:[#allocation8_spill] sm:$0xff] }
 0x11b   : > { %v6494_v38 = vadd.f32 %v1000_v51, %v6305_v46  ;;  %v6497_v55 = vstv %s6406_s18  ;;  %v1028_v7 = vmul.f32 %v6459_v34, %v7631_v10  ;;  %v1029_v29 = vmul.f32 %v6462_v33, %v7631_v10  ;;  %s1440_s18 = scalar_lea.vmem [#allocation3], %s3666_s16 }
 0x11c   : > { %v1020_v60 = vmul.f32 %v6459_v34, %v6497_v55  ;;  %v1021_v56 = vmul.f32 %v6462_v33, %v6497_v55  ;;  %v1022_v46 = vmul.f32 %v6488_v52, %v6497_v55  ;;  %v1023_v41 = vmul.f32 %v6491_v18, %v6497_v55 }
 0x11d   : > { %v6514_v28 = vadd.f32 %v1008_v47, %v6325_v14  ;;  %v1030_v32 = vmul.f32 %v6488_v52, %v7631_v10  ;;  %v1031_v54 = vmul.f32 %v6491_v18, %v7631_v10  ;;  %v6521_v6 = vadd.f32 %v1028_v7, %v6332_v5 }
 0x11e   : > { %v6524_v36 = vadd.f32 %v1020_v60, %v6335_v26  ;;  %v6527_v61 = vadd.f32 %v1021_v56, %v6338_v42  ;;  %v6530_v2 = vadd.f32 %v1022_v46, %v6341_v12  ;;  %v6533_v14 = vadd.f32 %v1029_v29, %v6344_v25 }
 0x11f   : > { %v6536_v51 = vadd.f32 %v1023_v41, %v6347_v13  ;;  %v6539_v47 = vadd.f32 %v1030_v32, %v6350_v9  ;;  %v6542_v5 = vstv %s6448_s20  ;;  %v1046_v26 = vmul.f32 %v6459_v34, %v5976_v48  ;;  %s1490_s20 = sshra.s32 %s3797_s17, 4 }
 0x120   : > { %v1038_v42 = vmul.f32 %v6459_v34, %v6542_v5  ;;  %v1039_v12 = vmul.f32 %v6462_v33, %v6542_v5  ;;  %v1040_v25 = vmul.f32 %v6488_v52, %v6542_v5  ;;  %v1041_v13 = vmul.f32 %v6491_v18, %v6542_v5 }
 0x121   : > { %v6555_v9 = vadd.f32 %v1031_v54, %v6366_v23  ;;  %v1047_v10 = vmul.f32 %v6462_v33, %v5976_v48  ;;  %v1048_v7 = vmul.f32 %v6488_v52, %v5976_v48  ;;  %v1049_v29 = vmul.f32 %v6491_v18, %v5976_v48 }
 0x122   : > { %v6564_v60 = vadd.f32 %v1038_v42, %v6375_v57  ;;  %v6567_v56 = vadd.f32 %v1039_v12, %v6378_v53  ;;  %v6570_v46 = vadd.f32 %v1040_v25, %v6381_v4  ;;  %v6573_v23 = vadd.f32 %v1046_v26, %v6384_v27 }
 0x123   : > { %v6576_v41 = vadd.f32 %v1041_v13, %v6387_v22  ;;  %v6579_v32 = vadd.f32 %v1047_v10, %v6390_v19  ;;  %v6582_v48 = vadd.f32 %v1048_v7, %v6393_v39  ;;  %v6585_v57 = vstv %s6503_s21  ;;  %s3669_s21 = sshll.u32 %s1490_s20, 3 }
 0x124   : > { %v1056_v53 = vmul.f32 %v6459_v34, %v6585_v57  ;;  %v1057_v4 = vmul.f32 %v6462_v33, %v6585_v57  ;;  %v1058_v27 = vmul.f32 %v6488_v52, %v6585_v57  ;;  %v1059_v22 = vmul.f32 %v6491_v18, %v6585_v57 }
 0x125   : > { %v6598_v19 = vadd.f32 %v1049_v29, %v6409_v30  ;;  %v1064_v39 = vmul.f32 %v6459_v34, %v6018_v62  ;;  %v1065_v54 = vmul.f32 %v6462_v33, %v6018_v62  ;;  %v1066_v26 = vmul.f32 %v6488_v52, %v6018_v62 }
 0x126   : > { %v6607_v42 = vadd.f32 %v1056_v53, %v6418_v17  ;;  %v6610_v12 = vadd.f32 %v1057_v4, %v6421_v3  ;;  %v6613_v25 = vadd.f32 %v1058_v27, %v6424_v44  ;;  %v1067_v30 = vmul.f32 %v6491_v18, %v6018_v62  ;;  %v6648_v53 = vld [vmem:[%s5694_s19 + $0x3c0] sm:$0xff]  ;;  %v6651_v4 = vld [vmem:[%s5694_s19 + $0x3c8] sm:$0xff] }
 0x127   : > { %v6618_v13 = vadd.f32 %v1059_v22, %v6429_v24  ;;  %v6621_v10 = vadd.f32 %v1064_v39, %v6432_v11  ;;  %v6624_v17 = vadd.f32 %v1065_v54, %v6435_v45  ;;  %v6627_v3 = vadd.f32 %v1066_v26, %v6438_v31  ;;  %v3634_v26 = vld [vmem:[%s5694_s19 + $0x3d0] sm:$0xff] }
 0x128   : > { %v6629_v7 = vstv %s3629_s22  ;;  %v1082_v44 = vmul.f32 %v6459_v34, %v6062_v43  ;;  %v1083_v62 = vmul.f32 %v6462_v33, %v6062_v43  ;;  %v1084_v24 = vmul.f32 %v6488_v52, %v6062_v43  ;;  %s1493_s22 = scalar_lea.vmem [#allocation3], %s3669_s21 }
 0x129   : > { %v1074_v11 = vmul.f32 %v6459_v34, %v6629_v7  ;;  %v1075_v45 = vmul.f32 %v6462_v33, %v6629_v7  ;;  %v1076_v31 = vmul.f32 %v6488_v52, %v6629_v7  ;;  %v1077_v29 = vmul.f32 %v6491_v18, %v6629_v7 }
 0x12a   : > { %v6654_v27 = vadd.f32 %v1067_v30, %v6465_v49  ;;  %v1085_v34 = vmul.f32 %v6491_v18, %v6062_v43  ;;  %v6659_v22 = vadd.f32 %v1082_v44, %v6470_v37  ;;  %v6662_v33 = vadd.f32 %v1083_v62, %v6473_v63  ;;  %v6678_v43 = vld [vmem:[%s5694_s19 + $0x3d8] sm:$0x3] }
 0x12b   : > { %v6665_v52 = vadd.f32 %v1074_v11, %v6476_v58  ;;  %v6668_v39 = vadd.f32 %v1075_v45, %v6479_v59  ;;  %v6671_v54 = vadd.f32 %v1076_v31, %v6482_v35  ;;  %v6674_v49 = vadd.f32 %v1084_v24, %v6485_v0 }
 0x12c   : > { %v6681_v37 = vadd.f32 %v1077_v29, %v6494_v38  ;;  %v6684_v63 = vstv %s6595_s23  ;;  %v1106_v58 = vmul.f32 %v6648_v53, %v6119_v20  ;;  %v1107_v59 = vmul.f32 %v6651_v4, %v6119_v20 }
 0x12d   : > { %v1098_v35 = vmul.f32 %v6648_v53, %v6684_v63  ;;  %v1099_v0 = vmul.f32 %v6651_v4, %v6684_v63  ;;  %v1100_v18 = vmul.f32 %v3634_v26, %v6684_v63  ;;  %v1101_v38 = vmul.f32 %v6678_v43, %v6684_v63 }
 0x12e   : > { %v6700_v30 = vadd.f32 %v1085_v34, %v6514_v28  ;;  %v1108_v44 = vmul.f32 %v3634_v26, %v6119_v20  ;;  %v1109_v62 = vmul.f32 %v6678_v43, %v6119_v20  ;;  %v6706_v24 = vadd.f32 %v1106_v58, %v6521_v6 }
 0x12f   : > { %v6709_v11 = vadd.f32 %v1098_v35, %v6524_v36  ;;  %v6712_v45 = vadd.f32 %v1099_v0, %v6527_v61  ;;  %v6715_v31 = vadd.f32 %v1100_v18, %v6530_v2  ;;  %v6718_v28 = vadd.f32 %v1107_v59, %v6533_v14 }
 0x130   : > { %v6721_v29 = vadd.f32 %v1101_v38, %v6536_v51  ;;  %v6724_v20 = vadd.f32 %v1108_v44, %v6539_v47  ;;  %v6727_v6 = vstv %s6637_s24  ;;  %v1124_v36 = vmul.f32 %v6648_v53, %v6164_v1 }
 0x131   : > { %v1116_v61 = vmul.f32 %v6648_v53, %v6727_v6  ;;  %v1117_v2 = vmul.f32 %v6651_v4, %v6727_v6  ;;  %v1118_v14 = vmul.f32 %v3634_v26, %v6727_v6  ;;  %v1119_v51 = vmul.f32 %v6678_v43, %v6727_v6 }
 0x132   : > { %7632 = vst [vmem:[#allocation8_spill] sm:$0xff] %v6721_v29  ;;  %v1113_v47 = vadd.f32 %v1109_v62, %v6555_v9  ;;  %v1125_v34 = vmul.f32 %v6651_v4, %v6164_v1  ;;  %v1126_v58 = vmul.f32 %v3634_v26, %v6164_v1  ;;  %v1127_v59 = vmul.f32 %v6678_v43, %v6164_v1 }
 0x133   : > { %v6745_v35 = vadd.f32 %v1116_v61, %v6564_v60  ;;  %v6748_v0 = vadd.f32 %v1117_v2, %v6567_v56  ;;  %v6751_v18 = vadd.f32 %v1118_v14, %v6570_v46  ;;  %v1128_v38 = vadd.f32 %v1124_v36, %v6573_v23 }
 0x134   : > { %v6755_v9 = vadd.f32 %v1119_v51, %v6576_v41  ;;  %v1129_v44 = vadd.f32 %v1125_v34, %v6579_v32  ;;  %v1130_v62 = vadd.f32 %v1126_v58, %v6582_v48  ;;  %v6760_v29 = vstv %s6690_s25 }
 0x135   : > { %v1134_v1 = vmul.f32 %v6648_v53, %v6760_v29  ;;  %v1135_v60 = vmul.f32 %v6651_v4, %v6760_v29  ;;  %v1136_v56 = vmul.f32 %v3634_v26, %v6760_v29  ;;  %v1137_v46 = vmul.f32 %v6678_v43, %v6760_v29 }
 0x136   : > { %v1131_v23 = vadd.f32 %v1127_v59, %v6598_v19  ;;  %v1142_v41 = vmul.f32 %v6648_v53, %v6207_v8  ;;  %v1143_v32 = vmul.f32 %v6651_v4, %v6207_v8  ;;  %v1144_v48 = vmul.f32 %v3634_v26, %v6207_v8  ;;  %v3642_v59 = vld [vmem:[%s5669_s14 + $0x60] sm:$0xff] }
 0x137   : > { %v6776_v36 = vadd.f32 %v1134_v1, %v6607_v42  ;;  %v6779_v61 = vadd.f32 %v1135_v60, %v6610_v12  ;;  %v6782_v2 = vadd.f32 %v1136_v56, %v6613_v25  ;;  %v1145_v19 = vmul.f32 %v6678_v43, %v6207_v8  ;;  %v3643_v1 = vld [vmem:[%s5669_s14 + $0x68] sm:$0xff]  ;;  %v3644_v60 = vld [vmem:[%s5669_s14 + $0x70] sm:$0xff] }
 0x138   : > { %v6787_v14 = vadd.f32 %v1137_v46, %v6618_v13  ;;  %v1146_v51 = vadd.f32 %v1142_v41, %v6621_v10  ;;  %v1147_v42 = vadd.f32 %v1143_v32, %v6624_v17  ;;  %v1148_v34 = vadd.f32 %v1144_v48, %v6627_v3  ;;  %v3645_v32 = vld [vmem:[%s5669_s14 + $0x78] sm:$0x3]  ;;  %s6875_s14 = sld [smem:[#allocation6]] }
 0x139   : > { %v6792_v12 = vstv %s3639_s26  ;;  %v1160_v25 = vmul.f32 %v6648_v53, %v6251_v50  ;;  %v1161_v58 = vmul.f32 %v6651_v4, %v6251_v50  ;;  %v1162_v8 = vmul.f32 %v3634_v26, %v6251_v50 }
 0x13a   : > { %7633 = vst [vmem:[#allocation9_spill] sm:$0xff] %v6787_v14  ;;  %v1152_v13 = vmul.f32 %v6648_v53, %v6792_v12  ;;  %v1153_v10 = vmul.f32 %v6651_v4, %v6792_v12  ;;  %v1154_v17 = vmul.f32 %v3634_v26, %v6792_v12  ;;  %v1155_v3 = vmul.f32 %v6678_v43, %v6792_v12 }
 0x13b   : > { %v1149_v56 = vadd.f32 %v1145_v19, %v6654_v27  ;;  %v1163_v46 = vmul.f32 %v6678_v43, %v6251_v50  ;;  %v1164_v41 = vadd.f32 %v1160_v25, %v6659_v22  ;;  %v1165_v53 = vadd.f32 %v1161_v58, %v6662_v33 }
 0x13c   : > { %v6816_v4 = vadd.f32 %v1152_v13, %v6665_v52  ;;  %v6819_v26 = vadd.f32 %v1153_v10, %v6668_v39  ;;  %v6822_v48 = vadd.f32 %v1154_v17, %v6671_v54  ;;  %v1166_v14 = vadd.f32 %v1162_v8, %v6674_v49 }
 0x13d   : > { %v6826_v27 = vadd.f32 %v1155_v3, %v6681_v37  ;;  %v1175_v50 = vmul.f32 %v3642_v59, %v6308_v16  ;;  %v1176_v22 = vmul.f32 %v3643_v1, %v6308_v16  ;;  %v1177_v33 = vmul.f32 %v3644_v60, %v6308_v16 }
 0x13e   : > { %v1178_v52 = vmul.f32 %v3645_v32, %v6308_v16  ;;  %v1183_v43 = vmul.f32 %v3642_v59, %v6353_v21  ;;  %v1184_v39 = vmul.f32 %v3643_v1, %v6353_v21  ;;  %v1185_v54 = vmul.f32 %v3644_v60, %v6353_v21 }
 0x13f   : > { %7634 = vst [vmem:[#allocation10_spill] sm:$0xff] %v6826_v27  ;;  %v1167_v19 = vadd.f32 %v1163_v46, %v6700_v30  ;;  %v1179_v49 = vadd.f32 %v1175_v50, %v6706_v24  ;;  %v1180_v37 = vadd.f32 %v1176_v22, %v6718_v28  ;;  %v1186_v25 = vmul.f32 %v3645_v32, %v6353_v21 }
 0x140   : > { %v1181_v58 = vadd.f32 %v1177_v33, %v6724_v20  ;;  %v1182_v16 = vadd.f32 %v1178_v52, %v1113_v47  ;;  %v1187_v8 = vadd.f32 %v1183_v43, %v1128_v38  ;;  %v1188_v13 = vadd.f32 %v1184_v39, %v1129_v44  ;;  %v3648_v20 = vld [vmem:[%s5694_s19 + $0x60] sm:$0xff]  ;;  %v3649_v47 = vld [vmem:[%s5694_s19 + $0x68] sm:$0xff]  ;;  %v3650_v38 = vld [vmem:[%s5694_s19 + $0x70] sm:$0xff] }
 0x141   : > { %v1189_v10 = vadd.f32 %v1185_v54, %v1130_v62  ;;  %v1191_v17 = vmul.f32 %v3642_v59, %v6396_v40  ;;  %v1192_v30 = vmul.f32 %v3643_v1, %v6396_v40  ;;  %v1193_v3 = vmul.f32 %v3644_v60, %v6396_v40  ;;  %v3651_v33 = vld [vmem:[%s5694_s19 + $0x78] sm:$0x3] }
 0x142   : > { %v1194_v24 = vmul.f32 %v3645_v32, %v6396_v40  ;;  %v1199_v28 = vmul.f32 %v3642_v59, %v6440_v15  ;;  %v1200_v46 = vmul.f32 %v3643_v1, %v6440_v15  ;;  %v1201_v21 = vmul.f32 %v3644_v60, %v6440_v15 }
 0x143   : > { %v1190_v44 = vadd.f32 %v1186_v25, %v1131_v23  ;;  %v1195_v50 = vadd.f32 %v1191_v17, %v1146_v51  ;;  %v1196_v62 = vadd.f32 %v1192_v30, %v1147_v42  ;;  %v1202_v22 = vmul.f32 %v3645_v32, %v6440_v15 }
 0x144   : > { %v1197_v52 = vadd.f32 %v1193_v3, %v1148_v34  ;;  %v1198_v43 = vadd.f32 %v1194_v24, %v1149_v56  ;;  %v1203_v39 = vadd.f32 %v1199_v28, %v1164_v41  ;;  %v1204_v54 = vadd.f32 %v1200_v46, %v1165_v53  ;;  %v3657_v28 = vld [vmem:[%s5694_s19 + $0x3f8] sm:$0x3] }
 0x145   : > { %v1205_v40 = vadd.f32 %v1201_v21, %v1166_v14  ;;  %v1212_v59 = vmul.f32 %v3648_v20, %v6497_v55  ;;  %v1213_v1 = vmul.f32 %v3649_v47, %v6497_v55  ;;  %v1214_v60 = vmul.f32 %v3650_v38, %v6497_v55 }
 0x146   : > { %v1215_v27 = vmul.f32 %v3651_v33, %v6497_v55  ;;  %v1220_v23 = vmul.f32 %v3648_v20, %v6542_v5  ;;  %v1221_v51 = vmul.f32 %v3649_v47, %v6542_v5  ;;  %v1222_v15 = vmul.f32 %v3650_v38, %v6542_v5 }
 0x147   : > { %v1206_v42 = vadd.f32 %v1202_v22, %v1167_v19  ;;  %v1216_v34 = vadd.f32 %v1212_v59, %v1179_v49  ;;  %v1217_v56 = vadd.f32 %v1213_v1, %v1180_v37  ;;  %v1223_v14 = vmul.f32 %v3651_v33, %v6542_v5 }
 0x148   : > { %v1218_v41 = vadd.f32 %v1214_v60, %v1181_v58  ;;  %v1219_v53 = vadd.f32 %v1215_v27, %v1182_v16  ;;  %v1224_v32 = vadd.f32 %v1220_v23, %v1187_v8  ;;  %v1225_v25 = vadd.f32 %v1221_v51, %v1188_v13  ;;  %v3654_v58 = vld [vmem:[%s5694_s19 + $0x3e0] sm:$0xff]  ;;  %v3655_v27 = vld [vmem:[%s5694_s19 + $0x3e8] sm:$0xff]  ;;  %v3656_v16 = vld [vmem:[%s5694_s19 + $0x3f0] sm:$0xff]  ;;  %s6891_s19 = sld [smem:[#allocation6 + $0x1]] }
 0x149   : > { %v1226_v55 = vadd.f32 %v1222_v15, %v1189_v10  ;;  %v1228_v17 = vmul.f32 %v3648_v20, %v6585_v57  ;;  %v1229_v30 = vmul.f32 %v3649_v47, %v6585_v57  ;;  %v1230_v3 = vmul.f32 %v3650_v38, %v6585_v57 }
 0x14a   : > { %v1231_v19 = vmul.f32 %v3651_v33, %v6585_v57  ;;  %v1236_v49 = vmul.f32 %v3648_v20, %v6629_v7  ;;  %v1237_v37 = vmul.f32 %v3649_v47, %v6629_v7  ;;  %v1238_v5 = vmul.f32 %v3650_v38, %v6629_v7 }
 0x14b   : > { %v1227_v8 = vadd.f32 %v1223_v14, %v1190_v44  ;;  %v1232_v13 = vadd.f32 %v1228_v17, %v1195_v50  ;;  %v1233_v10 = vadd.f32 %v1229_v30, %v1196_v62  ;;  %v1239_v24 = vmul.f32 %v3651_v33, %v6629_v7 }
 0x14c   : > { %v1234_v46 = vadd.f32 %v1230_v3, %v1197_v52  ;;  %v1235_v21 = vadd.f32 %v1231_v19, %v1198_v43  ;;  %v1240_v22 = vadd.f32 %v1236_v49, %v1203_v39  ;;  %v1241_v59 = vadd.f32 %v1237_v37, %v1204_v54 }
 0x14d   : > { %v1242_v57 = vadd.f32 %v1238_v5, %v1205_v40  ;;  %v1250_v20 = vmul.f32 %v3654_v58, %v6684_v63  ;;  %v1251_v47 = vmul.f32 %v3655_v27, %v6684_v63  ;;  %v1252_v38 = vmul.f32 %v3656_v16, %v6684_v63  ;;  %v7635_v5 = vld [vmem:[#allocation8_spill] sm:$0xff] }
 0x14e   : > { %v1253_v44 = vmul.f32 %v3657_v28, %v6684_v63  ;;  %v1258_v50 = vmul.f32 %v3654_v58, %v6727_v6  ;;  %v1259_v7 = vmul.f32 %v3655_v27, %v6727_v6  ;;  %v1260_v62 = vmul.f32 %v3656_v16, %v6727_v6 }
 0x14f   : > { %v1243_v33 = vadd.f32 %v1239_v24, %v1206_v42  ;;  %v1254_v52 = vadd.f32 %v1250_v20, %v1216_v34  ;;  %v1255_v43 = vadd.f32 %v1251_v47, %v1217_v56  ;;  %v1261_v39 = vmul.f32 %v3657_v28, %v6727_v6 }
 0x150   : > { %v1256_v54 = vadd.f32 %v1252_v38, %v1218_v41  ;;  %v1257_v40 = vadd.f32 %v1253_v44, %v1219_v53  ;;  %v6882_v1 = vadd.f32 %v1258_v50, %v1224_v32  ;;  %v6884_v60 = vadd.f32 %v1259_v7, %v1225_v25 }
 0x151   : > { %v6886_v23 = vadd.f32 %v1260_v62, %v1226_v55  ;;  %v1266_v63 = vmul.f32 %v3654_v58, %v6760_v29  ;;  %v1267_v51 = vmul.f32 %v3655_v27, %v6760_v29  ;;  %v1268_v15 = vmul.f32 %v3656_v16, %v6760_v29 }
 0x152   : > { %v1269_v42 = vmul.f32 %v3657_v28, %v6760_v29  ;;  %v1274_v6 = vmul.f32 %v3654_v58, %v6792_v12  ;;  %v1275_v34 = vmul.f32 %v3655_v27, %v6792_v12  ;;  %v1276_v56 = vmul.f32 %v3656_v16, %v6792_v12 }
 0x153   : > { %v6901_v14 = vadd.f32 %v1261_v39, %v1227_v8  ;;  %v6903_v41 = vadd.f32 %v1266_v63, %v1232_v13  ;;  %v6905_v53 = vadd.f32 %v1267_v51, %v1233_v10  ;;  %v1277_v29 = vmul.f32 %v3657_v28, %v6792_v12 }
 0x154   : > { %v6908_v32 = vadd.f32 %v1268_v15, %v1234_v46  ;;  %v6910_v25 = vadd.f32 %v1269_v42, %v1235_v21  ;;  %v6912_v55 = vadd.f32 %v1274_v6, %v1240_v22  ;;  %v6914_v17 = vadd.f32 %v1275_v34, %v1241_v59 }
 0x155   : > { %v6916_v30 = vadd.f32 %v1276_v56, %v1242_v57  ;;  %v6918_v3 = vadd.f32 %v1277_v29, %v1243_v33  ;;  %v1283_v19 = vstv %s6875_s14  ;;  %v6931_v59 = vstv %s6897_s27 }
 0x156   : > { %v1284_v49 = vadd.f32 %v1283_v19, %v6709_v11  ;;  %v1285_v12 = vadd.f32 %v1283_v19, %v6712_v45  ;;  %v1286_v37 = vadd.f32 %v1283_v19, %v6715_v31  ;;  %v1287_v58 = vadd.f32 %v1283_v19, %v7635_v5 }
 0x157   : > { %v1292_v27 = vadd.f32 %v1283_v19, %v1254_v52  ;;  %v1293_v16 = vadd.f32 %v1283_v19, %v1255_v43  ;;  %v1294_v8 = vadd.f32 %v1283_v19, %v1256_v54  ;;  %v1295_v13 = vadd.f32 %v1283_v19, %v1257_v40  ;;  %v1335_v19 = vld [vmem:[%s1330_s1 + $0x8] sm:$0x1f] }
 0x158   : > { %v1288_v10 = vmax.f32 %v1284_v49, 0.0  ;;  %v1289_v24 = vmax.f32 %v1285_v12, 0.0  ;;  %v1290_v28 = vmax.f32 %v1286_v37, 0.0  ;;  %v1291_v46 = vmax.f32 %v1287_v58, 0.0 }
 0x159   : > { %v1296_v11 = vmax.f32 %v1292_v27, 0.0  ;;  %v1297_v21 = vmax.f32 %v1293_v16, 0.0  ;;  %v1298_v45 = vmax.f32 %v1294_v8, 0.0  ;;  %v1299_v22 = vmax.f32 %v1295_v13, 0.0 }
 0x15a   : > { %v1339_v31 = vstv %s6891_s19  ;;  %v6934_v57 = vstv %s6899_s28  ;;  %v1394_v5 = vadd.f32 %v6931_v59, %v6776_v36  ;;  %v1395_v16 = vadd.f32 %v6931_v59, %v6779_v61 }
 0x15b   : > { %v1300_v20 = vmax.f32 %v1288_v10, %v1296_v11  ;;  %v1301_v47 = vmax.f32 %v1289_v24, %v1297_v21  ;;  %v1302_v38 = vmax.f32 %v1290_v28, %v1298_v45  ;;  %v1303_v44 = vmax.f32 %v1291_v46, %v1299_v22 }
 0x15c   : > { %v1340_v50 = vadd.f32 %v1339_v31, %v6745_v35  ;;  %v1341_v7 = vadd.f32 %v1339_v31, %v6748_v0  ;;  %v1342_v62 = vadd.f32 %v1339_v31, %v6751_v18  ;;  %v1343_v33 = vadd.f32 %v1339_v31, %v6755_v9 }
 0x15d   : > { %v1309_v52 = vrot.slane %v1300_v20, 1  ;;  %v1310_v43 = vrot.slane %v1301_v47, 1  ;;  %v1312_v39 = vrot.slane %v1302_v38, 1  ;;  %v1314_v54 = vrot.slane %v1303_v44, 1 }
 0x15e   : > { %v1344_v40 = vmax.f32 %v1340_v50, 0.0  ;;  %v1345_v63 = vmax.f32 %v1341_v7, 0.0  ;;  %v1346_v51 = vmax.f32 %v1342_v62, 0.0  ;;  %v1347_v15 = vmax.f32 %v1343_v33, 0.0 }
 0x15f   : > { %v1311_v42 = vsel %vm1308_vm2, %v1309_v52, %v1310_v43  ;;  %v1313_v6 = vsel %vm1308_vm2, %v1310_v43, %v1312_v39  ;;  %v1315_v35 = vsel %vm1308_vm2, %v1312_v39, %v1314_v54  ;;  %v1323_v0 = vmax.f32 %v1303_v44, %v1314_v54 }
 0x160   : > { %v1320_v34 = vmax.f32 %v1300_v20, %v1311_v42  ;;  %v1321_v18 = vmax.f32 %v1301_v47, %v1313_v6  ;;  %v1322_v56 = vmax.f32 %v1302_v38, %v1315_v35  ;;  %v1348_v9 = vadd.f32 %v1339_v31, %v6882_v1 }
 0x161   : > { %v1349_v49 = vadd.f32 %v1339_v31, %v6884_v60  ;;  %v1350_v12 = vadd.f32 %v1339_v31, %v6886_v23  ;;  %v1351_v37 = vadd.f32 %v1339_v31, %v6901_v14  ;;  %v1396_v60 = vadd.f32 %v6931_v59, %v6782_v2  ;;  %v7638_v14 = vld [vmem:[#allocation9_spill] sm:$0xff] }
 0x162   : > { %v1325_v58 = vpack.c.bf16 %v1321_v18, %v1320_v34  ;;  %v1326_v1 = vpack.c.bf16 %v1323_v0, %v1322_v56  ;;  %v1352_v27 = vmax.f32 %v1348_v9, 0.0  ;;  %v1397_v24 = vadd.f32 %v6931_v59, %v7638_v14  ;;  %v7639_v56 = vld [vmem:[#allocation10_spill] sm:$0xff] }
 0x163   : > { %v1353_v8 = vmax.f32 %v1349_v49, 0.0  ;;  %v1354_v13 = vmax.f32 %v1350_v12, 0.0  ;;  %v1355_v10 = vmax.f32 %v1351_v37, 0.0  ;;  %v1398_v28 = vmax.f32 %v1394_v5, 0.0 }
 0x164   : > { %1331 = vst.msk [vmem:[%s1330_s1] sm:$0xff] %vm145_vm0, %v1325_v58  ;;  %v1336_v36 = vsel %vm6947_vm5, %v1326_v1, %v1335_v19  ;;  %v1356_v23 = vmax.f32 %v1344_v40, %v1352_v27  ;;  %v1399_v21 = vmax.f32 %v1395_v16, 0.0  ;;  %v1400_v22 = vmax.f32 %v1396_v60, 0.0 }
 0x165   : > { %1337 = vst [vmem:[%s1330_s1 + $0x8] sm:$0x1f] %v1336_v36  ;;  %v1357_v61 = vmax.f32 %v1345_v63, %v1353_v8  ;;  %v1358_v46 = vmax.f32 %v1346_v51, %v1354_v13  ;;  %v1359_v11 = vmax.f32 %v1347_v15, %v1355_v10  ;;  %v1401_v31 = vmax.f32 %v1397_v24, 0.0 }
 0x166   : > { %v1364_v45 = vrot.slane %v1356_v23, 1  ;;  %v1402_v2 = vadd.f32 %v6931_v59, %v6903_v41  ;;  %v1403_v44 = vadd.f32 %v6931_v59, %v6905_v53  ;;  %v1404_v50 = vadd.f32 %v6931_v59, %v6908_v32 }
 0x167   : > { %v1365_v20 = vrot.slane %v1357_v61, 1  ;;  %v1367_v47 = vrot.slane %v1358_v46, 1  ;;  %v1369_v38 = vrot.slane %v1359_v11, 1  ;;  %v1405_v7 = vadd.f32 %v6931_v59, %v6910_v25 }
 0x168   : > { %v1406_v62 = vmax.f32 %v1402_v2, 0.0  ;;  %v1447_v33 = vadd.f32 %v6934_v57, %v6816_v4  ;;  %v1407_v63 = vmax.f32 %v1403_v44, 0.0  ;;  %v1408_v32 = vmax.f32 %v1404_v50, 0.0 }
 0x169   : > { %v1366_v52 = vsel %vm1308_vm2, %v1364_v45, %v1365_v20  ;;  %v1368_v41 = vsel %vm1308_vm2, %v1365_v20, %v1367_v47  ;;  %v1370_v43 = vsel %vm1308_vm2, %v1367_v47, %v1369_v38  ;;  %v1378_v39 = vmax.f32 %v1359_v11, %v1369_v38 }
 0x16a   : > { %v1375_v54 = vmax.f32 %v1356_v23, %v1366_v52  ;;  %v1376_v40 = vmax.f32 %v1357_v61, %v1368_v41  ;;  %v1377_v53 = vmax.f32 %v1358_v46, %v1370_v43  ;;  %v1409_v51 = vmax.f32 %v1405_v7, 0.0 }
 0x16b   : > { %v1410_v15 = vmax.f32 %v1398_v28, %v1406_v62  ;;  %v1448_v25 = vadd.f32 %v6934_v57, %v6819_v26  ;;  %v1411_v6 = vmax.f32 %v1399_v21, %v1407_v63  ;;  %v1449_v35 = vadd.f32 %v6934_v57, %v6822_v48 }
 0x16c   : > { %v1382_v59 = vpack.c.bf16 %v1376_v40, %v1375_v54  ;;  %v1383_v4 = vpack.c.bf16 %v1378_v39, %v1377_v53  ;;  %v1389_v42 = vld [vmem:[%s1387_s13 + $0x8] sm:$0x1f]  ;;  %v1412_v0 = vmax.f32 %v1400_v22, %v1408_v32  ;;  %v1413_v34 = vmax.f32 %v1401_v31, %v1409_v51 }
 0x16d   : > { %v1418_v18 = vrot.slane %v1410_v15, 1  ;;  %v1450_v9 = vadd.f32 %v6934_v57, %v7639_v56  ;;  %v1419_v19 = vrot.slane %v1411_v6, 1  ;;  %v1451_v49 = vmax.f32 %v1447_v33, 0.0 }
 0x16e   : > { %1388 = vst.msk [vmem:[%s1387_s13] sm:$0xff] %vm145_vm0, %v1382_v59  ;;  %v1390_v26 = vsel %vm6947_vm5, %v1383_v4, %v1389_v42  ;;  %v1452_v12 = vmax.f32 %v1448_v25, 0.0  ;;  %v1421_v37 = vrot.slane %v1412_v0, 1  ;;  %v1423_v48 = vrot.slane %v1413_v34, 1 }
 0x16f   : > { %1391 = vst [vmem:[%s1387_s13 + $0x8] sm:$0x1f] %v1390_v26  ;;  %v1453_v5 = vmax.f32 %v1449_v35, 0.0  ;;  %v1454_v58 = vmax.f32 %v1450_v9, 0.0  ;;  %v1420_v1 = vsel %vm1308_vm2, %v1418_v18, %v1419_v19  ;;  %v1455_v27 = vadd.f32 %v6934_v57, %v6912_v55  ;;  %v4297_v26 = vld [vmem:[%s7620_s3 + $0x4] ss:$52 sps:$4 sm:$0xff] (%p590_p10)  }
 0x170   : > { %v1456_v16 = vadd.f32 %v6934_v57, %v6914_v17  ;;  %v1457_v8 = vadd.f32 %v6934_v57, %v6916_v30  ;;  %v1422_v13 = vsel %vm1308_vm2, %v1419_v19, %v1421_v37  ;;  %v1424_v10 = vsel %vm1308_vm2, %v1421_v37, %v1423_v48  ;;  %2370 = vmatprep.mubr.bf16.mxu0 (%p590_p10), %v4297_v26  ;;  %v1715_v26 = vld [vmem:[%s7621_s4 + $0x8] sm:$0xff] (%p590_p10) }
 0x171   : > { %v1429_v60 = vmax.f32 %v1410_v15, %v1420_v1  ;;  %v1432_v36 = vmax.f32 %v1413_v34, %v1423_v48  ;;  %v1430_v23 = vmax.f32 %v1411_v6, %v1422_v13  ;;  %v1431_v14 = vmax.f32 %v1412_v0, %v1424_v10 }
 0x172   : > { %v1458_v24 = vadd.f32 %v6934_v57, %v6918_v3  ;;  %v1459_v28 = vmax.f32 %v1455_v27, 0.0  ;;  %v1460_v61 = vmax.f32 %v1456_v16, 0.0  ;;  %v1461_v55 = vmax.f32 %v1457_v8, 0.0 }
 0x173   : > { %v1435_v46 = vpack.c.bf16 %v1430_v23, %v1429_v60  ;;  %v1436_v17 = vpack.c.bf16 %v1432_v36, %v1431_v14  ;;  %v7640_v32 = vmov (%p590_p10), 0  }
 0x174   : > { %v1462_v11 = vmax.f32 %v1458_v24, 0.0  ;;  %v1463_v21 = vmax.f32 %v1451_v49, %v1459_v28  ;;  %v1464_v30 = vmax.f32 %v1452_v12, %v1460_v61  ;;  %v1465_v45 = vmax.f32 %v1453_v5, %v1461_v55  ;;  %4293 = vset.pattern.permute.xlu0 (%p590_p10), %v7640_v32  ;;  %4294 = vset.pattern.permute.xlu1 (%p590_p10), %v7640_v32  ;;  %v4300_v49 = vld [vmem:[%s7620_s3 + $0xc] ss:$52 sps:$4 sm:$0xff] (%p590_p10)   ;;  %v4298_v61 = vld [vmem:[%s7620_s3 + $0x8] ss:$52 sps:$4 sm:$0xff] (%p590_p10)  }
 0x175   : > { %1441 = vst.msk [vmem:[%s1440_s18] sm:$0xff] %vm145_vm0, %v1435_v46  ;;  %2467 = vmatprep.mubr.bf16.mxu1 (%p590_p10), %v4300_v49  ;;  %v4295_v28 = vld [vmem:[%s7620_s3] ss:$52 sps:$4 sm:$0xff] (%p590_p10)  }
 0x176   : > { %v1442_v22 = vld [vmem:[%s1440_s18 + $0x8] sm:$0x1f]  ;;  %v1466_v31 = vmax.f32 %v1454_v58, %v1462_v11  ;;  %v1471_v2 = vrot.slane %v1463_v21, 1  ;;  %v1472_v57 = vrot.slane %v1464_v30, 1  ;;  %v1474_v20 = vrot.slane %v1465_v45, 1 }
 0x177   : > { %v1443_v3 = vsel %vm6947_vm5, %v1436_v17, %v1442_v22  ;;  %v4301_v55 = vld [vmem:[%s7620_s3 + $0x6c] ss:$52 sps:$4 sm:$0xff] (%p590_p10)   ;;  %v4304_v46 = vld [vmem:[%s7620_s3 + $0x74] ss:$52 sps:$4 sm:$0xff] (%p590_p10)   ;;  %v4306_v22 = vld [vmem:[%s7620_s3 + $0x70] ss:$52 sps:$4 sm:$0xff] (%p590_p10)  }
 0x178   : > { %1444 = vst [vmem:[%s1440_s18 + $0x8] sm:$0x1f] %v1443_v3  ;;  %v1476_v47 = vrot.slane %v1466_v31, 1  ;;  %v1473_v38 = vsel %vm1308_vm2, %v1471_v2, %v1472_v57  ;;  %v1475_v44 = vsel %vm1308_vm2, %v1472_v57, %v1474_v20  ;;  %v4321_v49 = vld [vmem:[%s7620_s3 + $0x1a0] ss:$52 sps:$4 sm:$0xff] (%p590_p10)  }
 0x179   : > { %v1482_v7 = vmax.f32 %v1463_v21, %v1473_v38  ;;  %v1483_v62 = vmax.f32 %v1464_v30, %v1475_v44 }
 0x17a   : > { %v1477_v50 = vsel %vm1308_vm2, %v1474_v20, %v1476_v47  ;;  %v1485_v33 = vmax.f32 %v1466_v31, %v1476_v47  ;;  %v4307_v20 = vld [vmem:[%s7620_s3 + $0xd4] ss:$52 sps:$4 sm:$0xff] (%p590_p10)   ;;  %v4310_v47 = vld [vmem:[%s7620_s3 + $0xdc] ss:$52 sps:$4 sm:$0xff] (%p590_p10)  }
 0x17b   : > { %v1484_v52 = vmax.f32 %v1465_v45, %v1477_v50  ;;  %v1488_v41 = vpack.c.bf16 %v1483_v62, %v1482_v7  ;;  %592 = sbr.rel (!%p590_p10) target bundleno = 190 (0xbe), region = 64  ;;  %v4303_v45 = vld [vmem:[%s7620_s3 + $0x68] ss:$52 sps:$4 sm:$0xff] (%p590_p10)   ;;  %v4309_v62 = vld [vmem:[%s7620_s3 + $0xd0] ss:$52 sps:$4 sm:$0xff] (%p590_p10)  }
 0x17d   : > { %v1489_v43 = vpack.c.bf16 %v1485_v33, %v1484_v52  ;;  %1494 = vst.msk [vmem:[%s1493_s22] sm:$0xff] %vm145_vm0, %v1488_v41  ;;  %v4312_v33 = vld [vmem:[%s7620_s3 + $0xd8] ss:$52 sps:$4 sm:$0xff] (%p590_p10)  }
 0x17f   : > { %v1495_v39 = vld [vmem:[%s1493_s22 + $0x8] sm:$0x1f] }
 0x180   : > { %v1496_v54 = vsel %vm6947_vm5, %v1489_v43, %v1495_v39 }
 0x181   : > { %1497 = vst [vmem:[%s1493_s22 + $0x8] sm:$0x1f] %v1496_v54  ;;  %v4313_v54 = vld [vmem:[%s7620_s3 + $0x13c] ss:$52 sps:$4 sm:$0xff] (%p590_p10)  }
 0x188   :  { %v1618_v40 = vld [vmem:[#allocation3 + $0x40] sm:$0xff]  ;;  %v1619_v15 = vld [vmem:[#allocation3 + $0x48] sm:$0xff]  ;;  %v1620_v4 = vld [vmem:[#allocation3 + $0x50] sm:$0xff] }
 0x189   :  { %v1610_v53 = vld [vmem:[#allocation3] sm:$0xff]  ;;  %3801 = vmatprep.subr.bf16.mxu0 %v1618_v40  ;;  %v1635_v29 = vld [vmem:[#allocation3 + $0xc8] sm:$0xff]  ;;  %v1636_v42 = vld [vmem:[#allocation3 + $0xd0] sm:$0xff] }
 0x18a   :  { %v1634_v63 = vld [vmem:[#allocation3 + $0xc0] sm:$0xff]  ;;  %3802 = vmatpush3.bf16.msra.mxu0 %v1610_v53  ;;  %v1611_v25 = vld [vmem:[#allocation3 + $0x8] sm:$0xff]  ;;  %v1612_v6 = vld [vmem:[#allocation3 + $0x10] sm:$0xff] }
 0x18b   :  { %3865 = vmatprep.subr.bf16.mxu1 %v1634_v63  ;;  %v1626_v51 = vld [vmem:[#allocation3 + $0x80] sm:$0xff]  ;;  %3803 = vmatprep.subr.bf16.mxu0 %v1619_v15  ;;  %v1627_v59 = vld [vmem:[#allocation3 + $0x88] sm:$0xff]  ;;  %v1628_v35 = vld [vmem:[#allocation3 + $0x90] sm:$0xff] }
 0x18c   :  { %3866 = vmatpush3.bf16.msra.mxu1 %v1626_v51  ;;  %v1621_v0 = vld [vmem:[#allocation3 + $0x58] sm:$0xff]  ;;  %v1622_v9 = vld [vmem:[#allocation3 + $0x60] sm:$0xff]  ;;  %v1623_v48 = vld [vmem:[#allocation3 + $0x68] sm:$0xff] }
 0x18d   :  { %3867 = vmatprep.subr.bf16.mxu1 %v1635_v29  ;;  %v1637_v34 = vld [vmem:[#allocation3 + $0xd8] sm:$0xff]  ;;  %v1638_v19 = vld [vmem:[#allocation3 + $0xe0] sm:$0xff]  ;;  %v1639_v5 = vld [vmem:[#allocation3 + $0xe8] sm:$0xff] }
 0x18e   :  { %3804 = vmatpush3.bf16.msra.mxu0 %v1611_v25  ;;  %v1613_v18 = vld [vmem:[#allocation3 + $0x18] sm:$0xff]  ;;  %v1614_v12 = vld [vmem:[#allocation3 + $0x20] sm:$0xff]  ;;  %v1615_v58 = vld [vmem:[#allocation3 + $0x28] sm:$0xff] }
 0x18f   :  { %3805 = vmatprep.subr.bf16.mxu0 %v1620_v4  ;;  %v1629_v56 = vld [vmem:[#allocation3 + $0x98] sm:$0xff]  ;;  %v1630_v37 = vld [vmem:[#allocation3 + $0xa0] sm:$0xff]  ;;  %v1631_v1 = vld [vmem:[#allocation3 + $0xa8] sm:$0xff] }
 0x190   :  { %3868 = vmatpush3.bf16.msra.mxu1 %v1627_v59  ;;  %v1624_v27 = vld [vmem:[#allocation3 + $0x70] sm:$0xff]  ;;  %v1625_v10 = vld [vmem:[#allocation3 + $0x78] sm:$0xff]  ;;  %v1650_v14 = vld [vmem:[#allocation3 + $0x140] sm:$0xff] }
 0x191   :  { %3869 = vmatprep.subr.bf16.mxu1 %v1636_v42  ;;  %v1640_v16 = vld [vmem:[#allocation3 + $0xf0] sm:$0xff]  ;;  %v1641_v60 = vld [vmem:[#allocation3 + $0xf8] sm:$0xff]  ;;  %v1666_v24 = vld [vmem:[#allocation3 + $0x1c0] sm:$0xff] }
 0x192   :  { %3806 = vmatpush3.bf16.msra.mxu0 %v1612_v6  ;;  %v1616_v8 = vld [vmem:[#allocation3 + $0x30] sm:$0xff]  ;;  %v1617_v36 = vld [vmem:[#allocation3 + $0x38] sm:$0xff]  ;;  %v1642_v17 = vld [vmem:[#allocation3 + $0x100] sm:$0xff] }
 0x193   :  { %3807 = vmatprep.subr.bf16.mxu0 %v1621_v0  ;;  %v1632_v13 = vld [vmem:[#allocation3 + $0xb0] sm:$0xff]  ;;  %v1633_v23 = vld [vmem:[#allocation3 + $0xb8] sm:$0xff]  ;;  %v1658_v11 = vld [vmem:[#allocation3 + $0x180] sm:$0xff] }
 0x194   :  { %3870 = vmatpush3.bf16.msra.mxu1 %v1628_v35  ;;  %v1651_v21 = vld [vmem:[#allocation3 + $0x148] sm:$0xff]  ;;  %v1652_v3 = vld [vmem:[#allocation3 + $0x150] sm:$0xff]  ;;  %v1653_v50 = vld [vmem:[#allocation3 + $0x158] sm:$0xff] }
 0x195   :  { %3871 = vmatprep.subr.bf16.mxu1 %v1637_v34  ;;  %v1667_v30 = vld [vmem:[#allocation3 + $0x1c8] sm:$0xff]  ;;  %v1668_v57 = vld [vmem:[#allocation3 + $0x1d0] sm:$0xff]  ;;  %v1669_v7 = vld [vmem:[#allocation3 + $0x1d8] sm:$0xff] }
 0x196   :  { %3808 = vmatpush3.bf16.msra.mxu0 %v1613_v18  ;;  %v1643_v31 = vld [vmem:[#allocation3 + $0x108] sm:$0xff]  ;;  %v1644_v38 = vld [vmem:[#allocation3 + $0x110] sm:$0xff]  ;;  %v1645_v52 = vld [vmem:[#allocation3 + $0x118] sm:$0xff] }
 0x197   :  { %3809 = vmatprep.subr.bf16.mxu0 %v1622_v9  ;;  %v1659_v2 = vld [vmem:[#allocation3 + $0x188] sm:$0xff]  ;;  %v1660_v44 = vld [vmem:[#allocation3 + $0x190] sm:$0xff]  ;;  %v1661_v41 = vld [vmem:[#allocation3 + $0x198] sm:$0xff] }
 0x198   :  { %3872 = vmatpush3.bf16.msra.mxu1 %v1629_v56  ;;  %v1654_v43 = vld [vmem:[#allocation3 + $0x160] sm:$0xff]  ;;  %v1655_v32 = vld [vmem:[#allocation3 + $0x168] sm:$0xff]  ;;  %v1656_v6 = vld [vmem:[#allocation3 + $0x170] sm:$0xff] }
 0x199   :  { %3873 = vmatprep.subr.bf16.mxu1 %v1638_v19  ;;  %v1670_v39 = vld [vmem:[#allocation3 + $0x1e0] sm:$0xff]  ;;  %v1671_v51 = vld [vmem:[#allocation3 + $0x1e8] sm:$0xff]  ;;  %v1672_v35 = vld [vmem:[#allocation3 + $0x1f0] sm:$0xff] }
 0x19a   :  { %3810 = vmatpush3.bf16.msra.mxu0 %v1614_v12  ;;  %v4316_v40 = vld [vmem:[%s7620_s3 + $0x144] ss:$52 sps:$4 sm:$0xff]   ;;  %v4318_v25 = vld [vmem:[%s7620_s3 + $0x140] ss:$52 sps:$4 sm:$0xff]   ;;  %v1647_v4 = vld [vmem:[#allocation3 + $0x128] sm:$0xff] }
 0x19b   :  { %3811 = vmatprep.subr.bf16.mxu0 %v1623_v48  ;;  %v1646_v53 = vld [vmem:[#allocation3 + $0x120] sm:$0xff]  ;;  %v4315_v29 = vld [vmem:[%s7620_s3 + $0x138] ss:$52 sps:$4 sm:$0xff]   ;;  %v1648_v34 = vld [vmem:[#allocation3 + $0x130] sm:$0xff] }
 0x19c   :  { %3874 = vmatpush3.bf16.msra.mxu1 %v1630_v37  ;;  %v1662_v63 = vld [vmem:[#allocation3 + $0x1a0] sm:$0xff]  ;;  %v1663_v42 = vld [vmem:[#allocation3 + $0x1a8] sm:$0xff]  ;;  %v1664_v18 = vld [vmem:[#allocation3 + $0x1b0] sm:$0xff] }
 0x19d   :  { %3875 = vmatprep.subr.bf16.mxu1 %v1639_v5  ;;  %v1714_v15 = vld [vmem:[%s7621_s4] sm:$0xff]  ;;  %v1657_v56 = vld [vmem:[#allocation3 + $0x178] sm:$0xff]  ;;  %v1716_v19 = vld [vmem:[%s7621_s4 + $0x10] sm:$0xff] }
 0x19e   :  { %3812 = vmatpush3.bf16.msra.mxu0 %v1615_v58  ;;  %v4319_v59 = vld [vmem:[%s7620_s3 + $0x1a4] ss:$52 sps:$4 sm:$0xff]   ;;  %1732 = vperm.xlu0 %4293, %v1714_v15   ;;  %v4322_v0 = vld [vmem:[%s7620_s3 + $0x1ac] ss:$52 sps:$4 sm:$0xff]   ;;  %v4324_v12 = vld [vmem:[%s7620_s3 + $0x1a8] ss:$52 sps:$4 sm:$0xff]  }
 0x19f   :  { %3813 = vmatprep.subr.bf16.mxu0 %v1624_v27  ;;  %v1673_v9 = vld [vmem:[#allocation3 + $0x1f8] sm:$0xff]  ;;  %v4325_v5 = vld [vmem:[%s7620_s3 + $0x20c] ss:$52 sps:$4 sm:$0xff]   ;;  %1742 = vperm.xlu1 %4294, %v1716_v19   ;;  %v4328_v27 = vld [vmem:[%s7620_s3 + $0x214] ss:$52 sps:$4 sm:$0xff]  }
 0x1a0   :  { %3876 = vmatpush3.bf16.msra.mxu1 %v1631_v1  ;;  %v1649_v37 = vld [vmem:[#allocation3 + $0x138] sm:$0xff]  ;;  %v1682_v58 = vld [vmem:[#allocation3 + $0x240] sm:$0xff]  ;;  %v1676_v15 = vld [vmem:[#allocation3 + $0x210] sm:$0xff] }
 0x1a1   :  { %3877 = vmatprep.subr.bf16.mxu1 %v1640_v16  ;;  %v1665_v48 = vld [vmem:[#allocation3 + $0x1b8] sm:$0xff]  ;;  %v1698_v1 = vld [vmem:[#allocation3 + $0x2c0] sm:$0xff]  ;;  %v1687_v19 = vld [vmem:[#allocation3 + $0x268] sm:$0xff] }
 0x1a2   :  { %3814 = vmatpush3.bf16.msra.mxu0 %v1616_v8  ;;  %1737 = vperm.xlu0 %4293, %v1715_v26   ;;  %v1717_v16 = vld [vmem:[%s7621_s4 + $0x18] sm:$0xff]  ;;  %v1718_v8 = vld [vmem:[%s7621_s4 + $0x20] sm:$0xff] }
 0x1a3   :  { %3815 = vmatprep.subr.bf16.mxu0 %v1625_v10  ;;  %1747 = vperm.xlu1 %4294, %v1717_v16   ;;  %v1720_v10 = vld [vmem:[%s7621_s4 + $0x30] sm:$0xff]  ;;  %v1694_v26 = vld [vmem:[#allocation3 + $0x2a0] sm:$0xff] }
 0x1a4   :  { %3878 = vmatpush3.bf16.msra.mxu1 %v1632_v13  ;;  %v1719_v13 = vld [vmem:[%s7621_s4 + $0x28] sm:$0xff]  ;;  %v4370_v16 = vld [vmem:[%s7620_s3 + $0x1bc] ss:$52 sps:$4 sm:$0xff]  }
 0x1a5   :  { %3879 = vmatprep.subr.bf16.mxu1 %v1641_v60  ;;  %v4327_v60 = vld [vmem:[%s7620_s3 + $0x208] ss:$52 sps:$4 sm:$0xff]  }
 0x1a6   :  { %3816 = vmatpush3.bf16.msra.mxu0 %v1617_v36  ;;  %1752 = vperm.xlu0 %4293, %v1718_v8   ;;  %v4330_v36 = vld [vmem:[%s7620_s3 + $0x210] ss:$52 sps:$4 sm:$0xff]  }
 0x1a7   :  { %3929 = vmatprep.subr.bf16.mxu0 %v1650_v14  ;;  %v4334_v14 = vld [vmem:[%s7620_s3 + $0x27c] ss:$52 sps:$4 sm:$0xff]   ;;  %1757 = vperm.xlu1 %4294, %v1719_v13  }
 0x1a8   :  { %3880 = vmatpush3.bf16.msra.mxu1 %v1633_v23  ;;  %v4331_v23 = vld [vmem:[%s7620_s3 + $0x274] ss:$52 sps:$4 sm:$0xff]  }
 0x1a9   :  { %3993 = vmatprep.subr.bf16.mxu1 %v1666_v24  ;;  %2371 = vmatmul.mubr.bf16.vlgmr.msra.gmra.mrb[0].mxu0 %v4295_v28  ;;  %v1721_v24 = vld [vmem:[%s7621_s4 + $0x38] sm:$0xff]  ;;  %v1722_v28 = vld [vmem:[%s7621_s4 + $0x40] sm:$0xff]  ;;  %v1680_v8 = vld [vmem:[#allocation3 + $0x230] sm:$0xff] }
 0x1aa   :  { %2378 = vmatprep.mubr.bf16.mxu0 %v4301_v55  ;;  %3930 = vmatpush3.bf16.msra.mxu0 %v1642_v17  ;;  %v1723_v55 = vld [vmem:[%s7621_s4 + $0x48] sm:$0xff]  ;;  %v4337_v17 = vld [vmem:[%s7620_s3 + $0x2dc] ss:$52 sps:$4 sm:$0xff]  }
 0x1ab   :  { %2468 = vmatmul.mubr.bf16.vlgmr.msra.gmra.mrb[0].mxu1 %v4298_v61  ;;  %3931 = vmatprep.subr.bf16.mxu0 %v1651_v21  ;;  %v4333_v61 = vld [vmem:[%s7620_s3 + $0x270] ss:$52 sps:$4 sm:$0xff]  }
 0x1ac   :  { %2475 = vmatprep.mubr.bf16.mxu1 %v4304_v46  ;;  %3994 = vmatpush3.bf16.msra.mxu1 %v1658_v11  ;;  %v4336_v46 = vld [vmem:[%s7620_s3 + $0x278] ss:$52 sps:$4 sm:$0xff]   ;;  %v1724_v11 = vld [vmem:[%s7621_s4 + $0x50] sm:$0xff] }
 0x1ad   :  { %3995 = vmatprep.subr.bf16.mxu1 %v1667_v30  ;;  %1762 = vperm.xlu0 %4293, %v1720_v10   ;;  %v4340_v21 = vld [vmem:[%s7620_s3 + $0x2e4] ss:$52 sps:$4 sm:$0xff]   ;;  %v1696_v13 = vld [vmem:[#allocation3 + $0x2b0] sm:$0xff] }
 0x1ae   :  { %3932 = vmatpush3.bf16.msra.mxu0 %v1643_v31  ;;  %1767 = vperm.xlu1 %4294, %v1721_v24   ;;  %v1725_v30 = vld [vmem:[%s7621_s4 + $0x58] sm:$0xff]  ;;  %v1727_v31 = vld [vmem:[%s7621_s4 + $0x68] sm:$0xff] }
 0x1af   :  { %3933 = vmatprep.subr.bf16.mxu0 %v1652_v3  ;;  %v4342_v3 = vld [vmem:[%s7620_s3 + $0x2e0] ss:$52 sps:$4 sm:$0xff]   ;;  %v1689_v10 = vld [vmem:[#allocation3 + $0x278] sm:$0xff] }
 0x1b0   :  { %3996 = vmatpush3.bf16.msra.mxu1 %v1659_v2  ;;  %v1728_v2 = vld [vmem:[%s7621_s4 + $0x70] sm:$0xff]  ;;  %v4372_v24 = vld [vmem:[%s7620_s3 + $0x1b8] ss:$52 sps:$4 sm:$0xff]  }
 0x1b1   :  { %3997 = vmatprep.subr.bf16.mxu1 %v1668_v57  ;;  %2379 = vmatmul.mubr.bf16.gmra.mrb[4].mxu0 %v4303_v45  ;;  %v1726_v45 = vld [vmem:[%s7621_s4 + $0x60] sm:$0xff]  ;;  %v4345_v57 = vld [vmem:[%s7620_s3 + $0x14] ss:$52 sps:$4 sm:$0xff]  }
 0x1b2   :  { %2386 = vmatprep.mubr.bf16.mxu0 %v4307_v20  ;;  %3934 = vmatpush3.bf16.msra.mxu0 %v1644_v38  ;;  %v4348_v20 = vld [vmem:[%s7620_s3 + $0x1c] ss:$52 sps:$4 sm:$0xff]  }
 0x1b3   :  { %2476 = vmatmul.mubr.bf16.gmra.mrb[4].mxu1 %v4306_v22  ;;  %3935 = vmatprep.subr.bf16.mxu0 %v1653_v50  ;;  %v4339_v22 = vld [vmem:[%s7620_s3 + $0x2d8] ss:$52 sps:$4 sm:$0xff]   ;;  %v4343_v38 = vld [vmem:[%s7620_s3 + $0x10] ss:$52 sps:$4 sm:$0xff]  }
 0x1b4   :  { %2483 = vmatprep.mubr.bf16.mxu1 %v4310_v47  ;;  %3998 = vmatpush3.bf16.msra.mxu1 %v1660_v44  ;;  %v1729_v47 = vld [vmem:[%s7621_s4 + $0x78] sm:$0xff] }
 0x1b5   :  { %3999 = vmatprep.subr.bf16.mxu1 %v1669_v7  ;;  %1772 = vperm.xlu0 %4293, %v1722_v28   ;;  %v4346_v44 = vld [vmem:[%s7620_s3 + $0x18] ss:$52 sps:$4 sm:$0xff]   ;;  %v4349_v50 = vld [vmem:[%s7620_s3 + $0x7c] ss:$52 sps:$4 sm:$0xff]   ;;  %v1706_v28 = vld [vmem:[#allocation3 + $0x300] sm:$0xff] }
 0x1b6   :  { %3936 = vmatpush3.bf16.msra.mxu0 %v1645_v52  ;;  %1777 = vperm.xlu1 %4294, %v1723_v55   ;;  %v4352_v7 = vld [vmem:[%s7620_s3 + $0x84] ss:$52 sps:$4 sm:$0xff]   ;;  %v1683_v52 = vld [vmem:[#allocation3 + $0x248] sm:$0xff] }
 0x1b7   :  { %3937 = vmatprep.subr.bf16.mxu0 %v1654_v43  ;;  %v4351_v43 = vld [vmem:[%s7620_s3 + $0x78] ss:$52 sps:$4 sm:$0xff]  }
 0x1b8   :  { %4000 = vmatpush3.bf16.msra.mxu1 %v1661_v41  ;;  %v1699_v41 = vld [vmem:[#allocation3 + $0x2c8] sm:$0xff]  ;;  %v4376_v55 = vld [vmem:[%s7620_s3 + $0x224] ss:$52 sps:$4 sm:$0xff]  }
 0x1b9   :  { %4001 = vmatprep.subr.bf16.mxu1 %v1670_v39  ;;  %2387 = vmatmul.mubr.bf16.gmra.mrb[8].mxu0 %v4309_v62  ;;  %v1674_v62 = vld [vmem:[#allocation3 + $0x200] sm:$0xff] }
 0x1ba   :  { %2394 = vmatprep.mubr.bf16.mxu0 %v4313_v54  ;;  %3938 = vmatpush3.bf16.msra.mxu0 %v1646_v53  ;;  %v4354_v39 = vld [vmem:[%s7620_s3 + $0x80] ss:$52 sps:$4 sm:$0xff]   ;;  %v4355_v54 = vld [vmem:[%s7620_s3 + $0xe4] ss:$52 sps:$4 sm:$0xff]   ;;  %v1691_v53 = vld [vmem:[#allocation3 + $0x288] sm:$0xff] }
 0x1bb   :  { %2484 = vmatmul.mubr.bf16.gmra.mrb[8].mxu1 %v4312_v33  ;;  %3939 = vmatprep.subr.bf16.mxu0 %v1655_v32  ;;  %v1690_v33 = vld [vmem:[#allocation3 + $0x280] sm:$0xff]  ;;  %v1700_v32 = vld [vmem:[#allocation3 + $0x2d0] sm:$0xff] }
 0x1bc   :  { %2491 = vmatprep.mubr.bf16.mxu1 %v4316_v40  ;;  %4002 = vmatpush3.bf16.msra.mxu1 %v1662_v63  ;;  %v1675_v40 = vld [vmem:[#allocation3 + $0x208] sm:$0xff]  ;;  %v1684_v63 = vld [vmem:[#allocation3 + $0x250] sm:$0xff] }
 0x1bd   :  { %4003 = vmatprep.subr.bf16.mxu1 %v1671_v51  ;;  %1782 = vperm.xlu0 %4293, %v1724_v11   ;;  %v4358_v51 = vld [vmem:[%s7620_s3 + $0xec] ss:$52 sps:$4 sm:$0xff]   ;;  %v4379_v11 = vld [vmem:[%s7620_s3 + $0x284] ss:$52 sps:$4 sm:$0xff]  }
 0x1be   :  { %3940 = vmatpush3.bf16.msra.mxu0 %v1647_v4  ;;  %1787 = vperm.xlu1 %4294, %v1725_v30   ;;  %v1677_v4 = vld [vmem:[#allocation3 + $0x218] sm:$0xff]  ;;  %v4381_v30 = vld [vmem:[%s7620_s3 + $0x280] ss:$52 sps:$4 sm:$0xff]  }
 0x1bf   :  { %3941 = vmatprep.subr.bf16.mxu0 %v1656_v6  ;;  %v4360_v6 = vld [vmem:[%s7620_s3 + $0xe8] ss:$52 sps:$4 sm:$0xff]  }
 0x1c0   :  { %4004 = vmatpush3.bf16.msra.mxu1 %v1663_v42  ;;  %v4357_v42 = vld [vmem:[%s7620_s3 + $0xe0] ss:$52 sps:$4 sm:$0xff]  }
 0x1c1   :  { %4005 = vmatprep.subr.bf16.mxu1 %v1672_v35  ;;  %2395 = vmatmul.mubr.bf16.gmra.mrb[12].mxu0 %v4315_v29  ;;  %v1692_v29 = vld [vmem:[#allocation3 + $0x290] sm:$0xff]  ;;  %v1693_v35 = vld [vmem:[#allocation3 + $0x298] sm:$0xff] }
 0x1c2   :  { %2402 = vmatprep.mubr.bf16.mxu0 %v4319_v59  ;;  %3942 = vmatpush3.bf16.msra.mxu0 %v1648_v34  ;;  %v1701_v59 = vld [vmem:[#allocation3 + $0x2d8] sm:$0xff]  ;;  %v4364_v34 = vld [vmem:[%s7620_s3 + $0x154] ss:$52 sps:$4 sm:$0xff]  }
 0x1c3   :  { %2492 = vmatmul.mubr.bf16.gmra.mrb[12].mxu1 %v4318_v25  ;;  %3943 = vmatprep.subr.bf16.mxu0 %v1657_v56  ;;  %v1685_v25 = vld [vmem:[#allocation3 + $0x258] sm:$0xff]  ;;  %v1702_v56 = vld [vmem:[#allocation3 + $0x2e0] sm:$0xff] }
 0x1c4   :  { %2499 = vmatprep.mubr.bf16.mxu1 %v4322_v0  ;;  %4006 = vmatpush3.bf16.msra.mxu1 %v1664_v18  ;;  %v4361_v0 = vld [vmem:[%s7620_s3 + $0x14c] ss:$52 sps:$4 sm:$0xff]  }
 0x1c5   :  { %4007 = vmatprep.subr.bf16.mxu1 %v1673_v9  ;;  %1792 = vperm.xlu0 %4293, %v1726_v45   ;;  %v1686_v18 = vld [vmem:[#allocation3 + $0x260] sm:$0xff]  ;;  %v4384_v45 = vld [vmem:[%s7620_s3 + $0x288] ss:$52 sps:$4 sm:$0xff]  }
 0x1c6   :  { %3944 = vmatpush3.bf16.msra.mxu0 %v1649_v37  ;;  %1797 = vperm.xlu1 %4294, %v1727_v31   ;;  %v1678_v9 = vld [vmem:[#allocation3 + $0x220] sm:$0xff]  ;;  %v4363_v37 = vld [vmem:[%s7620_s3 + $0x148] ss:$52 sps:$4 sm:$0xff]  }
 0x1c7   :  { %4057 = vmatprep.subr.bf16.mxu0 %v1682_v58  ;;  %v1688_v58 = vld [vmem:[#allocation3 + $0x270] sm:$0xff] }
 0x1c8   :  { %4008 = vmatpush3.bf16.msra.mxu1 %v1665_v48  ;;  %v1695_v48 = vld [vmem:[#allocation3 + $0x2a8] sm:$0xff] }
 0x1c9   :  { %4121 = vmatprep.subr.bf16.mxu1 %v1698_v1  ;;  %2403 = vmatmul.mubr.bf16.gmra.mrb[16].mxu0 %v4321_v49  ;;  %v1703_v49 = vld [vmem:[#allocation3 + $0x2e8] sm:$0xff]  ;;  %v1704_v1 = vld [vmem:[#allocation3 + $0x2f0] sm:$0xff] }
 0x1ca   :  { %2410 = vmatprep.mubr.bf16.mxu0 %v4325_v5  ;;  %1802 = vperm.xlu0 %4293, %v1728_v2   ;;  %v4366_v5 = vld [vmem:[%s7620_s3 + $0x150] ss:$52 sps:$4 sm:$0xff]   ;;  %v4388_v31 = vld [vmem:[%s7620_s3 + $0x2f4] ss:$52 sps:$4 sm:$0xff]  }
 0x1cb   :  { %2500 = vmatmul.mubr.bf16.gmra.mrb[16].mxu1 %v4324_v12  ;;  %1807 = vperm.xlu1 %4294, %v1729_v47   ;;  %v1679_v12 = vld [vmem:[#allocation3 + $0x228] sm:$0xff]  ;;  %v4391_v47 = vld [vmem:[%s7620_s3 + $0x20] ss:$52 sps:$4 sm:$0xff]  }
 0x1cc   :  { %2507 = vmatprep.mubr.bf16.mxu1 %v4328_v27  ;;  %v4367_v27 = vld [vmem:[%s7620_s3 + $0x1b4] ss:$52 sps:$4 sm:$0xff]  }
 0x1cd   :  { %v4387_v2 = vld [vmem:[%s7620_s3 + $0x2e8] ss:$52 sps:$4 sm:$0xff]  }
 0x1d1   :  { %2411 = vmatmul.mubr.bf16.gmra.mrb[20].mxu0 %v4327_v60  ;;  %v1705_v60 = vld [vmem:[#allocation3 + $0x2f8] sm:$0xff] }
 0x1d2   :  { %2418 = vmatprep.mubr.bf16.mxu0 %v4331_v23  ;;  %v1697_v23 = vld [vmem:[#allocation3 + $0x2b8] sm:$0xff] }
 0x1d3   :  { %2508 = vmatmul.mubr.bf16.gmra.mrb[20].mxu1 %v4330_v36  ;;  %v1681_v36 = vld [vmem:[#allocation3 + $0x238] sm:$0xff] }
 0x1d4   :  { %2515 = vmatprep.mubr.bf16.mxu1 %v4334_v14  ;;  %v4369_v14 = vld [vmem:[%s7620_s3 + $0x1b0] ss:$52 sps:$4 sm:$0xff]  }
 0x1d9   :  { %2419 = vmatmul.mubr.bf16.gmra.mrb[24].mxu0 %v4333_v61  ;;  %v4373_v61 = vld [vmem:[%s7620_s3 + $0x21c] ss:$52 sps:$4 sm:$0xff]  }
 0x1da   :  { %2426 = vmatprep.mubr.bf16.mxu0 %v4337_v17  ;;  %v4378_v17 = vld [vmem:[%s7620_s3 + $0x220] ss:$52 sps:$4 sm:$0xff]  }
 0x1db   :  { %2516 = vmatmul.mubr.bf16.gmra.mrb[24].mxu1 %v4336_v46  ;;  %v4375_v46 = vld [vmem:[%s7620_s3 + $0x218] ss:$52 sps:$4 sm:$0xff]  }
 0x1dc   :  { %2523 = vmatprep.mubr.bf16.mxu1 %v4340_v21  ;;  %v4382_v21 = vld [vmem:[%s7620_s3 + $0x28c] ss:$52 sps:$4 sm:$0xff]  }
 0x1e1   :  { %2427 = vmatmul.mubr.bf16.gmra.mrb[28].mxu0 %v4339_v22  ;;  %v4385_v22 = vld [vmem:[%s7620_s3 + $0x2ec] ss:$52 sps:$4 sm:$0xff]  }
 0x1e2   :  { %2564 = vmatprep.mubr.bf16.mxu0 %v4345_v57  ;;  %v4393_v57 = vld [vmem:[%s7620_s3 + $0x24] ss:$52 sps:$4 sm:$0xff]  }
 0x1e3   :  { %2524 = vmatmul.mubr.bf16.gmra.mrb[28].mxu1 %v4342_v3  ;;  %v4390_v3 = vld [vmem:[%s7620_s3 + $0x2f0] ss:$52 sps:$4 sm:$0xff]  }
 0x1e4   :  { %2661 = vmatprep.mubr.bf16.mxu1 %v4348_v20  ;;  %v4396_v20 = vld [vmem:[%s7620_s3 + $0x2c] ss:$52 sps:$4 sm:$0xff]  }
 0x1e9   :  { %2565 = vmatmul.mubr.bf16.vlgmr.msra.gmra.mrb[32].mxu0 %v4343_v38  ;;  %v4394_v38 = vld [vmem:[%s7620_s3 + $0x28] ss:$52 sps:$4 sm:$0xff]  }
 0x1ea   :  { %2572 = vmatprep.mubr.bf16.mxu0 %v4349_v50  ;;  %4058 = vmatpush3.bf16.msra.mxu0 %v1674_v62  ;;  %v4400_v50 = vld [vmem:[%s7620_s3 + $0x94] ss:$52 sps:$4 sm:$0xff]  }
 0x1eb   :  { %2662 = vmatmul.mubr.bf16.vlgmr.msra.gmra.mrb[32].mxu1 %v4346_v44  ;;  %4059 = vmatprep.subr.bf16.mxu0 %v1683_v52  ;;  %v4397_v44 = vld [vmem:[%s7620_s3 + $0x8c] ss:$52 sps:$4 sm:$0xff]   ;;  %v4399_v62 = vld [vmem:[%s7620_s3 + $0x88] ss:$52 sps:$4 sm:$0xff]   ;;  %v1708_v52 = vld [vmem:[#allocation3 + $0x310] sm:$0xff] }
 0x1ec   :  { %2669 = vmatprep.mubr.bf16.mxu1 %v4352_v7  ;;  %4122 = vmatpush3.bf16.msra.mxu1 %v1690_v33  ;;  %v1707_v7 = vld [vmem:[#allocation3 + $0x308] sm:$0xff]  ;;  %v4402_v33 = vld [vmem:[%s7620_s3 + $0x90] ss:$52 sps:$4 sm:$0xff]  }
 0x1ed   :  { %4123 = vmatprep.subr.bf16.mxu1 %v1699_v41  ;;  %v4403_v41 = vld [vmem:[%s7620_s3 + $0xf4] ss:$52 sps:$4 sm:$0xff]  }
 0x1ee   :  { %4060 = vmatpush3.bf16.msra.mxu0 %v1675_v40  ;;  %v3057_v40 = vld [vmem:[%s7623_s6] sm:$0xff] }
 0x1ef   :  { %4061 = vmatprep.subr.bf16.mxu0 %v1684_v63  ;;  %3075 = vperm.xlu1 %4294, %v3057_v40   ;;  %v4408_v63 = vld [vmem:[%s7620_s3 + $0xf8] ss:$52 sps:$4 sm:$0xff]  }
 0x1f0   :  { %4124 = vmatpush3.bf16.msra.mxu1 %v1691_v53  ;;  %v4405_v53 = vld [vmem:[%s7620_s3 + $0xf0] ss:$52 sps:$4 sm:$0xff]  }
 0x1f1   :  { %4125 = vmatprep.subr.bf16.mxu1 %v1700_v32  ;;  %2573 = vmatmul.mubr.bf16.gmra.mrb[36].mxu0 %v4351_v43  ;;  %v4406_v43 = vld [vmem:[%s7620_s3 + $0xfc] ss:$52 sps:$4 sm:$0xff]   ;;  %v1710_v32 = vld [vmem:[#allocation3 + $0x320] sm:$0xff] }
 0x1f2   :  { %2580 = vmatprep.mubr.bf16.mxu0 %v4355_v54  ;;  %4062 = vmatpush3.bf16.msra.mxu0 %v1676_v15  ;;  %v1709_v54 = vld [vmem:[#allocation3 + $0x318] sm:$0xff] }
 0x1f3   :  { %2670 = vmatmul.mubr.bf16.gmra.mrb[36].mxu1 %v4354_v39  ;;  %4063 = vmatprep.subr.bf16.mxu0 %v1685_v25  ;;  %v3058_v39 = vld [vmem:[%s7623_s6 + $0x8] sm:$0xff]  ;;  %v4412_v15 = vld [vmem:[%s7620_s3 + $0x164] ss:$52 sps:$4 sm:$0xff]  }
 0x1f4   :  { %2677 = vmatprep.mubr.bf16.mxu1 %v4358_v51  ;;  %4126 = vmatpush3.bf16.msra.mxu1 %v1692_v29  ;;  %v4409_v51 = vld [vmem:[%s7620_s3 + $0x15c] ss:$52 sps:$4 sm:$0xff]   ;;  %v1711_v29 = vld [vmem:[#allocation3 + $0x328] sm:$0xff] }
 0x1f5   :  { %4127 = vmatprep.subr.bf16.mxu1 %v1701_v59  ;;  %3080 = vperm.xlu0 %4293, %v3058_v39   ;;  %v4411_v25 = vld [vmem:[%s7620_s3 + $0x158] ss:$52 sps:$4 sm:$0xff]   ;;  %v4414_v59 = vld [vmem:[%s7620_s3 + $0x160] ss:$52 sps:$4 sm:$0xff]  }
 0x1f6   :  { %4064 = vmatpush3.bf16.msra.mxu0 %v1677_v4  ;;  %v1712_v4 = vld [vmem:[#allocation3 + $0x330] sm:$0xff] }
 0x1f7   :  { %4065 = vmatprep.subr.bf16.mxu0 %v1686_v18  ;;  %v4421_v18 = vld [vmem:[%s7620_s3 + $0x22c] ss:$52 sps:$4 sm:$0xff]  }
 0x1f8   :  { %4128 = vmatpush3.bf16.msra.mxu1 %v1693_v35  ;;  %v1713_v35 = vld [vmem:[#allocation3 + $0x338] sm:$0xff] }
 0x1f9   :  { %4129 = vmatprep.subr.bf16.mxu1 %v1702_v56  ;;  %2581 = vmatmul.mubr.bf16.gmra.mrb[40].mxu0 %v4357_v42  ;;  %v4415_v42 = vld [vmem:[%s7620_s3 + $0x1c4] ss:$52 sps:$4 sm:$0xff]   ;;  %v4424_v56 = vld [vmem:[%s7620_s3 + $0x234] ss:$52 sps:$4 sm:$0xff]  }
 0x1fa   :  { %2588 = vmatprep.mubr.bf16.mxu0 %v4361_v0  ;;  %4066 = vmatpush3.bf16.msra.mxu0 %v1678_v9  ;;  %v4417_v0 = vld [vmem:[%s7620_s3 + $0x1c0] ss:$52 sps:$4 sm:$0xff]   ;;  %v4423_v9 = vld [vmem:[%s7620_s3 + $0x228] ss:$52 sps:$4 sm:$0xff]  }
 0x1fb   :  { %2678 = vmatmul.mubr.bf16.gmra.mrb[40].mxu1 %v4360_v6  ;;  %4067 = vmatprep.subr.bf16.mxu0 %v1687_v19  ;;  %v4418_v6 = vld [vmem:[%s7620_s3 + $0x1cc] ss:$52 sps:$4 sm:$0xff]   ;;  %v4427_v19 = vld [vmem:[%s7620_s3 + $0x294] ss:$52 sps:$4 sm:$0xff]  }
 0x1fc   :  { %2685 = vmatprep.mubr.bf16.mxu1 %v4364_v34  ;;  %4130 = vmatpush3.bf16.msra.mxu1 %v1694_v26  ;;  %v4420_v34 = vld [vmem:[%s7620_s3 + $0x1c8] ss:$52 sps:$4 sm:$0xff]   ;;  %v4426_v26 = vld [vmem:[%s7620_s3 + $0x230] ss:$52 sps:$4 sm:$0xff]  }
 0x1fd   :  { %4131 = vmatprep.subr.bf16.mxu1 %v1703_v49  ;;  %v4430_v49 = vld [vmem:[%s7620_s3 + $0x29c] ss:$52 sps:$4 sm:$0xff]  }
 0x1fe   :  { %4068 = vmatpush3.bf16.msra.mxu0 %v1679_v12  ;;  %v4429_v12 = vld [vmem:[%s7620_s3 + $0x290] ss:$52 sps:$4 sm:$0xff]  }
 0x1ff   :  { %4069 = vmatprep.subr.bf16.mxu0 %v1688_v58  ;;  %v4435_v58 = vld [vmem:[%s7620_s3 + $0x2f8] ss:$52 sps:$4 sm:$0xff]  }
 0x200   :  { %4132 = vmatpush3.bf16.msra.mxu1 %v1695_v48  ;;  %v4433_v48 = vld [vmem:[%s7620_s3 + $0x2fc] ss:$52 sps:$4 sm:$0xff]  }
 0x201   :  { %4133 = vmatprep.subr.bf16.mxu1 %v1704_v1  ;;  %2589 = vmatmul.mubr.bf16.gmra.mrb[44].mxu0 %v4363_v37  ;;  %v4432_v37 = vld [vmem:[%s7620_s3 + $0x298] ss:$52 sps:$4 sm:$0xff]   ;;  %v4438_v1 = vld [vmem:[%s7620_s3 + $0x300] ss:$52 sps:$4 sm:$0xff]  }
 0x202   :  { %2596 = vmatprep.mubr.bf16.mxu0 %v4367_v27  ;;  %4070 = vmatpush3.bf16.msra.mxu0 %v1680_v8  ;;  %v4439_v27 = vld [vmem:[%s7620_s3 + $0x30] ss:$52 sps:$4 sm:$0xff]   ;;  %v4441_v8 = vld [vmem:[%s7620_s3 + $0x100] ss:$52 sps:$4 sm:$0xff]  }
 0x203   :  { %2686 = vmatmul.mubr.bf16.gmra.mrb[44].mxu1 %v4366_v5  ;;  %4071 = vmatprep.subr.bf16.mxu0 %v1689_v10  ;;  %v4436_v5 = vld [vmem:[%s7620_s3 + $0x304] ss:$52 sps:$4 sm:$0xff]  }
 0x204   :  { %2693 = vmatprep.mubr.bf16.mxu1 %v4370_v16  ;;  %4134 = vmatpush3.bf16.msra.mxu1 %v1696_v13  ;;  %v4440_v16 = vld [vmem:[%s7620_s3 + $0x98] ss:$52 sps:$4 sm:$0xff]   ;;  %v4442_v13 = vld [vmem:[%s7620_s3 + $0x168] ss:$52 sps:$4 sm:$0xff]   ;;  %v4443_v10 = vld [vmem:[%s7620_s3 + $0x1d0] ss:$52 sps:$4 sm:$0xff]  }
 0x205   :  { %4135 = vmatprep.subr.bf16.mxu1 %v1705_v60  ;;  %v4444_v60 = vld [vmem:[%s7620_s3 + $0x238] ss:$52 sps:$4 sm:$0xff]  }
 0x206   :  { %4072 = vmatpush3.bf16.msra.mxu0 %v1681_v36 }
 0x207   :  { %4217 = vmatprep.subr.bf16.mxu0 %v1706_v28 }
 0x208   :  { %4136 = vmatpush3.bf16.msra.mxu1 %v1697_v23  ;;  %v4445_v23 = vld [vmem:[%s7620_s3 + $0x2a0] ss:$52 sps:$4 sm:$0xff]  }
 0x209   :  { %2597 = vmatmul.mubr.bf16.gmra.mrb[48].mxu0 %v4369_v14 }
 0x20a   :  { %2604 = vmatprep.mubr.bf16.mxu0 %v4373_v61 }
 0x20b   :  { %2694 = vmatmul.mubr.bf16.gmra.mrb[48].mxu1 %v4372_v24 }
 0x20c   :  { %2701 = vmatprep.mubr.bf16.mxu1 %v4376_v55 }
 0x211   :  { %2605 = vmatmul.mubr.bf16.gmra.mrb[52].mxu0 %v4375_v46 }
 0x212   :  { %2612 = vmatprep.mubr.bf16.mxu0 %v4379_v11 }
 0x213   :  { %2702 = vmatmul.mubr.bf16.gmra.mrb[52].mxu1 %v4378_v17  ;;  %v4446_v17 = vld [vmem:[%s7620_s3 + $0x308] ss:$52 sps:$4 sm:$0xff]  }
 0x214   :  { %2709 = vmatprep.mubr.bf16.mxu1 %v4382_v21 }
 0x219   :  { %2613 = vmatmul.mubr.bf16.gmra.mrb[56].mxu0 %v4381_v30 }
 0x21a   :  { %2620 = vmatprep.mubr.bf16.mxu0 %v4385_v22 }
 0x21b   :  { %2710 = vmatmul.mubr.bf16.gmra.mrb[56].mxu1 %v4384_v45 }
 0x21c   :  { %2717 = vmatprep.mubr.bf16.mxu1 %v4388_v31 }
 0x21d   :  { %v1733_v36 = vpop.permute.xlu0 %1732 }
 0x21e   :  { %v1743_v24 = vpop.permute.xlu1 %1742 }
 0x221   :  { %2621 = vmatmul.mubr.bf16.gmra.mrb[60].mxu0 %v4387_v2  ;;  %v1738_v14 = vpop.permute.xlu0 %1737 }
 0x222   :  { %2758 = vmatprep.mubr.bf16.mxu0 %v4393_v57 }
 0x223   :  { %2718 = vmatmul.mubr.bf16.gmra.mrb[60].mxu1 %v4390_v3 }
 0x224   :  { %2855 = vmatprep.mubr.bf16.mxu1 %v4396_v20 }
 0x229   :  { %2759 = vmatmul.mubr.bf16.vlgmr.msra.gmra.mrb[64].mxu0 %v4391_v47 }
 0x22a   :  { %2766 = vmatprep.mubr.bf16.mxu0 %v4397_v44  ;;  %4218 = vmatpush3.bf16.msra.mxu0 %v1706_v28 }
 0x22b   :  { %2856 = vmatmul.mubr.bf16.vlgmr.msra.gmra.mrb[64].mxu1 %v4394_v38  ;;  %4219 = vmatprep.subr.bf16.mxu0 %v1707_v7  ;;  %v1748_v38 = vpop.permute.xlu1 %1747 }
 0x22c   :  { %2863 = vmatprep.mubr.bf16.mxu1 %v4400_v50 }
 0x22e   :  { %4220 = vmatpush3.bf16.msra.mxu0 %v1707_v7 }
 0x22f   :  { %4221 = vmatprep.subr.bf16.mxu0 %v1708_v52 }
 0x231   :  { %2767 = vmatmul.mubr.bf16.gmra.mrb[68].mxu0 %v4399_v62 }
 0x232   :  { %2774 = vmatprep.mubr.bf16.mxu0 %v4403_v41  ;;  %4222 = vmatpush3.bf16.msra.mxu0 %v1708_v52 }
 0x233   :  { %2864 = vmatmul.mubr.bf16.gmra.mrb[68].mxu1 %v4402_v33  ;;  %4223 = vmatprep.subr.bf16.mxu0 %v1709_v54 }
 0x234   :  { %2871 = vmatprep.mubr.bf16.mxu1 %v4406_v43 }
 0x236   :  { %4224 = vmatpush3.bf16.msra.mxu0 %v1709_v54 }
 0x237   :  { %4225 = vmatprep.subr.bf16.mxu0 %v1710_v32 }
 0x239   :  { %2775 = vmatmul.mubr.bf16.gmra.mrb[72].mxu0 %v4405_v53 }
 0x23a   :  { %2782 = vmatprep.mubr.bf16.mxu0 %v4409_v51  ;;  %4226 = vmatpush3.bf16.msra.mxu0 %v1710_v32 }
 0x23b   :  { %2872 = vmatmul.mubr.bf16.gmra.mrb[72].mxu1 %v4408_v63  ;;  %4227 = vmatprep.subr.bf16.mxu0 %v1711_v29 }
 0x23c   :  { %2879 = vmatprep.mubr.bf16.mxu1 %v4412_v15 }
 0x23e   :  { %4228 = vmatpush3.bf16.msra.mxu0 %v1711_v29  ;;  %v1753_v29 = vpop.permute.xlu0 %1752 }
 0x23f   :  { %4229 = vmatprep.subr.bf16.mxu0 %v1712_v4 }
 0x241   :  { %2783 = vmatmul.mubr.bf16.gmra.mrb[76].mxu0 %v4411_v25  ;;  %v1758_v25 = vpop.permute.xlu1 %1757 }
 0x242   :  { %2790 = vmatprep.mubr.bf16.mxu0 %v4415_v42  ;;  %4230 = vmatpush3.bf16.msra.mxu0 %v1712_v4 }
 0x243   :  { %2880 = vmatmul.mubr.bf16.gmra.mrb[76].mxu1 %v4414_v59  ;;  %4231 = vmatprep.subr.bf16.mxu0 %v1713_v35 }
 0x244   :  { %2887 = vmatprep.mubr.bf16.mxu1 %v4418_v6 }
 0x246   :  { %4232 = vmatpush3.bf16.msra.mxu0 %v1713_v35 }
 0x249   :  { %2791 = vmatmul.mubr.bf16.gmra.mrb[80].mxu0 %v4417_v0 }
 0x24a   :  { %2798 = vmatprep.mubr.bf16.mxu0 %v4421_v18 }
 0x24b   :  { %2888 = vmatmul.mubr.bf16.gmra.mrb[80].mxu1 %v4420_v34 }
 0x24c   :  { %2895 = vmatprep.mubr.bf16.mxu1 %v4424_v56 }
 0x251   :  { %2799 = vmatmul.mubr.bf16.gmra.mrb[84].mxu0 %v4423_v9 }
 0x252   :  { %2806 = vmatprep.mubr.bf16.mxu0 %v4427_v19 }
 0x253   :  { %2896 = vmatmul.mubr.bf16.gmra.mrb[84].mxu1 %v4426_v26 }
 0x254   :  { %2903 = vmatprep.mubr.bf16.mxu1 %v4430_v49 }
 0x259   :  { %2807 = vmatmul.mubr.bf16.gmra.mrb[88].mxu0 %v4429_v12 }
 0x25a   :  { %2814 = vmatprep.mubr.bf16.mxu0 %v4433_v48 }
 0x25b   :  { %2904 = vmatmul.mubr.bf16.gmra.mrb[88].mxu1 %v4432_v37 }
 0x25c   :  { %2911 = vmatprep.mubr.bf16.mxu1 %v4436_v5  ;;  %v1763_v5 = vpop.permute.xlu0 %1762 }
 0x261   :  { %2815 = vmatmul.mubr.bf16.gmra.mrb[92].mxu0 %v4435_v58  ;;  %v1768_v58 = vpop.permute.xlu1 %1767 }
 0x262   :  { %4233 = vmatprep.mubr.bf16.mxu0 %v4439_v27 }
 0x263   :  { %2912 = vmatmul.mubr.bf16.gmra.mrb[92].mxu1 %v4438_v1 }
 0x269   :  { %4234 = vmatmul.mubr.bf16.vlgmr.msra.gmra.mrb[96].mxu0 %v4440_v16 }
 0x26a   :  { %4237 = vmatprep.mubr.bf16.mxu0 %v4441_v8 }
 0x271   :  { %4238 = vmatmul.mubr.bf16.gmra.mrb[100].mxu0 %v4442_v13 }
 0x272   :  { %4241 = vmatprep.mubr.bf16.mxu0 %v4443_v10 }
 0x279   :  { %4242 = vmatmul.mubr.bf16.gmra.mrb[104].mxu0 %v4444_v60 }
 0x27a   :  { %4245 = vmatprep.mubr.bf16.mxu0 %v4445_v23 }
 0x27c   :  { %v3817_v28 = vpop.f32.mrb[0].mxu0 }
 0x27d   :  { %v3818_v55 = vpop.f32.mrb[1].mxu0 }
 0x27e   :  { %v3881_v61 = vpop.f32.mrb[0].mxu1  ;;  %v3819_v11 = vadd.f32 %v3818_v55, %v3817_v28  ;;  %v3820_v21 = vpop.f32.mrb[2].mxu0 }
 0x27f   :  { %v3882_v46 = vpop.f32.mrb[1].mxu1  ;;  %v3821_v22 = vpop.f32.mrb[3].mxu0 }
 0x280   :  { %v3883_v30 = vadd.f32 %v3882_v46, %v3881_v61  ;;  %v3884_v45 = vpop.f32.mrb[2].mxu1  ;;  %v2373_v2 = vadd.f32 %v3819_v11, %v1733_v36  ;;  %v3822_v3 = vadd.f32 %v3821_v22, %v3820_v21  ;;  %v1773_v11 = vpop.permute.xlu0 %1772 }
 0x281   :  { %v3885_v31 = vpop.f32.mrb[3].mxu1  ;;  %4246 = vmatmul.mubr.bf16.gmra.mrb[108].mxu0 %v4446_v17  ;;  %v1778_v21 = vpop.permute.xlu1 %1777 }
 0x282   :  { %v3886_v57 = vadd.f32 %v3885_v31, %v3884_v45  ;;  %v7386_v20 = vadd.f32 %v3883_v30, %v2373_v2  ;;  %v2376_v47 = vadd.f32 %v3822_v3, %v1738_v14 }
 0x284   :  { %v7388_v44 = vadd.f32 %v3886_v57, %v2376_v47  ;;  %v3823_v50 = vpop.f32.mrb[4].mxu0 }
 0x285   :  { %v3824_v62 = vpop.f32.mrb[5].mxu0 }
 0x286   :  { %v3887_v7 = vpop.f32.mrb[4].mxu1  ;;  %v3825_v52 = vadd.f32 %v3824_v62, %v3823_v50  ;;  %v3826_v41 = vpop.f32.mrb[6].mxu0 }
 0x287   :  { %v3888_v33 = vpop.f32.mrb[5].mxu1  ;;  %v3827_v54 = vpop.f32.mrb[7].mxu0 }
 0x288   :  { %v3889_v43 = vadd.f32 %v3888_v33, %v3887_v7  ;;  %v3890_v39 = vpop.f32.mrb[6].mxu1  ;;  %v2381_v53 = vadd.f32 %v3825_v52, %v1743_v24  ;;  %v3828_v63 = vadd.f32 %v3827_v54, %v3826_v41  ;;  %v1788_v54 = vpop.permute.xlu1 %1787 }
 0x289   :  { %v3891_v40 = vpop.f32.mrb[7].mxu1 }
 0x28a   :  { %v3892_v32 = vadd.f32 %v3891_v40, %v3890_v39  ;;  %v7390_v51 = vadd.f32 %v3889_v43, %v2381_v53  ;;  %v2384_v15 = vadd.f32 %v3828_v63, %v1748_v38  ;;  %v1783_v39 = vpop.permute.xlu0 %1782 }
 0x28c   :  { %v7392_v59 = vadd.f32 %v3892_v32, %v2384_v15  ;;  %v3829_v4 = vpop.f32.mrb[8].mxu0 }
 0x28d   :  { %v3830_v6 = vpop.f32.mrb[9].mxu0 }
 0x28e   :  { %v3893_v42 = vpop.f32.mrb[8].mxu1  ;;  %v3831_v0 = vadd.f32 %v3830_v6, %v3829_v4  ;;  %v3832_v34 = vpop.f32.mrb[10].mxu0 }
 0x28f   :  { %v3894_v35 = vpop.f32.mrb[9].mxu1  ;;  %v3833_v9 = vpop.f32.mrb[11].mxu0 }
 0x290   :  { %v3895_v18 = vadd.f32 %v3894_v35, %v3893_v42  ;;  %v3896_v56 = vpop.f32.mrb[10].mxu1  ;;  %v2389_v19 = vadd.f32 %v3831_v0, %v1753_v29  ;;  %v3834_v49 = vadd.f32 %v3833_v9, %v3832_v34 }
 0x291   :  { %v3897_v26 = vpop.f32.mrb[11].mxu1 }
 0x292   :  { %v3898_v12 = vadd.f32 %v3897_v26, %v3896_v56  ;;  %v7394_v37 = vadd.f32 %v3895_v18, %v2389_v19  ;;  %v2392_v48 = vadd.f32 %v3834_v49, %v1758_v25  ;;  %v1793_v26 = vpop.permute.xlu0 %1792  ;;  %v1798_v19 = vpop.permute.xlu1 %1797 }
 0x294   :  { %v7396_v1 = vadd.f32 %v3898_v12, %v2392_v48  ;;  %v3835_v27 = vpop.f32.mrb[12].mxu0 }
 0x295   :  { %v3836_v8 = vpop.f32.mrb[13].mxu0 }
 0x296   :  { %v3899_v16 = vpop.f32.mrb[12].mxu1  ;;  %v3837_v10 = vadd.f32 %v3836_v8, %v3835_v27  ;;  %v3838_v60 = vpop.f32.mrb[14].mxu0 }
 0x297   :  { %v3900_v13 = vpop.f32.mrb[13].mxu1  ;;  %v3839_v14 = vpop.f32.mrb[15].mxu0 }
 0x298   :  { %v3901_v36 = vadd.f32 %v3900_v13, %v3899_v16  ;;  %v3902_v23 = vpop.f32.mrb[14].mxu1  ;;  %v2397_v28 = vadd.f32 %v3837_v10, %v1763_v5  ;;  %v3840_v61 = vadd.f32 %v3839_v14, %v3838_v60 }
 0x299   :  { %v3903_v24 = vpop.f32.mrb[15].mxu1 }
 0x29a   :  { %v3904_v55 = vadd.f32 %v3903_v24, %v3902_v23  ;;  %v7398_v46 = vadd.f32 %v3901_v36, %v2397_v28  ;;  %v2400_v17 = vadd.f32 %v3840_v61, %v1768_v58  ;;  %v1803_v61 = vpop.permute.xlu0 %1802 }
 0x29c   :  { %v7400_v30 = vadd.f32 %v3904_v55, %v2400_v17  ;;  %v3841_v45 = vpop.f32.mrb[16].mxu0  ;;  %v1808_v55 = vpop.permute.xlu1 %1807 }
 0x29d   :  { %v3842_v31 = vpop.f32.mrb[17].mxu0 }
 0x29e   :  { %v3905_v22 = vpop.f32.mrb[16].mxu1  ;;  %v3843_v3 = vadd.f32 %v3842_v31, %v3841_v45  ;;  %v3844_v57 = vpop.f32.mrb[18].mxu0 }
 0x29f   :  { %v3906_v2 = vpop.f32.mrb[17].mxu1  ;;  %v3845_v50 = vpop.f32.mrb[19].mxu0 }
 0x2a0   :  { %v3907_v47 = vadd.f32 %v3906_v2, %v3905_v22  ;;  %v3908_v38 = vpop.f32.mrb[18].mxu1  ;;  %v2405_v62 = vadd.f32 %v3843_v3, %v1773_v11  ;;  %v3846_v33 = vadd.f32 %v3845_v50, %v3844_v57 }
 0x2a1   :  { %v3909_v7 = vpop.f32.mrb[19].mxu1 }
 0x2a2   :  { %v3910_v52 = vadd.f32 %v3909_v7, %v3908_v38  ;;  %v7402_v41 = vadd.f32 %v3907_v47, %v2405_v62  ;;  %v2408_v43 = vadd.f32 %v3846_v33, %v1778_v21 }
 0x2a4   :  { %v7404_v40 = vadd.f32 %v3910_v52, %v2408_v43  ;;  %v3847_v53 = vpop.f32.mrb[20].mxu0 }
 0x2a5   :  { %v3848_v32 = vpop.f32.mrb[21].mxu0 }
 0x2a6   :  { %v3911_v63 = vpop.f32.mrb[20].mxu1  ;;  %v3849_v29 = vadd.f32 %v3848_v32, %v3847_v53  ;;  %v3850_v25 = vpop.f32.mrb[22].mxu0 }
 0x2a7   :  { %v3912_v15 = vpop.f32.mrb[21].mxu1  ;;  %v3851_v6 = vpop.f32.mrb[23].mxu0 }
 0x2a8   :  { %v3913_v4 = vadd.f32 %v3912_v15, %v3911_v63  ;;  %v3914_v42 = vpop.f32.mrb[22].mxu1  ;;  %v2413_v0 = vadd.f32 %v3849_v29, %v1783_v39  ;;  %v3852_v34 = vadd.f32 %v3851_v6, %v3850_v25 }
 0x2a9   :  { %v3915_v35 = vpop.f32.mrb[23].mxu1 }
 0x2aa   :  { %v3916_v18 = vadd.f32 %v3915_v35, %v3914_v42  ;;  %v7406_v56 = vadd.f32 %v3913_v4, %v2413_v0  ;;  %v2416_v9 = vadd.f32 %v3852_v34, %v1788_v54 }
 0x2ac   :  { %v7408_v49 = vadd.f32 %v3916_v18, %v2416_v9  ;;  %v3853_v12 = vpop.f32.mrb[24].mxu0 }
 0x2ad   :  { %v3854_v5 = vpop.f32.mrb[25].mxu0 }
 0x2ae   :  { %v3917_v48 = vpop.f32.mrb[24].mxu1  ;;  %v3855_v27 = vadd.f32 %v3854_v5, %v3853_v12  ;;  %v3856_v16 = vpop.f32.mrb[26].mxu0 }
 0x2af   :  { %v3918_v58 = vpop.f32.mrb[25].mxu1  ;;  %v3857_v10 = vpop.f32.mrb[27].mxu0 }
 0x2b0   :  { %v3919_v8 = vadd.f32 %v3918_v58, %v3917_v48  ;;  %v3920_v13 = vpop.f32.mrb[26].mxu1  ;;  %v2421_v36 = vadd.f32 %v3855_v27, %v1793_v26  ;;  %v3858_v23 = vadd.f32 %v3857_v10, %v3856_v16 }
 0x2b1   :  { %v3921_v60 = vpop.f32.mrb[27].mxu1 }
 0x2b2   :  { %v3922_v14 = vadd.f32 %v3921_v60, %v3920_v13  ;;  %v7410_v24 = vadd.f32 %v3919_v8, %v2421_v36  ;;  %v2424_v28 = vadd.f32 %v3858_v23, %v1798_v19 }
 0x2b4   :  { %v7412_v17 = vadd.f32 %v3922_v14, %v2424_v28  ;;  %v3859_v11 = vpop.f32.mrb[28].mxu0 }
 0x2b5   :  { %v3860_v45 = vpop.f32.mrb[29].mxu0 }
 0x2b6   :  { %v3923_v21 = vpop.f32.mrb[28].mxu1  ;;  %v3861_v31 = vadd.f32 %v3860_v45, %v3859_v11  ;;  %v3862_v2 = vpop.f32.mrb[30].mxu0 }
 0x2b7   :  { %v3924_v22 = vpop.f32.mrb[29].mxu1  ;;  %v3863_v47 = vpop.f32.mrb[31].mxu0 }
 0x2b8   :  { %v3925_v3 = vadd.f32 %v3924_v22, %v3923_v21  ;;  %v3926_v57 = vpop.f32.mrb[30].mxu1  ;;  %v2429_v50 = vadd.f32 %v3861_v31, %v1803_v61  ;;  %v3864_v7 = vadd.f32 %v3863_v47, %v3862_v2 }
 0x2b9   :  { %v3927_v38 = vpop.f32.mrb[31].mxu1 }
 0x2ba   :  { %v3928_v62 = vadd.f32 %v3927_v38, %v3926_v57  ;;  %v7414_v33 = vadd.f32 %v3925_v3, %v2429_v50  ;;  %v2432_v52 = vadd.f32 %v3864_v7, %v1808_v55 }
 0x2bc   :  { %v7416_v43 = vadd.f32 %v3928_v62, %v2432_v52  ;;  %v3945_v39 = vpop.f32.mrb[32].mxu0 }
 0x2bd   :  { %v3946_v53 = vpop.f32.mrb[33].mxu0 }
 0x2be   :  { %v4009_v54 = vpop.f32.mrb[32].mxu1  ;;  %v3947_v32 = vadd.f32 %v3946_v53, %v3945_v39  ;;  %v3948_v15 = vpop.f32.mrb[34].mxu0 }
 0x2bf   :  { %v4010_v63 = vpop.f32.mrb[33].mxu1  ;;  %v3949_v4 = vpop.f32.mrb[35].mxu0 }
 0x2c0   :  { %v4011_v29 = vadd.f32 %v4010_v63, %v4009_v54  ;;  %v4012_v25 = vpop.f32.mrb[34].mxu1  ;;  %v2567_v6 = vadd.f32 %v3947_v32, %v7386_v20  ;;  %v3950_v35 = vadd.f32 %v3949_v4, %v3948_v15 }
 0x2c1   :  { %v4013_v42 = vpop.f32.mrb[35].mxu1 }
 0x2c2   :  { %v4014_v0 = vadd.f32 %v4013_v42, %v4012_v25  ;;  %v2570_v34 = vadd.f32 %v3950_v35, %v7388_v44  ;;  %v7420_v18 = vadd.f32 %v4011_v29, %v2567_v6 }
 0x2c4   :  { %v7422_v9 = vadd.f32 %v4014_v0, %v2570_v34  ;;  %v3951_v26 = vpop.f32.mrb[36].mxu0 }
 0x2c5   :  { %v3952_v12 = vpop.f32.mrb[37].mxu0 }
 0x2c6   :  { %v4015_v19 = vpop.f32.mrb[36].mxu1  ;;  %v3953_v5 = vadd.f32 %v3952_v12, %v3951_v26  ;;  %v3954_v58 = vpop.f32.mrb[38].mxu0 }
 0x2c7   :  { %v4016_v48 = vpop.f32.mrb[37].mxu1  ;;  %v3955_v8 = vpop.f32.mrb[39].mxu0 }
 0x2c8   :  { %v4017_v27 = vadd.f32 %v4016_v48, %v4015_v19  ;;  %v4018_v16 = vpop.f32.mrb[38].mxu1  ;;  %v2575_v20 = vadd.f32 %v3953_v5, %v7390_v51  ;;  %v3956_v10 = vadd.f32 %v3955_v8, %v3954_v58 }
 0x2c9   :  { %v4019_v13 = vpop.f32.mrb[39].mxu1 }
 0x2ca   :  { %v4020_v60 = vadd.f32 %v4019_v13, %v4018_v16  ;;  %v2578_v44 = vadd.f32 %v3956_v10, %v7392_v59  ;;  %v7426_v36 = vadd.f32 %v4017_v27, %v2575_v20  ;;  %v4447_v13 = vld [vmem:[%s7622_s5] sm:$0xff]  }
 0x2cb   :  { %4265 = vmatprep.mubr.bf16.mxu1 %v4447_v13 }
 0x2cc   :  { %v7428_v23 = vadd.f32 %v4020_v60, %v2578_v44  ;;  %v3957_v14 = vpop.f32.mrb[40].mxu0 }
 0x2cd   :  { %v3958_v61 = vpop.f32.mrb[41].mxu0 }
 0x2ce   :  { %v4021_v28 = vpop.f32.mrb[40].mxu1  ;;  %v3959_v11 = vadd.f32 %v3958_v61, %v3957_v14  ;;  %v3960_v21 = vpop.f32.mrb[42].mxu0 }
 0x2cf   :  { %v4022_v55 = vpop.f32.mrb[41].mxu1  ;;  %v3961_v31 = vpop.f32.mrb[43].mxu0 }
 0x2d0   :  { %v4023_v45 = vadd.f32 %v4022_v55, %v4021_v28  ;;  %v4024_v22 = vpop.f32.mrb[42].mxu1  ;;  %v2583_v51 = vadd.f32 %v3959_v11, %v7394_v37  ;;  %v3962_v3 = vadd.f32 %v3961_v31, %v3960_v21 }
 0x2d1   :  { %v4025_v2 = vpop.f32.mrb[43].mxu1 }
 0x2d2   :  { %v4026_v57 = vadd.f32 %v4025_v2, %v4024_v22  ;;  %v2586_v59 = vadd.f32 %v3962_v3, %v7396_v1  ;;  %v7432_v47 = vadd.f32 %v4023_v45, %v2583_v51 }
 0x2d4   :  { %v7434_v38 = vadd.f32 %v4026_v57, %v2586_v59  ;;  %v3963_v50 = vpop.f32.mrb[44].mxu0 }
 0x2d5   :  { %v3964_v62 = vpop.f32.mrb[45].mxu0 }
 0x2d6   :  { %v4027_v7 = vpop.f32.mrb[44].mxu1  ;;  %v3965_v39 = vadd.f32 %v3964_v62, %v3963_v50  ;;  %v3966_v54 = vpop.f32.mrb[46].mxu0 }
 0x2d7   :  { %v4028_v52 = vpop.f32.mrb[45].mxu1  ;;  %v3967_v32 = vpop.f32.mrb[47].mxu0 }
 0x2d8   :  { %v4029_v53 = vadd.f32 %v4028_v52, %v4027_v7  ;;  %v4030_v63 = vpop.f32.mrb[46].mxu1  ;;  %v2591_v37 = vadd.f32 %v3965_v39, %v7398_v46  ;;  %v3968_v29 = vadd.f32 %v3967_v32, %v3966_v54 }
 0x2d9   :  { %v4031_v15 = vpop.f32.mrb[47].mxu1 }
 0x2da   :  { %v4032_v25 = vadd.f32 %v4031_v15, %v4030_v63  ;;  %v2594_v1 = vadd.f32 %v3968_v29, %v7400_v30  ;;  %v7438_v4 = vadd.f32 %v4029_v53, %v2591_v37 }
 0x2dc   :  { %v7440_v42 = vadd.f32 %v4032_v25, %v2594_v1  ;;  %v3969_v6 = vpop.f32.mrb[48].mxu0 }
 0x2dd   :  { %v3970_v0 = vpop.f32.mrb[49].mxu0 }
 0x2de   :  { %v4033_v35 = vpop.f32.mrb[48].mxu1  ;;  %v3971_v26 = vadd.f32 %v3970_v0, %v3969_v6  ;;  %v3972_v19 = vpop.f32.mrb[50].mxu0 }
 0x2df   :  { %v4034_v34 = vpop.f32.mrb[49].mxu1  ;;  %v3973_v5 = vpop.f32.mrb[51].mxu0 }
 0x2e0   :  { %v4035_v12 = vadd.f32 %v4034_v34, %v4033_v35  ;;  %v4036_v48 = vpop.f32.mrb[50].mxu1  ;;  %v2599_v46 = vadd.f32 %v3971_v26, %v7402_v41  ;;  %v3974_v27 = vadd.f32 %v3973_v5, %v3972_v19 }
 0x2e1   :  { %v4037_v58 = vpop.f32.mrb[51].mxu1 }
 0x2e2   :  { %v4038_v16 = vadd.f32 %v4037_v58, %v4036_v48  ;;  %v2602_v30 = vadd.f32 %v3974_v27, %v7404_v40  ;;  %v7444_v8 = vadd.f32 %v4035_v12, %v2599_v46 }
 0x2e4   :  { %v7449_v20 = vadd.f32 %v4038_v16, %v2602_v30  ;;  %v3975_v10 = vpop.f32.mrb[52].mxu0 }
 0x2e5   :  { %v3976_v44 = vpop.f32.mrb[53].mxu0 }
 0x2e6   :  { %v4039_v60 = vpop.f32.mrb[52].mxu1  ;;  %v3977_v28 = vadd.f32 %v3976_v44, %v3975_v10  ;;  %v3978_v61 = vpop.f32.mrb[54].mxu0 }
 0x2e7   :  { %v4040_v14 = vpop.f32.mrb[53].mxu1  ;;  %v3979_v11 = vpop.f32.mrb[55].mxu0 }
 0x2e8   :  { %v4041_v41 = vadd.f32 %v4040_v14, %v4039_v60  ;;  %v4042_v55 = vpop.f32.mrb[54].mxu1  ;;  %v2607_v40 = vadd.f32 %v3977_v28, %v7406_v56  ;;  %v3980_v45 = vadd.f32 %v3979_v11, %v3978_v61 }
 0x2e9   :  { %v4043_v21 = vpop.f32.mrb[55].mxu1 }
 0x2ea   :  { %v4044_v22 = vadd.f32 %v4043_v21, %v4042_v55  ;;  %v2610_v31 = vadd.f32 %v3980_v45, %v7408_v49  ;;  %v7453_v2 = vadd.f32 %v4041_v41, %v2607_v40 }
 0x2ec   :  { %v7455_v51 = vadd.f32 %v4044_v22, %v2610_v31  ;;  %v3981_v3 = vpop.f32.mrb[56].mxu0 }
 0x2ed   :  { %v3982_v59 = vpop.f32.mrb[57].mxu0 }
 0x2ee   :  { %v4045_v57 = vpop.f32.mrb[56].mxu1  ;;  %v3983_v7 = vadd.f32 %v3982_v59, %v3981_v3  ;;  %v3984_v62 = vpop.f32.mrb[58].mxu0 }
 0x2ef   :  { %v4046_v50 = vpop.f32.mrb[57].mxu1  ;;  %v3985_v54 = vpop.f32.mrb[59].mxu0 }
 0x2f0   :  { %v4047_v52 = vadd.f32 %v4046_v50, %v4045_v57  ;;  %v4048_v39 = vpop.f32.mrb[58].mxu1  ;;  %v2615_v56 = vadd.f32 %v3983_v7, %v7410_v24  ;;  %v3986_v63 = vadd.f32 %v3985_v54, %v3984_v62 }
 0x2f1   :  { %v4049_v53 = vpop.f32.mrb[59].mxu1 }
 0x2f2   :  { %v4050_v32 = vadd.f32 %v4049_v53, %v4048_v39  ;;  %v2618_v49 = vadd.f32 %v3986_v63, %v7412_v17  ;;  %v7459_v15 = vadd.f32 %v4047_v52, %v2615_v56 }
 0x2f4   :  { %v7461_v37 = vadd.f32 %v4050_v32, %v2618_v49  ;;  %v3987_v29 = vpop.f32.mrb[60].mxu0 }
 0x2f5   :  { %v3988_v1 = vpop.f32.mrb[61].mxu0 }
 0x2f6   :  { %v4051_v25 = vpop.f32.mrb[60].mxu1  ;;  %v3989_v35 = vadd.f32 %v3988_v1, %v3987_v29  ;;  %v3990_v0 = vpop.f32.mrb[62].mxu0 }
 0x2f7   :  { %v4052_v6 = vpop.f32.mrb[61].mxu1  ;;  %v3991_v19 = vpop.f32.mrb[63].mxu0 }
 0x2f8   :  { %v4053_v34 = vadd.f32 %v4052_v6, %v4051_v25  ;;  %v4054_v26 = vpop.f32.mrb[62].mxu1  ;;  %v2623_v24 = vadd.f32 %v3989_v35, %v7414_v33  ;;  %v3992_v48 = vadd.f32 %v3991_v19, %v3990_v0 }
 0x2f9   :  { %v4055_v12 = vpop.f32.mrb[63].mxu1 }
 0x2fa   :  { %v4056_v5 = vadd.f32 %v4055_v12, %v4054_v26  ;;  %v2626_v17 = vadd.f32 %v3992_v48, %v7416_v43  ;;  %v7465_v58 = vadd.f32 %v4053_v34, %v2623_v24 }
 0x2fc   :  { %v7467_v46 = vadd.f32 %v4056_v5, %v2626_v17  ;;  %v4073_v27 = vpop.f32.mrb[64].mxu0 }
 0x2fd   :  { %v4074_v30 = vpop.f32.mrb[65].mxu0 }
 0x2fe   :  { %v4137_v16 = vpop.f32.mrb[64].mxu1  ;;  %v4075_v10 = vadd.f32 %v4074_v30, %v4073_v27  ;;  %v4076_v60 = vpop.f32.mrb[66].mxu0 }
 0x2ff   :  { %v4138_v13 = vpop.f32.mrb[65].mxu1  ;;  %v4077_v28 = vpop.f32.mrb[67].mxu0 }
 0x300   :  { %v4139_v44 = vadd.f32 %v4138_v13, %v4137_v16  ;;  %v4140_v14 = vpop.f32.mrb[66].mxu1  ;;  %v2761_v33 = vadd.f32 %v4075_v10, %v7420_v18  ;;  %v4078_v41 = vadd.f32 %v4077_v28, %v4076_v60 }
 0x301   :  { %v4141_v61 = vpop.f32.mrb[67].mxu1 }
 0x302   :  { %v4142_v55 = vadd.f32 %v4141_v61, %v4140_v14  ;;  %v2764_v43 = vadd.f32 %v4078_v41, %v7422_v9  ;;  %v7471_v11 = vadd.f32 %v4139_v44, %v2761_v33 }
 0x304   :  { %v4079_v21 = vpop.f32.mrb[68].mxu0  ;;  %v7473_v45 = vadd.f32 %v4142_v55, %v2764_v43 }
 0x305   :  { %v4080_v22 = vpop.f32.mrb[69].mxu0 }
 0x306   :  { %v4143_v40 = vpop.f32.mrb[68].mxu1  ;;  %v4081_v3 = vadd.f32 %v4080_v22, %v4079_v21  ;;  %v4082_v57 = vpop.f32.mrb[70].mxu0 }
 0x307   :  { %v4144_v31 = vpop.f32.mrb[69].mxu1  ;;  %v4083_v7 = vpop.f32.mrb[71].mxu0 }
 0x308   :  { %v4145_v59 = vadd.f32 %v4144_v31, %v4143_v40  ;;  %v4146_v50 = vpop.f32.mrb[70].mxu1  ;;  %v2769_v18 = vadd.f32 %v4081_v3, %v7426_v36  ;;  %v4084_v52 = vadd.f32 %v4083_v7, %v4082_v57 }
 0x309   :  { %v4147_v62 = vpop.f32.mrb[71].mxu1 }
 0x30a   :  { %v4148_v39 = vadd.f32 %v4147_v62, %v4146_v50  ;;  %v2772_v9 = vadd.f32 %v4084_v52, %v7428_v23  ;;  %v7477_v54 = vadd.f32 %v4145_v59, %v2769_v18 }
 0x30c   :  { %v4085_v53 = vpop.f32.mrb[72].mxu0  ;;  %v7479_v63 = vadd.f32 %v4148_v39, %v2772_v9 }
 0x30d   :  { %v4086_v32 = vpop.f32.mrb[73].mxu0 }
 0x30e   :  { %v4149_v56 = vpop.f32.mrb[72].mxu1  ;;  %v4087_v29 = vadd.f32 %v4086_v32, %v4085_v53  ;;  %v4088_v25 = vpop.f32.mrb[74].mxu0 }
 0x30f   :  { %v4150_v49 = vpop.f32.mrb[73].mxu1  ;;  %v4089_v35 = vpop.f32.mrb[75].mxu0 }
 0x310   :  { %v4151_v1 = vadd.f32 %v4150_v49, %v4149_v56  ;;  %v4152_v6 = vpop.f32.mrb[74].mxu1  ;;  %v2777_v36 = vadd.f32 %v4087_v29, %v7432_v47  ;;  %v4090_v34 = vadd.f32 %v4089_v35, %v4088_v25 }
 0x311   :  { %v4153_v0 = vpop.f32.mrb[75].mxu1 }
 0x312   :  { %v4154_v26 = vadd.f32 %v4153_v0, %v4152_v6  ;;  %v2780_v23 = vadd.f32 %v4090_v34, %v7434_v38  ;;  %v7483_v19 = vadd.f32 %v4151_v1, %v2777_v36 }
 0x314   :  { %v4091_v12 = vpop.f32.mrb[76].mxu0  ;;  %v7485_v48 = vadd.f32 %v4154_v26, %v2780_v23 }
 0x315   :  { %v4092_v5 = vpop.f32.mrb[77].mxu0 }
 0x316   :  { %v4155_v24 = vpop.f32.mrb[76].mxu1  ;;  %v4093_v27 = vadd.f32 %v4092_v5, %v4091_v12  ;;  %v4094_v16 = vpop.f32.mrb[78].mxu0 }
 0x317   :  { %v4156_v17 = vpop.f32.mrb[77].mxu1  ;;  %v4095_v10 = vpop.f32.mrb[79].mxu0 }
 0x318   :  { %v4157_v30 = vadd.f32 %v4156_v17, %v4155_v24  ;;  %v4158_v13 = vpop.f32.mrb[78].mxu1  ;;  %v2785_v47 = vadd.f32 %v4093_v27, %v7438_v4  ;;  %v4096_v44 = vadd.f32 %v4095_v10, %v4094_v16 }
 0x319   :  { %v4159_v60 = vpop.f32.mrb[79].mxu1 }
 0x31a   :  { %v4160_v14 = vadd.f32 %v4159_v60, %v4158_v13  ;;  %v2788_v38 = vadd.f32 %v4096_v44, %v7440_v42  ;;  %v7489_v28 = vadd.f32 %v4157_v30, %v2785_v47 }
 0x31c   :  { %v4097_v61 = vpop.f32.mrb[80].mxu0  ;;  %v7491_v41 = vadd.f32 %v4160_v14, %v2788_v38 }
 0x31d   :  { %v4098_v55 = vpop.f32.mrb[81].mxu0 }
 0x31e   :  { %v4161_v33 = vpop.f32.mrb[80].mxu1  ;;  %v4099_v21 = vadd.f32 %v4098_v55, %v4097_v61  ;;  %v4100_v40 = vpop.f32.mrb[82].mxu0 }
 0x31f   :  { %v4162_v43 = vpop.f32.mrb[81].mxu1  ;;  %v4101_v3 = vpop.f32.mrb[83].mxu0 }
 0x320   :  { %v4163_v22 = vadd.f32 %v4162_v43, %v4161_v33  ;;  %v4164_v31 = vpop.f32.mrb[82].mxu1  ;;  %v2793_v4 = vadd.f32 %v4099_v21, %v7444_v8  ;;  %v4102_v59 = vadd.f32 %v4101_v3, %v4100_v40 }
 0x321   :  { %v4165_v57 = vpop.f32.mrb[83].mxu1 }
 0x322   :  { %v4166_v50 = vadd.f32 %v4165_v57, %v4164_v31  ;;  %v2796_v42 = vadd.f32 %v4102_v59, %v7449_v20  ;;  %v7495_v7 = vadd.f32 %v4163_v22, %v2793_v4 }
 0x324   :  { %v4103_v62 = vpop.f32.mrb[84].mxu0  ;;  %v7497_v52 = vadd.f32 %v4166_v50, %v2796_v42 }
 0x325   :  { %v4104_v39 = vpop.f32.mrb[85].mxu0 }
 0x326   :  { %v4167_v18 = vpop.f32.mrb[84].mxu1  ;;  %v4105_v53 = vadd.f32 %v4104_v39, %v4103_v62  ;;  %v4106_v56 = vpop.f32.mrb[86].mxu0 }
 0x327   :  { %v4168_v9 = vpop.f32.mrb[85].mxu1  ;;  %v4107_v29 = vpop.f32.mrb[87].mxu0 }
 0x328   :  { %v4169_v32 = vadd.f32 %v4168_v9, %v4167_v18  ;;  %v4170_v49 = vpop.f32.mrb[86].mxu1  ;;  %v2801_v8 = vadd.f32 %v4105_v53, %v7453_v2  ;;  %v4108_v1 = vadd.f32 %v4107_v29, %v4106_v56 }
 0x329   :  { %v4171_v25 = vpop.f32.mrb[87].mxu1 }
 0x32a   :  { %v4172_v6 = vadd.f32 %v4171_v25, %v4170_v49  ;;  %v2804_v20 = vadd.f32 %v4108_v1, %v7455_v51  ;;  %v7501_v35 = vadd.f32 %v4169_v32, %v2801_v8 }
 0x32c   :  { %v4109_v0 = vpop.f32.mrb[88].mxu0  ;;  %v7503_v34 = vadd.f32 %v4172_v6, %v2804_v20 }
 0x32d   :  { %v4110_v26 = vpop.f32.mrb[89].mxu0 }
 0x32e   :  { %v4173_v36 = vpop.f32.mrb[88].mxu1  ;;  %v4111_v12 = vadd.f32 %v4110_v26, %v4109_v0  ;;  %v4112_v24 = vpop.f32.mrb[90].mxu0 }
 0x32f   :  { %v4174_v23 = vpop.f32.mrb[89].mxu1  ;;  %v4113_v27 = vpop.f32.mrb[91].mxu0 }
 0x330   :  { %v4175_v5 = vadd.f32 %v4174_v23, %v4173_v36  ;;  %v4176_v17 = vpop.f32.mrb[90].mxu1  ;;  %v2809_v2 = vadd.f32 %v4111_v12, %v7459_v15  ;;  %v4114_v30 = vadd.f32 %v4113_v27, %v4112_v24 }
 0x331   :  { %v4177_v16 = vpop.f32.mrb[91].mxu1 }
 0x332   :  { %v4178_v13 = vadd.f32 %v4177_v16, %v4176_v17  ;;  %v2812_v51 = vadd.f32 %v4114_v30, %v7461_v37  ;;  %v7507_v10 = vadd.f32 %v4175_v5, %v2809_v2 }
 0x334   :  { %v4115_v60 = vpop.f32.mrb[92].mxu0  ;;  %v7509_v44 = vadd.f32 %v4178_v13, %v2812_v51 }
 0x335   :  { %v4116_v14 = vpop.f32.mrb[93].mxu0 }
 0x336   :  { %v4179_v47 = vpop.f32.mrb[92].mxu1  ;;  %v4117_v61 = vadd.f32 %v4116_v14, %v4115_v60  ;;  %v4118_v33 = vpop.f32.mrb[94].mxu0 }
 0x337   :  { %v4180_v38 = vpop.f32.mrb[93].mxu1  ;;  %v4119_v21 = vpop.f32.mrb[95].mxu0 }
 0x338   :  { %v4181_v55 = vadd.f32 %v4180_v38, %v4179_v47  ;;  %v4182_v43 = vpop.f32.mrb[94].mxu1  ;;  %v2817_v15 = vadd.f32 %v4117_v61, %v7465_v58  ;;  %v4120_v22 = vadd.f32 %v4119_v21, %v4118_v33 }
 0x339   :  { %v4183_v40 = vpop.f32.mrb[95].mxu1 }
 0x33a   :  { %v4184_v31 = vadd.f32 %v4183_v40, %v4182_v43  ;;  %v2820_v37 = vadd.f32 %v4120_v22, %v7467_v46  ;;  %v2914_v3 = vadd.f32 %v4181_v55, %v2817_v15  ;;  %v4450_v15 = vld [vmem:[%s7622_s5 + $0x18] sm:$0xff]   ;;  %v4451_v22 = vld [vmem:[%s7622_s5 + $0x20] sm:$0xff]  }
 0x33c   :  { %v4235_v57 = vpop.f32.mrb[96].mxu0  ;;  %v2917_v4 = vadd.f32 %v4184_v31, %v2820_v37  ;;  %v4452_v31 = vld [vmem:[%s7622_s5 + $0x28] sm:$0xff]   ;;  %v4453_v37 = vld [vmem:[%s7622_s5 + $0x30] sm:$0xff]  }
 0x33d   :  { %v2963_v59 = vadd.f32 %v4235_v57, %v7477_v54  ;;  %v2954_v50 = vpop.f32.mrb[97].mxu0  ;;  %v3298_v57 = vlaneseq }
 0x33e   :  { %v2955_v42 = vadd.f32 %v2954_v50, %v7471_v11  ;;  %v4236_v62 = vpop.f32.mrb[98].mxu0 }
 0x33f   :  { %v2966_v18 = vadd.f32 %v4236_v62, %v7479_v63  ;;  %v2957_v39 = vpop.f32.mrb[99].mxu0  ;;  %v3019_v53 = vmax.f32 %v2963_v59, 0.0 }
 0x340   :  { %v2958_v9 = vadd.f32 %v2957_v39, %v7473_v45  ;;  %v3017_v56 = vmax.f32 %v2955_v42, 0.0  ;;  %v3076_v42 = vpop.permute.xlu1 %3075  ;;  %v4500_v39 = vmov -inf  }
 0x341   :  { %v3020_v58 = vmax.f32 %v2966_v18, 0.0 }
 0x342   :  { %v3018_v32 = vmax.f32 %v2958_v9, 0.0  ;;  %v3349_v9 = vsel %vm145_vm0, -1e+30, %v4500_v39 }
 0x343   :  { %v3050_v49 = vpack.c.bf16 %v3020_v58, %v3019_v53  ;;  %v3081_v58 = vpop.permute.xlu0 %3080 }
 0x344   :  { %v3049_v46 = vpack.c.bf16 %v3018_v32, %v3017_v56  ;;  %v4239_v29 = vpop.f32.mrb[100].mxu0 }
 0x345   :  { %v2979_v25 = vadd.f32 %v4239_v29, %v7489_v28  ;;  %v2970_v8 = vpop.f32.mrb[101].mxu0 }
 0x346   :  { %v2971_v54 = vadd.f32 %v2970_v8, %v7483_v19  ;;  %v4240_v1 = vpop.f32.mrb[102].mxu0  ;;  %4249 = vmatprep.subr.bf16.mxu1 %v3049_v46 }
 0x347   :  { %v2982_v11 = vadd.f32 %v4240_v1, %v7491_v41  ;;  %v2973_v63 = vpop.f32.mrb[103].mxu0  ;;  %4250 = vmatpush3.bf16.msra.mxu1 %v3049_v46  ;;  %v3023_v6 = vmax.f32 %v2979_v25, 0.0 }
 0x348   :  { %v2974_v45 = vadd.f32 %v2973_v63, %v7485_v48  ;;  %4251 = vmatprep.subr.bf16.mxu1 %v3050_v49  ;;  %v3021_v0 = vmax.f32 %v2971_v54, 0.0 }
 0x349   :  { %v3024_v20 = vmax.f32 %v2982_v11, 0.0 }
 0x34a   :  { %v3022_v36 = vmax.f32 %v2974_v45, 0.0 }
 0x34b   :  { %v3052_v26 = vpack.c.bf16 %v3024_v20, %v3023_v6  ;;  %4252 = vmatpush3.bf16.msra.mxu1 %v3050_v49 }
 0x34c   :  { %v3051_v23 = vpack.c.bf16 %v3022_v36, %v3021_v0  ;;  %v4243_v28 = vpop.f32.mrb[104].mxu0 }
 0x34d   :  { %v2995_v12 = vadd.f32 %v4243_v28, %v7501_v35  ;;  %v2986_v19 = vpop.f32.mrb[105].mxu0 }
 0x34e   :  { %v2987_v24 = vadd.f32 %v2986_v19, %v7495_v7  ;;  %v4244_v5 = vpop.f32.mrb[106].mxu0  ;;  %4253 = vmatprep.subr.bf16.mxu1 %v3051_v23 }
 0x34f   :  { %v2998_v41 = vadd.f32 %v4244_v5, %v7503_v34  ;;  %v2989_v17 = vpop.f32.mrb[107].mxu0  ;;  %4254 = vmatpush3.bf16.msra.mxu1 %v3051_v23  ;;  %v3027_v27 = vmax.f32 %v2995_v12, 0.0 }
 0x350   :  { %v2990_v48 = vadd.f32 %v2989_v17, %v7497_v52  ;;  %4255 = vmatprep.subr.bf16.mxu1 %v3052_v26  ;;  %v3025_v2 = vmax.f32 %v2987_v24, 0.0 }
 0x351   :  { %v3028_v16 = vmax.f32 %v2998_v41, 0.0 }
 0x352   :  { %v3026_v30 = vmax.f32 %v2990_v48, 0.0 }
 0x353   :  { %v3054_v13 = vpack.c.bf16 %v3028_v16, %v3027_v27  ;;  %4256 = vmatpush3.bf16.msra.mxu1 %v3052_v26 }
 0x354   :  { %v3053_v51 = vpack.c.bf16 %v3026_v30, %v3025_v2  ;;  %v4247_v35 = vpop.f32.mrb[108].mxu0 }
 0x355   :  { %v3011_v60 = vadd.f32 %v4247_v35, %v2914_v3  ;;  %v3002_v47 = vpop.f32.mrb[109].mxu0  ;;  %v4454_v3 = vld [vmem:[%s7622_s5 + $0x38] sm:$0xff]  }
 0x356   :  { %v3003_v7 = vadd.f32 %v3002_v47, %v7507_v10  ;;  %v4248_v14 = vpop.f32.mrb[110].mxu0  ;;  %4257 = vmatprep.subr.bf16.mxu1 %v3053_v51  ;;  %v4448_v10 = vld [vmem:[%s7622_s5 + $0x8] sm:$0xff]  }
 0x357   :  { %v3014_v34 = vadd.f32 %v4248_v14, %v2917_v4  ;;  %v3005_v38 = vpop.f32.mrb[111].mxu0  ;;  %4258 = vmatpush3.bf16.msra.mxu1 %v3053_v51  ;;  %v3031_v61 = vmax.f32 %v3011_v60, 0.0  ;;  %v3299_v4 = vshrl.u32 %v3298_v57, 7 }
 0x358   :  { %v3006_v52 = vadd.f32 %v3005_v38, %v7509_v44  ;;  %4259 = vmatprep.subr.bf16.mxu1 %v3054_v13  ;;  %v3029_v55 = vmax.f32 %v3003_v7, 0.0  ;;  %v4449_v44 = vld [vmem:[%s7622_s5 + $0x10] sm:$0xff]  }
 0x359   :  { %v3032_v33 = vmax.f32 %v3014_v34, 0.0  ;;  %v3300_v59 = vadd.s32 8, %v3299_v4 }
 0x35a   :  { %v3030_v43 = vmax.f32 %v3006_v52, 0.0 }
 0x35b   :  { %v3056_v21 = vpack.c.bf16 %v3032_v33, %v3031_v61  ;;  %4260 = vmatpush3.bf16.msra.mxu1 %v3054_v13  ;;  %vm3316_vm6 = vcmp.lt.s32.totalorder %v3300_v59, 10 }
 0x35c   :  { %v3055_v40 = vpack.c.bf16 %v3030_v43, %v3029_v55 }
 0x35e   :  { %4261 = vmatprep.subr.bf16.mxu1 %v3055_v40 }
 0x35f   :  { %4262 = vmatpush3.bf16.msra.mxu1 %v3055_v40 }
 0x360   :  { %4263 = vmatprep.subr.bf16.mxu1 %v3056_v21 }
 0x363   :  { %4264 = vmatpush3.bf16.msra.mxu1 %v3056_v21 }
 0x366   :  { %4266 = vmatmul.mubr.bf16.vlgmr.msra.gmra.mrb[96].mxu1 %v4448_v10 }
 0x367   :  { %4269 = vmatprep.mubr.bf16.mxu1 %v4449_v44 }
 0x36e   :  { %4270 = vmatmul.mubr.bf16.gmra.mrb[100].mxu1 %v4450_v15 }
 0x36f   :  { %4273 = vmatprep.mubr.bf16.mxu1 %v4451_v22 }
 0x376   :  { %4274 = vmatmul.mubr.bf16.gmra.mrb[104].mxu1 %v4452_v31 }
 0x377   :  { %4277 = vmatprep.mubr.bf16.mxu1 %v4453_v37 }
 0x37e   :  { %4278 = vmatmul.mubr.bf16.gmra.mrb[108].mxu1 %v4454_v3 }
 0x439   :  { %v4267_v50 = vpop.f32.mrb[96].mxu1 }
 0x43a   :  { %v3235_v62 = vpop.f32.mrb[97].mxu1 }
 0x43b   :  { %v3236_v18 = vadd.f32 %v3235_v62, %v3076_v42  ;;  %v4268_v53 = vpop.f32.mrb[98].mxu1 }
 0x43c   :  { %v3238_v56 = vpop.f32.mrb[99].mxu1 }
 0x43d   :  { %v3347_v32 = vsel %vm145_vm0, %v3236_v18, -inf  ;;  %v3239_v49 = vadd.f32 %v3238_v56, %v3081_v58 }
 0x43e   :  { %v3352_v46 = vmax.f32 %v3347_v32, %v3349_v9 }
 0x43f   :  { %v3332_v29 = vsel %vm3316_vm6, %v3239_v49, -1e+30 }
 0x440   :  { %v3348_v25 = vsel %vm145_vm0, %v3332_v29, -inf  ;;  %v3360_v8 = vmax.f32 %v3352_v46, %v3349_v9 }
 0x441   :  { %v3354_v54 = vmax.f32 %v3348_v25, %v3349_v9  ;;  %v4271_v1 = vpop.f32.mrb[100].mxu1 }
 0x442   :  { %v3251_v11 = vpop.f32.mrb[101].mxu1  ;;  %v3368_v20 = vmax.f32 %v3360_v8, %v3349_v9 }
 0x443   :  { %v3362_v63 = vmax.f32 %v3354_v54, %v3349_v9  ;;  %v4272_v45 = vpop.f32.mrb[102].mxu1 }
 0x444   :  { %v3254_v6 = vpop.f32.mrb[103].mxu1 }
 0x445   :  { %v3370_v0 = vmax.f32 %v3362_v63, %v3349_v9 }
 0x447   :  { %v3375_v36 = vmax.f32 %v3368_v20, %v3370_v0 }
 0x449   :  { %v3377_v26 = vmax.f32 %v3375_v36, %v3349_v9  ;;  %v4275_v23 = vpop.f32.mrb[104].mxu1 }
 0x44a   :  { %v3267_v28 = vpop.f32.mrb[105].mxu1 }
 0x44b   :  { %v3378_v12 = vrot.slane %v3377_v26, 4  ;;  %v4276_v19 = vpop.f32.mrb[106].mxu1 }
 0x44c   :  { %v3270_v24 = vpop.f32.mrb[107].mxu1 }
 0x44d   :  { %v3379_v5 = vmax.f32 %v3377_v26, %v3378_v12 }
 0x44f   :  { %v3380_v41 = vrot.slane %v3379_v5, 2 }
 0x451   :  { %v3381_v17 = vmax.f32 %v3379_v5, %v3380_v41  ;;  %v4279_v48 = vpop.f32.mrb[108].mxu1 }
 0x452   :  { %v3283_v27 = vpop.f32.mrb[109].mxu1 }
 0x453   :  { %v3382_v16 = vrot.slane %v3381_v17, 1  ;;  %v4280_v2 = vpop.f32.mrb[110].mxu1 }
 0x454   :  { %v3286_v30 = vpop.f32.mrb[111].mxu1 }
 0x455   :  { %v3383_v13 = vmax.f32 %v3381_v17, %v3382_v16 }
 0x457   :  { %v3384_v51 = vsub.f32 %v3236_v18, %v3383_v13  ;;  %v3385_v35 = vsub.f32 %v3332_v29, %v3383_v13  ;;  %v3386_v60 = vsub.f32 -1e+30, %v3383_v13 }
 0x459   :  { %v3400_v47 = vmul.f32 1.442695, %v3384_v51  ;;  %v3402_v7 = vmul.f32 1.442695, %v3385_v35  ;;  %v3404_v14 = vmul.f32 1.442695, %v3386_v60 }
 0x45b   :  { %4455 = vpow2.f32 %v3400_v47 }
 0x45c   :  { %4457 = vpow2.f32 %v3402_v7 }
 0x45d   :  { %4459 = vpow2.f32 %v3404_v14 }
 0x465   :  { %v4456_v34 = vpop.eup %4455 }
 0x466   :  { %v4458_v38 = vpop.eup %4457  ;;  %v3432_v52 = vsel %vm145_vm0, %v4456_v34, 0.0 }
 0x467   :  { %v4460_v61 = vpop.eup %4459  ;;  %v3433_v33 = vsel %vm145_vm0, %v4458_v38, 0.0 }
 0x468   :  { %v3434_v55 = vadd.f32 %v3433_v33, %v3432_v52  ;;  %v3435_v43 = vsel %vm145_vm0, %v4460_v61, 0.0 }
 0x46a   :  { %v3436_v21 = vadd.f32 %v3435_v43, %v3434_v55 }
 0x46c   :  { %v3438_v40 = vadd.f32 %v3436_v21, %v3435_v43 }
 0x46e   :  { %v3440_v10 = vadd.f32 %v3438_v40, %v3435_v43 }
 0x470   :  { %v3442_v44 = vadd.f32 %v3440_v10, %v3435_v43 }
 0x472   :  { %v3444_v15 = vadd.f32 %v3442_v44, %v3435_v43 }
 0x474   :  { %v3446_v22 = vadd.f32 %v3444_v15, %v3435_v43 }
 0x476   :  { %v3448_v31 = vadd.f32 %v3446_v22, %v3435_v43 }
 0x478   :  { %v3450_v37 = vadd.f32 %v3448_v31, %v3435_v43 }
 0x47a   :  { %v3452_v3 = vadd.f32 %v3450_v37, %v3435_v43 }
 0x47c   :  { %v3454_v57 = vadd.f32 %v3452_v3, %v3435_v43 }
 0x47e   :  { %v3456_v4 = vadd.f32 %v3454_v57, %v3435_v43 }
 0x480   :  { %v3458_v59 = vadd.f32 %v3456_v4, %v3435_v43 }
 0x482   :  { %v3460_v50 = vadd.f32 %v3458_v59, %v3435_v43 }
 0x484   :  { %v3462_v42 = vadd.f32 %v3460_v50, %v3435_v43 }
 0x486   :  { %v3463_v62 = vrot.slane %v3462_v42, 4 }
 0x488   :  { %v3464_v18 = vadd.f32 %v3463_v62, %v3462_v42 }
 0x48a   :  { %v3465_v39 = vrot.slane %v3464_v18, 2 }
 0x48c   :  { %v3466_v9 = vadd.f32 %v3465_v39, %v3464_v18 }
 0x48e   :  { %v3467_v53 = vrot.slane %v3466_v9, 1 }
 0x490   :  { %v3468_v58 = vadd.f32 %v3467_v53, %v3466_v9 }
 0x492   :  { %4461 = vrcp.f32 %v3468_v58 }
 0x49c   :  { %v4462_v56 = vpop.eup %4461 }
 0x49d   :  { %v3470_v32 = vmul.f32 %v4462_v56, %v4456_v34  ;;  %v3471_v49 = vmul.f32 %v4462_v56, %v4458_v38  ;;  %v3472_v46 = vmul.f32 %v4462_v56, %v4460_v61 }
 0x49f   :  { %3486 = vst.msk [vmem:[%s7624_s7] sm:$0xff] %vm145_vm0, %v3470_v32  ;;  %3487 = vst.msk [vmem:[%s7624_s7 + $0x8] sm:$0xff] %vm145_vm0, %v3471_v49 }
 0x4a0   :  { %3488 = vst.msk [vmem:[%s7624_s7 + $0x10] sm:$0xff] %vm145_vm0, %v3472_v46  ;;  %3489 = vst.msk [vmem:[%s7624_s7 + $0x18] sm:$0xff] %vm145_vm0, %v3472_v46 }
 0x4a1   :  { %3490 = vst.msk [vmem:[%s7624_s7 + $0x20] sm:$0xff] %vm145_vm0, %v3472_v46  ;;  %3491 = vst.msk [vmem:[%s7624_s7 + $0x28] sm:$0xff] %vm145_vm0, %v3472_v46 }
 0x4a2   :  { %3492 = vst.msk [vmem:[%s7624_s7 + $0x30] sm:$0xff] %vm145_vm0, %v3472_v46  ;;  %3493 = vst.msk [vmem:[%s7624_s7 + $0x38] sm:$0xff] %vm145_vm0, %v3472_v46 }
 0x4a3   :  { %3494 = vst.msk [vmem:[%s7624_s7 + $0x40] sm:$0xff] %vm145_vm0, %v3472_v46  ;;  %3495 = vst.msk [vmem:[%s7624_s7 + $0x48] sm:$0xff] %vm145_vm0, %v3472_v46 }
 0x4a4   :  { %3496 = vst.msk [vmem:[%s7624_s7 + $0x50] sm:$0xff] %vm145_vm0, %v3472_v46  ;;  %3497 = vst.msk [vmem:[%s7624_s7 + $0x58] sm:$0xff] %vm145_vm0, %v3472_v46 }
 0x4a5   :  { %3498 = vst.msk [vmem:[%s7624_s7 + $0x60] sm:$0xff] %vm145_vm0, %v3472_v46  ;;  %3499 = vst.msk [vmem:[%s7624_s7 + $0x68] sm:$0xff] %vm145_vm0, %v3472_v46 }
 0x4a6   :  { %3500 = vst.msk [vmem:[%s7624_s7 + $0x70] sm:$0xff] %vm145_vm0, %v3472_v46  ;;  %3501 = vst.msk [vmem:[%s7624_s7 + $0x78] sm:$0xff] %vm145_vm0, %v3472_v46 }

</bundles_post_ra>
